<compile_context>
chip_gen: v5e
topology: v5e:2x2
jax: 0.10.0
libtpu: 0.0.40
codegen_flags: <defaults>
</compile_context>

<pallas_src>
import jax
import jax.numpy as jnp
from jax.experimental import pallas as pl
from jax.experimental.pallas import tpu as pltpu


def _round_up(x, m):
    return (x + m - 1) // m * m


def lstm_fc_kernel(x_ref, wih0_ref, whh0_ref, b0_ref, w1_ref, b1_ref,
                   fcw_ref, fcb_ref, out_ref,
                   gx_ref, h1_ref, c1_ref, h2_ref, c2_ref):
    """One (batch-shard, time-chunk) grid step of the fused 2-layer LSTM + FC.

    x_ref   : (Tc*Bb, D)    time-major rows of this chunk (row = t*Bb + b)
    wih0_ref: (D, 4*Hp)     layer-0 input weights (transposed, gate-padded)
    whh0_ref: (Hp, 4*Hp)    layer-0 hidden weights
    b0_ref  : (1, 4*Hp)     layer-0 combined bias (b_ih + b_hh)
    w1_ref  : (2*Hp, 4*Hp)  layer-1 fused [W_ih_l1; W_hh_l1]
    b1_ref  : (Bb, 4*Hp)    layer-1 combined bias, pre-broadcast over batch
    fcw_ref : (Hp, Op)      fc weight (transposed, padded)
    fcb_ref : (1, Op)       fc bias (padded)
    out_ref : (Bb, Op)      output (written on the last time chunk only)
    gx_ref  : (Tc*Bb, 4*Hp) scratch: hoisted layer-0 input projection
    h*/c*   : (Bb, Hp)      scratch: recurrent state carried across chunks
    """
    t_blk = pl.program_id(1)
    n_t = pl.num_programs(1)
    rows = x_ref.shape[0]
    Bb, Hp = h1_ref.shape
    Tc = rows // Bb

    # Zero the recurrent state at the start of each batch shard's sequence.
    @pl.when(t_blk == 0)
    def _():
        h1_ref[...] = jnp.zeros_like(h1_ref)
        c1_ref[...] = jnp.zeros_like(c1_ref)
        h2_ref[...] = jnp.zeros_like(h2_ref)
        c2_ref[...] = jnp.zeros_like(c2_ref)

    # Hoisted layer-0 input projection (+ bias) for the whole chunk:
    # one large MXU matmul instead of Tc tiny latency-bound ones in the loop.
    gx_ref[...] = (
        jnp.dot(x_ref[...], wih0_ref[...], preferred_element_type=jnp.float32)
        + b0_ref[...])

    whh0 = whh0_ref[...]
    w1 = w1_ref[...]
    b1 = b1_ref[...]                      # already (Bb, 4*Hp)

    def cell(gates, c):
        # PyTorch gate order: input, forget, cell(g), output.
        # Hp is a multiple of 128 -> each slice is a full lane-aligned block.
        i = jax.nn.sigmoid(gates[:, 0 * Hp:1 * Hp])
        f = jax.nn.sigmoid(gates[:, 1 * Hp:2 * Hp])
        g = jnp.tanh(gates[:, 2 * Hp:3 * Hp])
        o = jax.nn.sigmoid(gates[:, 3 * Hp:4 * Hp])
        c_new = f * c + i * g
        return o * jnp.tanh(c_new), c_new

    def step(t, carry):
        h1, c1, h2, c2 = carry
        row = pl.multiple_of(t * Bb, Bb)          # Bb is a multiple of 8
        # Layer 0: only the recurrent matmul is left on the serial chain.
        g1 = gx_ref[pl.ds(row, Bb), :] + jnp.dot(
            h1, whh0, preferred_element_type=jnp.float32)
        h1, c1 = cell(g1, c1)
        # Layer 1: both matmuls fused into one MXU push.
        hcat = jnp.concatenate([h1, h2], axis=-1)
        g2 = jnp.dot(hcat, w1, preferred_element_type=jnp.float32) + b1
        h2, c2 = cell(g2, c2)
        return h1, c1, h2, c2

    carry = (h1_ref[...], c1_ref[...], h2_ref[...], c2_ref[...])
    h1, c1, h2, c2 = jax.lax.fori_loop(0, Tc, step, carry, unroll=True)
    h1_ref[...] = h1
    c1_ref[...] = c1
    h2_ref[...] = h2
    c2_ref[...] = c2

    # fc(out[:, -1, :]) == fc applied to the final hidden state of layer 2.
    @pl.when(t_blk == n_t - 1)
    def _():
        out_ref[...] = (
            jnp.dot(h2, fcw_ref[...], preferred_element_type=jnp.float32)
            + fcb_ref[...])


def init_params(key, input_dim, hidden_dim, output_dim):
    """Deterministic init mimicking PyTorch's uniform(-1/sqrt(H), 1/sqrt(H))."""
    H, D, O = hidden_dim, input_dim, output_dim
    bound = 1.0 / jnp.sqrt(jnp.float32(H))
    ks = jax.random.split(key, 12)
    u = lambda k, shape: jax.random.uniform(k, shape, jnp.float32, -bound, bound)
    return {
        "W_ih_l0": u(ks[0], (4 * H, D)),
        "W_hh_l0": u(ks[1], (4 * H, H)),
        "b_ih_l0": u(ks[2], (4 * H,)),
        "b_hh_l0": u(ks[3], (4 * H,)),
        "W_ih_l1": u(ks[4], (4 * H, H)),
        "W_hh_l1": u(ks[5], (4 * H, H)),
        "b_ih_l1": u(ks[6], (4 * H,)),
        "b_hh_l1": u(ks[7], (4 * H,)),
        "fc_w": u(ks[8], (O, H)),
        "fc_b": u(ks[9], (O,)),
    }


def lstm_model_forward(x, params, *, t_chunk=None):
    """Equivalent of LSTMModel.forward: out, _ = lstm(x); fc(out[:, -1, :])."""
    x = x.astype(jnp.float32)
    B, T, D = x.shape
    H = params["W_hh_l0"].shape[1]
    O = params["fc_w"].shape[0]

    # Padded sizes: gates lane-aligned (128), batch sublane-aligned (8).
    Hp = _round_up(H, 128)
    Op = _round_up(O, 128)
    G = 4 * Hp
    B_pad = _round_up(B, 8)
    B_blk = min(B_pad, 256)            # per-core batch tile when B is large
    B_pad = _round_up(B_pad, B_blk)
    nB = B_pad // B_blk

    if t_chunk is None:
        t_chunk = T
    assert T % t_chunk == 0, "t_chunk must divide the sequence length"
    nT = T // t_chunk

    # ---- weight prep (float32, gate blocks padded to Hp lanes) ----
    f32 = lambda a: a.astype(jnp.float32)

    def gate_pad_cols(w):                       # (K, 4H) -> (K, 4Hp)
        K = w.shape[0]
        w4 = w.reshape(K, 4, H)
        return jnp.pad(w4, ((0, 0), (0, 0), (0, Hp - H))).reshape(K, G)

    def gate_pad_bias(b):                       # (4H,) -> (1, 4Hp)
        return jnp.pad(b.reshape(4, H), ((0, 0), (0, Hp - H))).reshape(1, G)

    wih0_p = gate_pad_cols(f32(params["W_ih_l0"]).T)                    # (D, G)
    whh0_p = jnp.pad(gate_pad_cols(f32(params["W_hh_l0"]).T),
                     ((0, Hp - H), (0, 0)))                             # (Hp, G)
    b0_p = gate_pad_bias(f32(params["b_ih_l0"] + params["b_hh_l0"]))    # (1, G)

    wih1_p = jnp.pad(gate_pad_cols(f32(params["W_ih_l1"]).T),
                     ((0, Hp - H), (0, 0)))                             # (Hp, G)
    whh1_p = jnp.pad(gate_pad_cols(f32(params["W_hh_l1"]).T),
                     ((0, Hp - H), (0, 0)))                             # (Hp, G)
    w1_cat = jnp.concatenate([wih1_p, whh1_p], axis=0)                  # (2Hp, G)
    b1_p = gate_pad_bias(f32(params["b_ih_l1"] + params["b_hh_l1"]))
    b1_b = jnp.broadcast_to(b1_p, (B_blk, G))                           # (Bb, G)

    fcw_p = jnp.pad(f32(params["fc_w"]).T, ((0, Hp - H), (0, Op - O)))  # (Hp, Op)
    fcb_p = jnp.pad(f32(params["fc_b"]), (0, Op - O)).reshape(1, Op)    # (1, Op)

    # ---- input layout: (nB, T*B_blk, D); rows time-major within a shard ----
    x_p = jnp.pad(x, ((0, B_pad - B), (0, 0), (0, 0)))
    x_l = (x_p.reshape(nB, B_blk, T, D)
              .transpose(0, 2, 1, 3)
              .reshape(nB, T * B_blk, D))

    grid_spec = pltpu.PrefetchScalarGridSpec(
        num_scalar_prefetch=0,
        grid=(nB, nT),
        in_specs=[
            pl.BlockSpec((None, t_chunk * B_blk, D), lambda b, t: (b, t, 0)),
            pl.BlockSpec((D, G), lambda b, t: (0, 0)),
            pl.BlockSpec((Hp, G), lambda b, t: (0, 0)),
            pl.BlockSpec((1, G), lambda b, t: (0, 0)),
            pl.BlockSpec((2 * Hp, G), lambda b, t: (0, 0)),
            pl.BlockSpec((B_blk, G), lambda b, t: (0, 0)),
            pl.BlockSpec((Hp, Op), lambda b, t: (0, 0)),
            pl.BlockSpec((1, Op), lambda b, t: (0, 0)),
        ],
        out_specs=pl.BlockSpec((None, B_blk, Op), lambda b, t: (b, 0, 0)),
        scratch_shapes=[
            pltpu.VMEM((t_chunk * B_blk, G), jnp.float32),   # hoisted gx
            pltpu.VMEM((B_blk, Hp), jnp.float32),            # h1
            pltpu.VMEM((B_blk, Hp), jnp.float32),            # c1
            pltpu.VMEM((B_blk, Hp), jnp.float32),            # h2
            pltpu.VMEM((B_blk, Hp), jnp.float32),            # c2
        ],
    )

    out_p = pl.pallas_call(
        lstm_fc_kernel,
        out_shape=jax.ShapeDtypeStruct((nB, B_blk, Op), jnp.float32),
        grid_spec=grid_spec,
        compiler_params=pltpu.CompilerParams(
            dimension_semantics=("parallel", "arbitrary"),
            # Explicit VMEM budget; safe headroom even on v7x's 64 MiB/core.
            vmem_limit_bytes=48 * 1024 * 1024,
        ),
    )(x_l, wih0_p, whh0_p, b0_p, w1_cat, b1_b, fcw_p, fcb_p)

    return out_p.reshape(nB * B_blk, Op)[:B, :O]


def lstm_model_forward_ref(x, params):
    """Pure-JAX reference (matches torch.nn.LSTM semantics) for verification."""
    B, T, D = x.shape
    H = params["W_hh_l0"].shape[1]

    def layer(xs, wih, whh, bih, bhh):
        def step(carry, xt):
            h, c = carry
            g = xt @ wih.T + bih + h @ whh.T + bhh
            i = jax.nn.sigmoid(g[:, 0:H])
            f = jax.nn.sigmoid(g[:, H:2 * H])
            gg = jnp.tanh(g[:, 2 * H:3 * H])
            o = jax.nn.sigmoid(g[:, 3 * H:4 * H])
            c = f * c + i * gg
            h = o * jnp.tanh(c)
            return (h, c), h
        init = (jnp.zeros((B, H), jnp.float32), jnp.zeros((B, H), jnp.float32))
        _, hs = jax.lax.scan(step, init, jnp.transpose(xs, (1, 0, 2)))
        return jnp.transpose(hs, (1, 0, 2))

    h1 = layer(x, params["W_ih_l0"], params["W_hh_l0"],
               params["b_ih_l0"], params["b_hh_l0"])
    h2 = layer(h1, params["W_ih_l1"], params["W_hh_l1"],
               params["b_ih_l1"], params["b_hh_l1"])
    return h2[:, -1, :] @ params["fc_w"].T + params["fc_b"]


if __name__ == "__main__":
    # x: (batch, seq_len, input_dim); output: (batch, output_dim)
    B, T, D, H, O = 2, 8, 4, 32, 4

    key = jax.random.PRNGKey(0)
    kx, kp = jax.random.split(key)
    x = jax.random.normal(kx, (B, T, D), jnp.float32)
    params = init_params(kp, input_dim=D, hidden_dim=H, output_dim=O)

    # t_chunk=4 -> grid (1 batch shard, 2 time chunks): exercises streaming +
    # the VMEM scratch carry of h/c across grid steps.
    out = lstm_model_forward(x, params, t_chunk=4)
    out = jax.block_until_ready(out)

    ref = lstm_model_forward_ref(x, params)
    assert out.shape == (B, O), out.shape
    assert jnp.allclose(out, ref, rtol=1e-4, atol=1e-5), (out, ref)

    # TODO(synk): train_model/evaluate (Adam loop, MSE/L1 metrics) are host-side
    # training utilities, not part of the forward pass, and are not kernelized.
    print("KERNEL_OK")
</pallas_src>

<mosaic_0001>
module attributes {stable_mosaic.version = 11 : i64} {
  func.func @lstm_fc_kernel(%arg0: i32, %arg1: i32, %arg2: memref<1x32x4xf32, #tpu.memory_space<vmem>>, %arg3: memref<4x512xf32, #tpu.memory_space<vmem>>, %arg4: memref<128x512xf32, #tpu.memory_space<vmem>>, %arg5: memref<1x512xf32, #tpu.memory_space<vmem>>, %arg6: memref<256x512xf32, #tpu.memory_space<vmem>>, %arg7: memref<8x512xf32, #tpu.memory_space<vmem>>, %arg8: memref<128x128xf32, #tpu.memory_space<vmem>>, %arg9: memref<1x128xf32, #tpu.memory_space<vmem>>, %arg10: memref<1x8x128xf32, #tpu.memory_space<vmem>>, %arg11: memref<32x512xf32, #tpu.memory_space<vmem>>, %arg12: memref<8x128xf32, #tpu.memory_space<vmem>>, %arg13: memref<8x128xf32, #tpu.memory_space<vmem>>, %arg14: memref<8x128xf32, #tpu.memory_space<vmem>>, %arg15: memref<8x128xf32, #tpu.memory_space<vmem>>) attributes {dimension_semantics = [#tpu.dimension_semantics<parallel>, #tpu.dimension_semantics<arbitrary>], iteration_bounds = array<i64: 1, 2>, scalar_prefetch = 0 : i64, scratch_operands = 5 : i64, tpu.core_type = #tpu.core_type<tc>, window_params = [{transform_indices = @transform_0, window_bounds = array<i64: 1, 32, 4>}, {pipeline_mode = #tpu.pipeline_mode<synchronous>, transform_indices = @transform_1, window_bounds = array<i64: 4, 512>}, {pipeline_mode = #tpu.pipeline_mode<synchronous>, transform_indices = @transform_2, window_bounds = array<i64: 128, 512>}, {pipeline_mode = #tpu.pipeline_mode<synchronous>, transform_indices = @transform_3, window_bounds = array<i64: 1, 512>}, {pipeline_mode = #tpu.pipeline_mode<synchronous>, transform_indices = @transform_4, window_bounds = array<i64: 256, 512>}, {pipeline_mode = #tpu.pipeline_mode<synchronous>, transform_indices = @transform_5, window_bounds = array<i64: 8, 512>}, {pipeline_mode = #tpu.pipeline_mode<synchronous>, transform_indices = @transform_6, window_bounds = array<i64: 128, 128>}, {pipeline_mode = #tpu.pipeline_mode<synchronous>, transform_indices = @transform_7, window_bounds = array<i64: 1, 128>}, {transform_indices = @transform_8, window_bounds = array<i64: 1, 8, 128>}]} {
    %c0_i32 = arith.constant 0 : i32
    %0 = arith.cmpi eq, %arg1, %c0_i32 : i32
    %1 = arith.extui %0 : i1 to i32
    %c0_i32_0 = arith.constant 0 : i32
    %2 = arith.cmpi ne, %1, %c0_i32_0 : i32
    scf.if %2 {
      %cst_73 = arith.constant 0.000000e+00 : f32
      %261 = vector.broadcast %cst_73 : f32 to vector<8x128xf32>
      %c0_74 = arith.constant 0 : index
      %c0_75 = arith.constant 0 : index
      %262 = vector.load %arg12[%c0_74, %c0_75] : memref<8x128xf32, #tpu.memory_space<vmem>>, vector<8x128xf32>
      tpu.vector_store %arg12[%c0_74, %c0_75], %261 {strides = array<i32>} : memref<8x128xf32, #tpu.memory_space<vmem>>, vector<8x128xf32>,
      %cst_76 = arith.constant 0.000000e+00 : f32
      %263 = vector.broadcast %cst_76 : f32 to vector<8x128xf32>
      %c0_77 = arith.constant 0 : index
      %c0_78 = arith.constant 0 : index
      %264 = vector.load %arg13[%c0_77, %c0_78] : memref<8x128xf32, #tpu.memory_space<vmem>>, vector<8x128xf32>
      tpu.vector_store %arg13[%c0_77, %c0_78], %263 {strides = array<i32>} : memref<8x128xf32, #tpu.memory_space<vmem>>, vector<8x128xf32>,
      %cst_79 = arith.constant 0.000000e+00 : f32
      %265 = vector.broadcast %cst_79 : f32 to vector<8x128xf32>
      %c0_80 = arith.constant 0 : index
      %c0_81 = arith.constant 0 : index
      %266 = vector.load %arg14[%c0_80, %c0_81] : memref<8x128xf32, #tpu.memory_space<vmem>>, vector<8x128xf32>
      tpu.vector_store %arg14[%c0_80, %c0_81], %265 {strides = array<i32>} : memref<8x128xf32, #tpu.memory_space<vmem>>, vector<8x128xf32>,
      %cst_82 = arith.constant 0.000000e+00 : f32
      %267 = vector.broadcast %cst_82 : f32 to vector<8x128xf32>
      %c0_83 = arith.constant 0 : index
      %c0_84 = arith.constant 0 : index
      %268 = vector.load %arg15[%c0_83, %c0_84] : memref<8x128xf32, #tpu.memory_space<vmem>>, vector<8x128xf32>
      tpu.vector_store %arg15[%c0_83, %c0_84], %267 {strides = array<i32>} : memref<8x128xf32, #tpu.memory_space<vmem>>, vector<8x128xf32>,
    } else {
    }
    %c0 = arith.constant 0 : index
    %c0_1 = arith.constant 0 : index
    %c0_2 = arith.constant 0 : index
    %3 = vector.load %arg2[%c0, %c0_1, %c0_2] : memref<1x32x4xf32, #tpu.memory_space<vmem>>, vector<1x32x4xf32>
    %4 = vector.shape_cast %3 : vector<1x32x4xf32> to vector<32x4xf32>
    %c0_3 = arith.constant 0 : index
    %c0_4 = arith.constant 0 : index
    %5 = vector.load %arg3[%c0_3, %c0_4] : memref<4x512xf32, #tpu.memory_space<vmem>>, vector<4x512xf32>
    %cst = arith.constant dense<0.000000e+00> : vector<32x512xf32>
    %6 = tpu.matmul %4, %5, %cst {dimension_numbers = #tpu.dot_dimension_numbers<[1], [0], [0], [1], [0, 0, 1, 1], [], []>} : vector<32x4xf32>, vector<4x512xf32>, vector<32x512xf32> -> vector<32x512xf32>
    %c0_5 = arith.constant 0 : index
    %c0_6 = arith.constant 0 : index
    %7 = vector.load %arg5[%c0_5, %c0_6] : memref<1x512xf32, #tpu.memory_space<vmem>>, vector<1x512xf32>
    %8 = vector.broadcast %7 : vector<1x512xf32> to vector<32x512xf32>
    %9 = arith.addf %6, %8 : vector<32x512xf32>
    %c0_7 = arith.constant 0 : index
    %c0_8 = arith.constant 0 : index
    %10 = vector.load %arg11[%c0_7, %c0_8] : memref<32x512xf32, #tpu.memory_space<vmem>>, vector<32x512xf32>
    tpu.vector_store %arg11[%c0_7, %c0_8], %9 {strides = array<i32>} : memref<32x512xf32, #tpu.memory_space<vmem>>, vector<32x512xf32>,
    %c0_9 = arith.constant 0 : index
    %c0_10 = arith.constant 0 : index
    %11 = vector.load %arg4[%c0_9, %c0_10] : memref<128x512xf32, #tpu.memory_space<vmem>>, vector<128x512xf32>
    %c0_11 = arith.constant 0 : index
    %c0_12 = arith.constant 0 : index
    %12 = vector.load %arg6[%c0_11, %c0_12] : memref<256x512xf32, #tpu.memory_space<vmem>>, vector<256x512xf32>
    %c0_13 = arith.constant 0 : index
    %c0_14 = arith.constant 0 : index
    %13 = vector.load %arg7[%c0_13, %c0_14] : memref<8x512xf32, #tpu.memory_space<vmem>>, vector<8x512xf32>
    %c0_15 = arith.constant 0 : index
    %c0_16 = arith.constant 0 : index
    %14 = vector.load %arg12[%c0_15, %c0_16] : memref<8x128xf32, #tpu.memory_space<vmem>>, vector<8x128xf32>
    %c0_17 = arith.constant 0 : index
    %c0_18 = arith.constant 0 : index
    %15 = vector.load %arg13[%c0_17, %c0_18] : memref<8x128xf32, #tpu.memory_space<vmem>>, vector<8x128xf32>
    %c0_19 = arith.constant 0 : index
    %c0_20 = arith.constant 0 : index
    %16 = vector.load %arg14[%c0_19, %c0_20] : memref<8x128xf32, #tpu.memory_space<vmem>>, vector<8x128xf32>
    %c0_21 = arith.constant 0 : index
    %c0_22 = arith.constant 0 : index
    %17 = vector.load %arg15[%c0_21, %c0_22] : memref<8x128xf32, #tpu.memory_space<vmem>>, vector<8x128xf32>
    %c0_i32_23 = arith.constant 0 : i32
    %c8_i32 = arith.constant 8 : i32
    %18 = arith.muli %c0_i32_23, %c8_i32 : i32
    %19 = tpu.assume_multiple %18, 8 : i32
    %20 = arith.index_cast %19 : i32 to index
    %c0_24 = arith.constant 0 : index
    %21 = vector.load %arg11[%20, %c0_24] : memref<32x512xf32, #tpu.memory_space<vmem>>, vector<8x512xf32>
    %cst_25 = arith.constant dense<0.000000e+00> : vector<8x512xf32>
    %22 = tpu.matmul %14, %11, %cst_25 {dimension_numbers = #tpu.dot_dimension_numbers<[1], [0], [0], [1], [0, 0, 1, 1], [], []>} : vector<8x128xf32>, vector<128x512xf32>, vector<8x512xf32> -> vector<8x512xf32>
    %23 = arith.addf %21, %22 : vector<8x512xf32>
    %24 = vector.extract_strided_slice %23 {offsets = [0, 0], sizes = [8, 128], strides = [1, 1]} : vector<8x512xf32> to vector<8x128xf32>
    %25 = arith.negf %24 : vector<8x128xf32>
    %26 = math.exp %25 : vector<8x128xf32>
    %cst_26 = arith.constant 1.000000e+00 : f32
    %27 = vector.broadcast %cst_26 : f32 to vector<8x128xf32>
    %28 = arith.addf %27, %26 : vector<8x128xf32>
    %29 = arith.divf %27, %28 : vector<8x128xf32>
    %30 = vector.extract_strided_slice %23 {offsets = [0, 128], sizes = [8, 128], strides = [1, 1]} : vector<8x512xf32> to vector<8x128xf32>
    %31 = arith.negf %30 : vector<8x128xf32>
    %32 = math.exp %31 : vector<8x128xf32>
    %cst_27 = arith.constant 1.000000e+00 : f32
    %33 = vector.broadcast %cst_27 : f32 to vector<8x128xf32>
    %34 = arith.addf %33, %32 : vector<8x128xf32>
    %35 = arith.divf %33, %34 : vector<8x128xf32>
    %36 = vector.extract_strided_slice %23 {offsets = [0, 256], sizes = [8, 128], strides = [1, 1]} : vector<8x512xf32> to vector<8x128xf32>
    %37 = math.tanh %36 : vector<8x128xf32>
    %38 = vector.extract_strided_slice %23 {offsets = [0, 384], sizes = [8, 128], strides = [1, 1]} : vector<8x512xf32> to vector<8x128xf32>
    %39 = arith.negf %38 : vector<8x128xf32>
    %40 = math.exp %39 : vector<8x128xf32>
    %cst_28 = arith.constant 1.000000e+00 : f32
    %41 = vector.broadcast %cst_28 : f32 to vector<8x128xf32>
    %42 = arith.addf %41, %40 : vector<8x128xf32>
    %43 = arith.divf %41, %42 : vector<8x128xf32>
    %44 = arith.mulf %35, %15 : vector<8x128xf32>
    %45 = arith.mulf %29, %37 : vector<8x128xf32>
    %46 = arith.addf %44, %45 : vector<8x128xf32>
    %47 = math.tanh %46 : vector<8x128xf32>
    %48 = arith.mulf %43, %47 : vector<8x128xf32>
    %49 = tpu.concatenate %48, %16 in 1 : vector<8x128xf32>, vector<8x128xf32> -> vector<8x256xf32>
    %cst_29 = arith.constant dense<0.000000e+00> : vector<8x512xf32>
    %50 = tpu.matmul %49, %12, %cst_29 {dimension_numbers = #tpu.dot_dimension_numbers<[1], [0], [0], [1], [0, 0, 1, 1], [], []>} : vector<8x256xf32>, vector<256x512xf32>, vector<8x512xf32> -> vector<8x512xf32>
    %51 = arith.addf %50, %13 : vector<8x512xf32>
    %52 = vector.extract_strided_slice %51 {offsets = [0, 0], sizes = [8, 128], strides = [1, 1]} : vector<8x512xf32> to vector<8x128xf32>
    %53 = arith.negf %52 : vector<8x128xf32>
    %54 = math.exp %53 : vector<8x128xf32>
    %cst_30 = arith.constant 1.000000e+00 : f32
    %55 = vector.broadcast %cst_30 : f32 to vector<8x128xf32>
    %56 = arith.addf %55, %54 : vector<8x128xf32>
    %57 = arith.divf %55, %56 : vector<8x128xf32>
    %58 = vector.extract_strided_slice %51 {offsets = [0, 128], sizes = [8, 128], strides = [1, 1]} : vector<8x512xf32> to vector<8x128xf32>
    %59 = arith.negf %58 : vector<8x128xf32>
    %60 = math.exp %59 : vector<8x128xf32>
    %cst_31 = arith.constant 1.000000e+00 : f32
    %61 = vector.broadcast %cst_31 : f32 to vector<8x128xf32>
    %62 = arith.addf %61, %60 : vector<8x128xf32>
    %63 = arith.divf %61, %62 : vector<8x128xf32>
    %64 = vector.extract_strided_slice %51 {offsets = [0, 256], sizes = [8, 128], strides = [1, 1]} : vector<8x512xf32> to vector<8x128xf32>
    %65 = math.tanh %64 : vector<8x128xf32>
    %66 = vector.extract_strided_slice %51 {offsets = [0, 384], sizes = [8, 128], strides = [1, 1]} : vector<8x512xf32> to vector<8x128xf32>
    %67 = arith.negf %66 : vector<8x128xf32>
    %68 = math.exp %67 : vector<8x128xf32>
    %cst_32 = arith.constant 1.000000e+00 : f32
    %69 = vector.broadcast %cst_32 : f32 to vector<8x128xf32>
    %70 = arith.addf %69, %68 : vector<8x128xf32>
    %71 = arith.divf %69, %70 : vector<8x128xf32>
    %72 = arith.mulf %63, %17 : vector<8x128xf32>
    %73 = arith.mulf %57, %65 : vector<8x128xf32>
    %74 = arith.addf %72, %73 : vector<8x128xf32>
    %75 = math.tanh %74 : vector<8x128xf32>
    %76 = arith.mulf %71, %75 : vector<8x128xf32>
    %c1_i32 = arith.constant 1 : i32
    %c8_i32_33 = arith.constant 8 : i32
    %77 = arith.muli %c1_i32, %c8_i32_33 : i32
    %78 = tpu.assume_multiple %77, 8 : i32
    %79 = arith.index_cast %78 : i32 to index
    %c0_34 = arith.constant 0 : index
    %80 = vector.load %arg11[%79, %c0_34] : memref<32x512xf32, #tpu.memory_space<vmem>>, vector<8x512xf32>
    %cst_35 = arith.constant dense<0.000000e+00> : vector<8x512xf32>
    %81 = tpu.matmul %48, %11, %cst_35 {dimension_numbers = #tpu.dot_dimension_numbers<[1], [0], [0], [1], [0, 0, 1, 1], [], []>} : vector<8x128xf32>, vector<128x512xf32>, vector<8x512xf32> -> vector<8x512xf32>
    %82 = arith.addf %80, %81 : vector<8x512xf32>
    %83 = vector.extract_strided_slice %82 {offsets = [0, 0], sizes = [8, 128], strides = [1, 1]} : vector<8x512xf32> to vector<8x128xf32>
    %84 = arith.negf %83 : vector<8x128xf32>
    %85 = math.exp %84 : vector<8x128xf32>
    %cst_36 = arith.constant 1.000000e+00 : f32
    %86 = vector.broadcast %cst_36 : f32 to vector<8x128xf32>
    %87 = arith.addf %86, %85 : vector<8x128xf32>
    %88 = arith.divf %86, %87 : vector<8x128xf32>
    %89 = vector.extract_strided_slice %82 {offsets = [0, 128], sizes = [8, 128], strides = [1, 1]} : vector<8x512xf32> to vector<8x128xf32>
    %90 = arith.negf %89 : vector<8x128xf32>
    %91 = math.exp %90 : vector<8x128xf32>
    %cst_37 = arith.constant 1.000000e+00 : f32
    %92 = vector.broadcast %cst_37 : f32 to vector<8x128xf32>
    %93 = arith.addf %92, %91 : vector<8x128xf32>
    %94 = arith.divf %92, %93 : vector<8x128xf32>
    %95 = vector.extract_strided_slice %82 {offsets = [0, 256], sizes = [8, 128], strides = [1, 1]} : vector<8x512xf32> to vector<8x128xf32>
    %96 = math.tanh %95 : vector<8x128xf32>
    %97 = vector.extract_strided_slice %82 {offsets = [0, 384], sizes = [8, 128], strides = [1, 1]} : vector<8x512xf32> to vector<8x128xf32>
    %98 = arith.negf %97 : vector<8x128xf32>
    %99 = math.exp %98 : vector<8x128xf32>
    %cst_38 = arith.constant 1.000000e+00 : f32
    %100 = vector.broadcast %cst_38 : f32 to vector<8x128xf32>
    %101 = arith.addf %100, %99 : vector<8x128xf32>
    %102 = arith.divf %100, %101 : vector<8x128xf32>
    %103 = arith.mulf %94, %46 : vector<8x128xf32>
    %104 = arith.mulf %88, %96 : vector<8x128xf32>
    %105 = arith.addf %103, %104 : vector<8x128xf32>
    %106 = math.tanh %105 : vector<8x128xf32>
    %107 = arith.mulf %102, %106 : vector<8x128xf32>
    %108 = tpu.concatenate %107, %76 in 1 : vector<8x128xf32>, vector<8x128xf32> -> vector<8x256xf32>
    %cst_39 = arith.constant dense<0.000000e+00> : vector<8x512xf32>
    %109 = tpu.matmul %108, %12, %cst_39 {dimension_numbers = #tpu.dot_dimension_numbers<[1], [0], [0], [1], [0, 0, 1, 1], [], []>} : vector<8x256xf32>, vector<256x512xf32>, vector<8x512xf32> -> vector<8x512xf32>
    %110 = arith.addf %109, %13 : vector<8x512xf32>
    %111 = vector.extract_strided_slice %110 {offsets = [0, 0], sizes = [8, 128], strides = [1, 1]} : vector<8x512xf32> to vector<8x128xf32>
    %112 = arith.negf %111 : vector<8x128xf32>
    %113 = math.exp %112 : vector<8x128xf32>
    %cst_40 = arith.constant 1.000000e+00 : f32
    %114 = vector.broadcast %cst_40 : f32 to vector<8x128xf32>
    %115 = arith.addf %114, %113 : vector<8x128xf32>
    %116 = arith.divf %114, %115 : vector<8x128xf32>
    %117 = vector.extract_strided_slice %110 {offsets = [0, 128], sizes = [8, 128], strides = [1, 1]} : vector<8x512xf32> to vector<8x128xf32>
    %118 = arith.negf %117 : vector<8x128xf32>
    %119 = math.exp %118 : vector<8x128xf32>
    %cst_41 = arith.constant 1.000000e+00 : f32
    %120 = vector.broadcast %cst_41 : f32 to vector<8x128xf32>
    %121 = arith.addf %120, %119 : vector<8x128xf32>
    %122 = arith.divf %120, %121 : vector<8x128xf32>
    %123 = vector.extract_strided_slice %110 {offsets = [0, 256], sizes = [8, 128], strides = [1, 1]} : vector<8x512xf32> to vector<8x128xf32>
    %124 = math.tanh %123 : vector<8x128xf32>
    %125 = vector.extract_strided_slice %110 {offsets = [0, 384], sizes = [8, 128], strides = [1, 1]} : vector<8x512xf32> to vector<8x128xf32>
    %126 = arith.negf %125 : vector<8x128xf32>
    %127 = math.exp %126 : vector<8x128xf32>
    %cst_42 = arith.constant 1.000000e+00 : f32
    %128 = vector.broadcast %cst_42 : f32 to vector<8x128xf32>
    %129 = arith.addf %128, %127 : vector<8x128xf32>
    %130 = arith.divf %128, %129 : vector<8x128xf32>
    %131 = arith.mulf %122, %74 : vector<8x128xf32>
    %132 = arith.mulf %116, %124 : vector<8x128xf32>
    %133 = arith.addf %131, %132 : vector<8x128xf32>
    %134 = math.tanh %133 : vector<8x128xf32>
    %135 = arith.mulf %130, %134 : vector<8x128xf32>
    %c2_i32 = arith.constant 2 : i32
    %c8_i32_43 = arith.constant 8 : i32
    %136 = arith.muli %c2_i32, %c8_i32_43 : i32
    %137 = tpu.assume_multiple %136, 8 : i32
    %138 = arith.index_cast %137 : i32 to index
    %c0_44 = arith.constant 0 : index
    %139 = vector.load %arg11[%138, %c0_44] : memref<32x512xf32, #tpu.memory_space<vmem>>, vector<8x512xf32>
    %cst_45 = arith.constant dense<0.000000e+00> : vector<8x512xf32>
    %140 = tpu.matmul %107, %11, %cst_45 {dimension_numbers = #tpu.dot_dimension_numbers<[1], [0], [0], [1], [0, 0, 1, 1], [], []>} : vector<8x128xf32>, vector<128x512xf32>, vector<8x512xf32> -> vector<8x512xf32>
    %141 = arith.addf %139, %140 : vector<8x512xf32>
    %142 = vector.extract_strided_slice %141 {offsets = [0, 0], sizes = [8, 128], strides = [1, 1]} : vector<8x512xf32> to vector<8x128xf32>
    %143 = arith.negf %142 : vector<8x128xf32>
    %144 = math.exp %143 : vector<8x128xf32>
    %cst_46 = arith.constant 1.000000e+00 : f32
    %145 = vector.broadcast %cst_46 : f32 to vector<8x128xf32>
    %146 = arith.addf %145, %144 : vector<8x128xf32>
    %147 = arith.divf %145, %146 : vector<8x128xf32>
    %148 = vector.extract_strided_slice %141 {offsets = [0, 128], sizes = [8, 128], strides = [1, 1]} : vector<8x512xf32> to vector<8x128xf32>
    %149 = arith.negf %148 : vector<8x128xf32>
    %150 = math.exp %149 : vector<8x128xf32>
    %cst_47 = arith.constant 1.000000e+00 : f32
    %151 = vector.broadcast %cst_47 : f32 to vector<8x128xf32>
    %152 = arith.addf %151, %150 : vector<8x128xf32>
    %153 = arith.divf %151, %152 : vector<8x128xf32>
    %154 = vector.extract_strided_slice %141 {offsets = [0, 256], sizes = [8, 128], strides = [1, 1]} : vector<8x512xf32> to vector<8x128xf32>
    %155 = math.tanh %154 : vector<8x128xf32>
    %156 = vector.extract_strided_slice %141 {offsets = [0, 384], sizes = [8, 128], strides = [1, 1]} : vector<8x512xf32> to vector<8x128xf32>
    %157 = arith.negf %156 : vector<8x128xf32>
    %158 = math.exp %157 : vector<8x128xf32>
    %cst_48 = arith.constant 1.000000e+00 : f32
    %159 = vector.broadcast %cst_48 : f32 to vector<8x128xf32>
    %160 = arith.addf %159, %158 : vector<8x128xf32>
    %161 = arith.divf %159, %160 : vector<8x128xf32>
    %162 = arith.mulf %153, %105 : vector<8x128xf32>
    %163 = arith.mulf %147, %155 : vector<8x128xf32>
    %164 = arith.addf %162, %163 : vector<8x128xf32>
    %165 = math.tanh %164 : vector<8x128xf32>
    %166 = arith.mulf %161, %165 : vector<8x128xf32>
    %167 = tpu.concatenate %166, %135 in 1 : vector<8x128xf32>, vector<8x128xf32> -> vector<8x256xf32>
    %cst_49 = arith.constant dense<0.000000e+00> : vector<8x512xf32>
    %168 = tpu.matmul %167, %12, %cst_49 {dimension_numbers = #tpu.dot_dimension_numbers<[1], [0], [0], [1], [0, 0, 1, 1], [], []>} : vector<8x256xf32>, vector<256x512xf32>, vector<8x512xf32> -> vector<8x512xf32>
    %169 = arith.addf %168, %13 : vector<8x512xf32>
    %170 = vector.extract_strided_slice %169 {offsets = [0, 0], sizes = [8, 128], strides = [1, 1]} : vector<8x512xf32> to vector<8x128xf32>
    %171 = arith.negf %170 : vector<8x128xf32>
    %172 = math.exp %171 : vector<8x128xf32>
    %cst_50 = arith.constant 1.000000e+00 : f32
    %173 = vector.broadcast %cst_50 : f32 to vector<8x128xf32>
    %174 = arith.addf %173, %172 : vector<8x128xf32>
    %175 = arith.divf %173, %174 : vector<8x128xf32>
    %176 = vector.extract_strided_slice %169 {offsets = [0, 128], sizes = [8, 128], strides = [1, 1]} : vector<8x512xf32> to vector<8x128xf32>
    %177 = arith.negf %176 : vector<8x128xf32>
    %178 = math.exp %177 : vector<8x128xf32>
    %cst_51 = arith.constant 1.000000e+00 : f32
    %179 = vector.broadcast %cst_51 : f32 to vector<8x128xf32>
    %180 = arith.addf %179, %178 : vector<8x128xf32>
    %181 = arith.divf %179, %180 : vector<8x128xf32>
    %182 = vector.extract_strided_slice %169 {offsets = [0, 256], sizes = [8, 128], strides = [1, 1]} : vector<8x512xf32> to vector<8x128xf32>
    %183 = math.tanh %182 : vector<8x128xf32>
    %184 = vector.extract_strided_slice %169 {offsets = [0, 384], sizes = [8, 128], strides = [1, 1]} : vector<8x512xf32> to vector<8x128xf32>
    %185 = arith.negf %184 : vector<8x128xf32>
    %186 = math.exp %185 : vector<8x128xf32>
    %cst_52 = arith.constant 1.000000e+00 : f32
    %187 = vector.broadcast %cst_52 : f32 to vector<8x128xf32>
    %188 = arith.addf %187, %186 : vector<8x128xf32>
    %189 = arith.divf %187, %188 : vector<8x128xf32>
    %190 = arith.mulf %181, %133 : vector<8x128xf32>
    %191 = arith.mulf %175, %183 : vector<8x128xf32>
    %192 = arith.addf %190, %191 : vector<8x128xf32>
    %193 = math.tanh %192 : vector<8x128xf32>
    %194 = arith.mulf %189, %193 : vector<8x128xf32>
    %c3_i32 = arith.constant 3 : i32
    %c8_i32_53 = arith.constant 8 : i32
    %195 = arith.muli %c3_i32, %c8_i32_53 : i32
    %196 = tpu.assume_multiple %195, 8 : i32
    %197 = arith.index_cast %196 : i32 to index
    %c0_54 = arith.constant 0 : index
    %198 = vector.load %arg11[%197, %c0_54] : memref<32x512xf32, #tpu.memory_space<vmem>>, vector<8x512xf32>
    %cst_55 = arith.constant dense<0.000000e+00> : vector<8x512xf32>
    %199 = tpu.matmul %166, %11, %cst_55 {dimension_numbers = #tpu.dot_dimension_numbers<[1], [0], [0], [1], [0, 0, 1, 1], [], []>} : vector<8x128xf32>, vector<128x512xf32>, vector<8x512xf32> -> vector<8x512xf32>
    %200 = arith.addf %198, %199 : vector<8x512xf32>
    %201 = vector.extract_strided_slice %200 {offsets = [0, 0], sizes = [8, 128], strides = [1, 1]} : vector<8x512xf32> to vector<8x128xf32>
    %202 = arith.negf %201 : vector<8x128xf32>
    %203 = math.exp %202 : vector<8x128xf32>
    %cst_56 = arith.constant 1.000000e+00 : f32
    %204 = vector.broadcast %cst_56 : f32 to vector<8x128xf32>
    %205 = arith.addf %204, %203 : vector<8x128xf32>
    %206 = arith.divf %204, %205 : vector<8x128xf32>
    %207 = vector.extract_strided_slice %200 {offsets = [0, 128], sizes = [8, 128], strides = [1, 1]} : vector<8x512xf32> to vector<8x128xf32>
    %208 = arith.negf %207 : vector<8x128xf32>
    %209 = math.exp %208 : vector<8x128xf32>
    %cst_57 = arith.constant 1.000000e+00 : f32
    %210 = vector.broadcast %cst_57 : f32 to vector<8x128xf32>
    %211 = arith.addf %210, %209 : vector<8x128xf32>
    %212 = arith.divf %210, %211 : vector<8x128xf32>
    %213 = vector.extract_strided_slice %200 {offsets = [0, 256], sizes = [8, 128], strides = [1, 1]} : vector<8x512xf32> to vector<8x128xf32>
    %214 = math.tanh %213 : vector<8x128xf32>
    %215 = vector.extract_strided_slice %200 {offsets = [0, 384], sizes = [8, 128], strides = [1, 1]} : vector<8x512xf32> to vector<8x128xf32>
    %216 = arith.negf %215 : vector<8x128xf32>
    %217 = math.exp %216 : vector<8x128xf32>
    %cst_58 = arith.constant 1.000000e+00 : f32
    %218 = vector.broadcast %cst_58 : f32 to vector<8x128xf32>
    %219 = arith.addf %218, %217 : vector<8x128xf32>
    %220 = arith.divf %218, %219 : vector<8x128xf32>
    %221 = arith.mulf %212, %164 : vector<8x128xf32>
    %222 = arith.mulf %206, %214 : vector<8x128xf32>
    %223 = arith.addf %221, %222 : vector<8x128xf32>
    %224 = math.tanh %223 : vector<8x128xf32>
    %225 = arith.mulf %220, %224 : vector<8x128xf32>
    %226 = tpu.concatenate %225, %194 in 1 : vector<8x128xf32>, vector<8x128xf32> -> vector<8x256xf32>
    %cst_59 = arith.constant dense<0.000000e+00> : vector<8x512xf32>
    %227 = tpu.matmul %226, %12, %cst_59 {dimension_numbers = #tpu.dot_dimension_numbers<[1], [0], [0], [1], [0, 0, 1, 1], [], []>} : vector<8x256xf32>, vector<256x512xf32>, vector<8x512xf32> -> vector<8x512xf32>
    %228 = arith.addf %227, %13 : vector<8x512xf32>
    %229 = vector.extract_strided_slice %228 {offsets = [0, 0], sizes = [8, 128], strides = [1, 1]} : vector<8x512xf32> to vector<8x128xf32>
    %230 = arith.negf %229 : vector<8x128xf32>
    %231 = math.exp %230 : vector<8x128xf32>
    %cst_60 = arith.constant 1.000000e+00 : f32
    %232 = vector.broadcast %cst_60 : f32 to vector<8x128xf32>
    %233 = arith.addf %232, %231 : vector<8x128xf32>
    %234 = arith.divf %232, %233 : vector<8x128xf32>
    %235 = vector.extract_strided_slice %228 {offsets = [0, 128], sizes = [8, 128], strides = [1, 1]} : vector<8x512xf32> to vector<8x128xf32>
    %236 = arith.negf %235 : vector<8x128xf32>
    %237 = math.exp %236 : vector<8x128xf32>
    %cst_61 = arith.constant 1.000000e+00 : f32
    %238 = vector.broadcast %cst_61 : f32 to vector<8x128xf32>
    %239 = arith.addf %238, %237 : vector<8x128xf32>
    %240 = arith.divf %238, %239 : vector<8x128xf32>
    %241 = vector.extract_strided_slice %228 {offsets = [0, 256], sizes = [8, 128], strides = [1, 1]} : vector<8x512xf32> to vector<8x128xf32>
    %242 = math.tanh %241 : vector<8x128xf32>
    %243 = vector.extract_strided_slice %228 {offsets = [0, 384], sizes = [8, 128], strides = [1, 1]} : vector<8x512xf32> to vector<8x128xf32>
    %244 = arith.negf %243 : vector<8x128xf32>
    %245 = math.exp %244 : vector<8x128xf32>
    %cst_62 = arith.constant 1.000000e+00 : f32
    %246 = vector.broadcast %cst_62 : f32 to vector<8x128xf32>
    %247 = arith.addf %246, %245 : vector<8x128xf32>
    %248 = arith.divf %246, %247 : vector<8x128xf32>
    %249 = arith.mulf %240, %192 : vector<8x128xf32>
    %250 = arith.mulf %234, %242 : vector<8x128xf32>
    %251 = arith.addf %249, %250 : vector<8x128xf32>
    %252 = math.tanh %251 : vector<8x128xf32>
    %253 = arith.mulf %248, %252 : vector<8x128xf32>
    %c4_i32 = arith.constant 4 : i32
    %c0_63 = arith.constant 0 : index
    %c0_64 = arith.constant 0 : index
    %254 = vector.load %arg12[%c0_63, %c0_64] : memref<8x128xf32, #tpu.memory_space<vmem>>, vector<8x128xf32>
    tpu.vector_store %arg12[%c0_63, %c0_64], %225 {strides = array<i32>} : memref<8x128xf32, #tpu.memory_space<vmem>>, vector<8x128xf32>,
    %c0_65 = arith.constant 0 : index
    %c0_66 = arith.constant 0 : index
    %255 = vector.load %arg13[%c0_65, %c0_66] : memref<8x128xf32, #tpu.memory_space<vmem>>, vector<8x128xf32>
    tpu.vector_store %arg13[%c0_65, %c0_66], %223 {strides = array<i32>} : memref<8x128xf32, #tpu.memory_space<vmem>>, vector<8x128xf32>,
    %c0_67 = arith.constant 0 : index
    %c0_68 = arith.constant 0 : index
    %256 = vector.load %arg14[%c0_67, %c0_68] : memref<8x128xf32, #tpu.memory_space<vmem>>, vector<8x128xf32>
    tpu.vector_store %arg14[%c0_67, %c0_68], %253 {strides = array<i32>} : memref<8x128xf32, #tpu.memory_space<vmem>>, vector<8x128xf32>,
    %c0_69 = arith.constant 0 : index
    %c0_70 = arith.constant 0 : index
    %257 = vector.load %arg15[%c0_69, %c0_70] : memref<8x128xf32, #tpu.memory_space<vmem>>, vector<8x128xf32>
    tpu.vector_store %arg15[%c0_69, %c0_70], %251 {strides = array<i32>} : memref<8x128xf32, #tpu.memory_space<vmem>>, vector<8x128xf32>,
    %c1_i32_71 = arith.constant 1 : i32
    %258 = arith.cmpi eq, %arg1, %c1_i32_71 : i32
    %259 = arith.extui %258 : i1 to i32
    %c0_i32_72 = arith.constant 0 : i32
    %260 = arith.cmpi ne, %259, %c0_i32_72 : i32
    scf.if %260 {
      %c0_73 = arith.constant 0 : index
      %c0_74 = arith.constant 0 : index
      %261 = vector.load %arg8[%c0_73, %c0_74] : memref<128x128xf32, #tpu.memory_space<vmem>>, vector<128x128xf32>
      %cst_75 = arith.constant dense<0.000000e+00> : vector<8x128xf32>
      %262 = tpu.matmul %253, %261, %cst_75 {dimension_numbers = #tpu.dot_dimension_numbers<[1], [0], [0], [1], [0, 0, 1, 1], [], []>} : vector<8x128xf32>, vector<128x128xf32>, vector<8x128xf32> -> vector<8x128xf32>
      %c0_76 = arith.constant 0 : index
      %c0_77 = arith.constant 0 : index
      %263 = vector.load %arg9[%c0_76, %c0_77] : memref<1x128xf32, #tpu.memory_space<vmem>>, vector<1x128xf32>
      %264 = vector.broadcast %263 : vector<1x128xf32> to vector<8x128xf32>
      %265 = arith.addf %262, %264 : vector<8x128xf32>
      %c0_78 = arith.constant 0 : index
      %c0_79 = arith.constant 0 : index
      %c0_80 = arith.constant 0 : index
      %266 = vector.load %arg10[%c0_78, %c0_79, %c0_80] : memref<1x8x128xf32, #tpu.memory_space<vmem>>, vector<1x8x128xf32>
      %267 = vector.shape_cast %266 : vector<1x8x128xf32> to vector<8x128xf32>
      %268 = vector.shape_cast %265 : vector<8x128xf32> to vector<1x8x128xf32>
      tpu.vector_store %arg10[%c0_78, %c0_79, %c0_80], %268 {strides = array<i32>} : memref<1x8x128xf32, #tpu.memory_space<vmem>>, vector<1x8x128xf32>,
    } else {
    }
    return
  }
  func.func @transform_0(%arg0: i32, %arg1: i32) -> (i32, i32, i32) {
    %c0_i32 = arith.constant 0 : i32
    %c0_i32_0 = arith.constant 0 : i32
    return %arg0, %arg1, %c0_i32 : i32, i32, i32
  }
  func.func @transform_1(%arg0: i32, %arg1: i32) -> (i32, i32) {
    %c0_i32 = arith.constant 0 : i32
    %c0_i32_0 = arith.constant 0 : i32
    %c0_i32_1 = arith.constant 0 : i32
    return %c0_i32, %c0_i32_0 : i32, i32
  }
  func.func @transform_2(%arg0: i32, %arg1: i32) -> (i32, i32) {
    %c0_i32 = arith.constant 0 : i32
    %c0_i32_0 = arith.constant 0 : i32
    %c0_i32_1 = arith.constant 0 : i32
    return %c0_i32, %c0_i32_0 : i32, i32
  }
  func.func @transform_3(%arg0: i32, %arg1: i32) -> (i32, i32) {
    %c0_i32 = arith.constant 0 : i32
    %c0_i32_0 = arith.constant 0 : i32
    %c0_i32_1 = arith.constant 0 : i32
    return %c0_i32, %c0_i32_0 : i32, i32
  }
  func.func @transform_4(%arg0: i32, %arg1: i32) -> (i32, i32) {
    %c0_i32 = arith.constant 0 : i32
    %c0_i32_0 = arith.constant 0 : i32
    %c0_i32_1 = arith.constant 0 : i32
    return %c0_i32, %c0_i32_0 : i32, i32
  }
  func.func @transform_5(%arg0: i32, %arg1: i32) -> (i32, i32) {
    %c0_i32 = arith.constant 0 : i32
    %c0_i32_0 = arith.constant 0 : i32
    %c0_i32_1 = arith.constant 0 : i32
    return %c0_i32, %c0_i32_0 : i32, i32
  }
  func.func @transform_6(%arg0: i32, %arg1: i32) -> (i32, i32) {
    %c0_i32 = arith.constant 0 : i32
    %c0_i32_0 = arith.constant 0 : i32
    %c0_i32_1 = arith.constant 0 : i32
    return %c0_i32, %c0_i32_0 : i32, i32
  }
  func.func @transform_7(%arg0: i32, %arg1: i32) -> (i32, i32) {
    %c0_i32 = arith.constant 0 : i32
    %c0_i32_0 = arith.constant 0 : i32
    %c0_i32_1 = arith.constant 0 : i32
    return %c0_i32, %c0_i32_0 : i32, i32
  }
  func.func @transform_8(%arg0: i32, %arg1: i32) -> (i32, i32, i32) {
    %c0_i32 = arith.constant 0 : i32
    %c0_i32_0 = arith.constant 0 : i32
    %c0_i32_1 = arith.constant 0 : i32
    return %arg0, %c0_i32, %c0_i32_0 : i32, i32, i32
  }
}

</mosaic_0001>

<bundles_post_ra>
// kernel: tpu_custom_call.1
= control target key start
LH: loop header
LB: loop body
LE: loop exit
PB: predicated region body
PF: predicated region fallthrough
CT: control target
= control target key end

     0   :  { %13 = vsyncpa [#allocation8], 0  ;;  %s4968_s0 = inlined_call_operand.vmem [shape: f32[1,64,4], index: 0, kind: input, shape index: {}]   ;;  %s4969_s1 = inlined_call_operand.vmem [shape: f32[4,512], index: 1, kind: input, shape index: {}]   ;;  %s4970_s2 = inlined_call_operand.hbm [shape: f32[128,512], index: 2, kind: input, shape index: {}]   ;;  %s4971_s3 = inlined_call_operand.vmem [shape: f32[1,512], index: 3, kind: input, shape index: {}]   ;;  %s4972_s4 = inlined_call_operand.hbm [shape: f32[256,512], index: 4, kind: input, shape index: {}]   ;;  %s4973_s5 = inlined_call_operand.vmem [shape: f32[8,512], index: 5, kind: input, shape index: {}]   ;;  %s4974_s6 = inlined_call_operand.hbm [shape: f32[128,128], index: 6, kind: input, shape index: {}]   ;;  %s4975_s7 = inlined_call_operand.vmem [shape: f32[1,128], index: 7, kind: input, shape index: {}]   ;;  %s4976_s8 = inlined_call_operand.hbm [shape: f32[1,8,128], index: 8, kind: output, shape index: {}]  }
   0x1   :  { %14 = vsyncpa [#allocation11], 0 }
   0x2   :  { %15 = vsyncpa [#allocation9], 0  ;;  %s3112_s27 = smov 0   ;;  %s3114_s28 = smov 0  }
   0x3   :  { %s3116_s29 = smov 0  }
   0x4 LB: > { %s2420_s30 = sadd.s32 4294967295, %s3056_s29   ;;  %p2421_p0 = scmp.ge.s32.totalorder %s3056_s29, 1  ;;  %s3056_s29 = sphi %s3116_s29, %s21_s29   ;;  %s3052_s28 = sphi %s3114_s28, %s5677_s28   ;;  %s3048_s27 = sphi %s3112_s27, %s5676_s27  }
   0x5   : > { %p239_p1 = scmp.lt.s32.totalorder %s3056_s29, 3  ;;  %p3132_p2 = scmp.eq.s32.totalorder %s2420_s30, 0 }
   0x6   : > { %s270_s12 = sshll.u32 %s4972_s4, 4  ;;  %s3058_s14 = smov [#allocation10]   ;;  %s271_s12 = int_to_ptr.hbm [resolvable:$true] %s270_s12 }
   0x7   : > { %p3139_p3 = pnand %p2421_p0, %p239_p1  ;;  %s272_s15 = sshll.u32 %s3058_s14, 4  ;;  %s273_s15 = int_to_ptr.vmem [resolvable:$true] %s272_s15 }
   0x8   : > { %s30_s17 = sadd.s32 1, %s3052_s28  ;;  %s3059_s18 = smov 512  }
   0x9   : > { %p2498_p4 = pneg %p3139_p3  ;;  %p31_p6 = scmp.ge.s32.totalorder %s30_s17, 2 }
   0xa   : > { %s3060_s19 = smov 32   ;;  %s253_s22 = sshll.u32 %s4970_s2, 4  ;;  %s254_s22 = int_to_ptr.hbm [resolvable:$true] %s253_s22 }
   0xb   : > { %p3147_p5 = pnand %p3132_p2, %p2498_p4  ;;  %s5679_s17 = smov (%p31_p6, %s30_s17), 0 }
   0xc   : > { %s3061_s23 = smov [#allocation7]   ;;  %s287_s10 = sshll.u32 %s4974_s6, 4  ;;  %s288_s10 = int_to_ptr.hbm [resolvable:$true] %s287_s10 }
   0xd   : > { %2504 = dma.hbm_to_vmem [thread:$0]  (!%p3147_p5), %s271_s12, 16384, %s273_s15, [#allocation11], %s3059_s18, %s3059_s18, %s3060_s19  }
   0xe   : > { %s255_s24 = sshll.u32 %s3061_s23, 4  ;;  %s3062_s11 = smov [#allocation12]   ;;  %s256_s24 = int_to_ptr.vmem [resolvable:$true] %s255_s24 }
   0xf   : > { %2501 = dma.hbm_to_vmem [thread:$0]  (!%p3147_p5), %s254_s22, 8192, %s256_s24, [#allocation8], %s3059_s18, %s3059_s18, %s3060_s19  }
  0x10   : > { %s289_s14 = sshll.u32 %s3062_s11, 4  ;;  %s3063_s12 = smov 128   ;;  %s290_s14 = int_to_ptr.vmem [resolvable:$true] %s289_s14 }
  0x11   : > { %s3064_s15 = smov 8   ;;  %321 = sbr.rel (%p3139_p3) target bundleno = 1215 (0x4bf), region = 52 }
  0x12   : > { %2507 = dma.hbm_to_vmem [thread:$0]  (!%p3147_p5), %s288_s10, 2048, %s290_s14, [#allocation11], %s3063_s12, %s3063_s12, %s3064_s15  }
  0x16   : > { %3035 = dma.done.wait (%p3132_p2), [#allocation8], 8192  }
  0x17   : > { %3037 = vsyncadd (%p3132_p2), [#allocation8], 4294959104 }
  0x18   : > { %3039 = dma.done.wait (%p3132_p2), [#allocation11], 18432  }
  0x19   : > { %3041 = vsyncadd (%p3132_p2), [#allocation11], 4294948864  ;;  %s2430_s18 = sshll.u32 %s3048_s27, 2  ;;  %p2432_p8 = scmp.ne.s32.totalorder %s3048_s27, 0 }
  0x1a   : > { %p368_p7 = scmp.lt.s32.totalorder %s2430_s18, 7 }
  0x1b   : > { %378 = sbr.rel (%p2432_p8) target bundleno = 37 (0x25), region = 68 }
  0x1c   : > { %s5681_s18 = smov (!%p368_p7, %s2430_s18), 7 }
  0x1d   : > { %s2431_s16 = sshll.u32 %s5681_s18, 3 }
  0x1e   : > { %s3180_s20 = scalar_lea.vmem %s4968_s0, %s2431_s16 }
  0x20   : > { %v3065_v0 = vmov 0.0  }
  0x21   : > { %379 = vst [vmem:[#allocation3] sm:$0xff] %v3065_v0 }
  0x22   : > { %380 = vst [vmem:[#allocation4] sm:$0xff] %v3065_v0 }
  0x23   : > { %381 = vst [vmem:[#allocation5] sm:$0xff] %v3065_v0 }
  0x24   : > { %382 = vst [vmem:[#allocation6] sm:$0xff] %v3065_v0 }
  0x25 PF: > { %v387_v1 = vld [vmem:[%s4969_s1] sm:$0xff]  ;;  %v388_v2 = vld [vmem:[%s4969_s1 + $0x8] sm:$0xff]  ;;  %vm421_vm0 = vcmask 1043456   ;;  %vm408_vm1 = vcmask 31744   ;;  %v3190_v9 = vld [vmem:[#allocation7 + $0x1e8] sm:$0xff]  ;;  %p2477_p9 = scmp.ne.s32.totalorder %s3048_s27, 1 }
  0x26   : > { %401 = vst [vmem:[#allocation1] ss:$2 sm:$0xff] %v387_v1  ;;  %v383_v3 = vld [vmem:[%s3180_s20] sm:$0xff]  ;;  %v622_v8 = vld [vmem:[#allocation7 + $0x1e0] sm:$0xff]  ;;  %v624_v10 = vld [vmem:[#allocation7 + $0x1f0] sm:$0xff] }
  0x27   : > { %403 = vst [vmem:[#allocation1 + $0x10] ss:$2 sm:$0xff] %v388_v2  ;;  %v3194_v11 = vld [vmem:[#allocation7 + $0x1f8] sm:$0xff]  ;;  %v618_v12 = vld [vmem:[#allocation7 + $0x1c0] sm:$0xff]  ;;  %v3198_v13 = vld [vmem:[#allocation7 + $0x1c8] sm:$0xff] }
  0x28   : > { %v620_v14 = vld [vmem:[#allocation7 + $0x1d0] sm:$0xff]  ;;  %v3201_v15 = vld [vmem:[#allocation7 + $0x1d8] sm:$0xff]  ;;  %v614_v16 = vld [vmem:[#allocation7 + $0x1a0] sm:$0xff] }
  0x29   : > { %v3204_v17 = vld [vmem:[#allocation7 + $0x1a8] sm:$0xff]  ;;  %v616_v18 = vld [vmem:[#allocation7 + $0x1b0] sm:$0xff]  ;;  %v3207_v19 = vld [vmem:[#allocation7 + $0x1b8] sm:$0xff] }
  0x2a   : > { %v610_v20 = vld [vmem:[#allocation7 + $0x180] sm:$0xff]  ;;  %v3210_v21 = vld [vmem:[#allocation7 + $0x188] sm:$0xff]  ;;  %v612_v22 = vld [vmem:[#allocation7 + $0x190] sm:$0xff] }
  0x2b   : > { %v3213_v23 = vld [vmem:[#allocation7 + $0x198] sm:$0xff]  ;;  %v384_v24 = vld [vmem:[%s3180_s20 + $0x8] sm:$0xff]  ;;  %v3219_v26 = vld [vmem:[#allocation7 + $0x168] sm:$0xff] }
  0x2c   : > { %v606_v25 = vld [vmem:[#allocation7 + $0x160] sm:$0xff]  ;;  %v608_v27 = vld [vmem:[#allocation7 + $0x170] sm:$0xff]  ;;  %v3223_v28 = vld [vmem:[#allocation7 + $0x178] sm:$0xff] }
  0x2d   : > { %v404_v4 = vld.sshfl [vmem:[#allocation1] sm:$0xff pattern:$0x75316420]  ;;  %v405_v5 = vld.sshfl [vmem:[#allocation1 + $0x8] sm:$0xff pattern:$0x75316420] }
  0x2e   : > { %2433 = vmatpush.msk.msra.mxu0 %vm421_vm0, %v404_v4  ;;  %2438 = vmatpush.msk.msra.mxu1 %vm421_vm0, %v405_v5  ;;  %v406_v6 = vld.sshfl [vmem:[#allocation1 + $0x10] sm:$0xff pattern:$0x75316420]  ;;  %v407_v7 = vld.sshfl [vmem:[#allocation1 + $0x18] sm:$0xff pattern:$0x75316420] }
  0x2f   : > { %2443 = vmatpush.msk.msra.mxu2 %vm421_vm0, %v406_v6  ;;  %2448 = vmatpush.msk.msra.mxu3 %vm421_vm0, %v407_v7  ;;  %v602_v29 = vld [vmem:[#allocation7 + $0x140] sm:$0xff]  ;;  %v3227_v30 = vld [vmem:[#allocation7 + $0x148] sm:$0xff]  ;;  %v604_v31 = vld [vmem:[#allocation7 + $0x150] sm:$0xff] }
  0x30   : > { %2434 = vmatmul.msk.f32.vlgmr.msra.gmra.mxu0 %vm408_vm1, %v383_v3  ;;  %2439 = vmatmul.msk.f32.vlgmr.msra.gmra.mxu1 %vm408_vm1, %v383_v3  ;;  %v3230_v32 = vld [vmem:[#allocation7 + $0x158] sm:$0xff]  ;;  %v598_v33 = vld [vmem:[#allocation7 + $0x120] sm:$0xff]  ;;  %v3233_v34 = vld [vmem:[#allocation7 + $0x128] sm:$0xff] }
  0x31   : > { %2444 = vmatmul.msk.f32.vlgmr.msra.gmra.mxu2 %vm408_vm1, %v383_v3  ;;  %2449 = vmatmul.msk.f32.vlgmr.msra.gmra.mxu3 %vm408_vm1, %v383_v3  ;;  %v600_v35 = vld [vmem:[#allocation7 + $0x130] sm:$0xff]  ;;  %v3236_v36 = vld [vmem:[#allocation7 + $0x138] sm:$0xff]  ;;  %v594_v37 = vld [vmem:[#allocation7 + $0x100] sm:$0xff] }
  0x32   : > { %769 = vmatpush.msrb.mxu0 %v622_v8  ;;  %789 = vmatpush.msrb.mxu1 %v3190_v9  ;;  %v3239_v38 = vld [vmem:[#allocation7 + $0x108] sm:$0xff]  ;;  %v596_v39 = vld [vmem:[#allocation7 + $0x110] sm:$0xff]  ;;  %v3242_v40 = vld [vmem:[#allocation7 + $0x118] sm:$0xff] }
  0x33   : > { %809 = vmatpush.msrb.mxu2 %v624_v10  ;;  %829 = vmatpush.msrb.mxu3 %v3194_v11  ;;  %v385_v41 = vld [vmem:[%s3180_s20 + $0x10] sm:$0xff]  ;;  %v590_v42 = vld [vmem:[#allocation7 + $0xe0] sm:$0xff]  ;;  %v592_v44 = vld [vmem:[#allocation7 + $0xf0] sm:$0xff] }
  0x34   : > { %770 = vmatpush.msrb.mxu0 %v618_v12  ;;  %790 = vmatpush.msrb.mxu1 %v3198_v13  ;;  %v3248_v43 = vld [vmem:[#allocation7 + $0xe8] sm:$0xff]  ;;  %v3252_v45 = vld [vmem:[#allocation7 + $0xf8] sm:$0xff]  ;;  %v586_v46 = vld [vmem:[#allocation7 + $0xc0] sm:$0xff] }
  0x35   : > { %810 = vmatpush.msrb.mxu2 %v620_v14  ;;  %830 = vmatpush.msrb.mxu3 %v3201_v15  ;;  %v3256_v47 = vld [vmem:[#allocation7 + $0xc8] sm:$0xff]  ;;  %v588_v48 = vld [vmem:[#allocation7 + $0xd0] sm:$0xff]  ;;  %v3259_v49 = vld [vmem:[#allocation7 + $0xd8] sm:$0xff] }
  0x36   : > { %771 = vmatpush.msrb.mxu0 %v614_v16  ;;  %791 = vmatpush.msrb.mxu1 %v3204_v17  ;;  %v582_v50 = vld [vmem:[#allocation7 + $0xa0] sm:$0xff]  ;;  %v3262_v51 = vld [vmem:[#allocation7 + $0xa8] sm:$0xff]  ;;  %v584_v52 = vld [vmem:[#allocation7 + $0xb0] sm:$0xff] }
  0x37   : > { %811 = vmatpush.msrb.mxu2 %v616_v18  ;;  %831 = vmatpush.msrb.mxu3 %v3207_v19  ;;  %v3265_v53 = vld [vmem:[#allocation7 + $0xb8] sm:$0xff]  ;;  %v578_v54 = vld [vmem:[#allocation7 + $0x80] sm:$0xff]  ;;  %v3268_v55 = vld [vmem:[#allocation7 + $0x88] sm:$0xff] }
  0x38   : > { %772 = vmatpush.msrb.mxu0 %v610_v20  ;;  %792 = vmatpush.msrb.mxu1 %v3210_v21  ;;  %v580_v56 = vld [vmem:[#allocation7 + $0x90] sm:$0xff]  ;;  %v3271_v57 = vld [vmem:[#allocation7 + $0x98] sm:$0xff]  ;;  %v574_v59 = vld [vmem:[#allocation7 + $0x60] sm:$0xff] }
  0x39   : > { %812 = vmatpush.msrb.mxu2 %v612_v22  ;;  %832 = vmatpush.msrb.mxu3 %v3213_v23  ;;  %v386_v58 = vld [vmem:[%s3180_s20 + $0x18] sm:$0xff]  ;;  %v3277_v60 = vld [vmem:[#allocation7 + $0x68] sm:$0xff]  ;;  %v3281_v62 = vld [vmem:[#allocation7 + $0x78] sm:$0xff] }
  0x3a   : > { %2435 = vmatmul.msk.f32.gmra.mxu0 %vm408_vm1, %v384_v24  ;;  %2440 = vmatmul.msk.f32.gmra.mxu1 %vm408_vm1, %v384_v24  ;;  %v576_v61 = vld [vmem:[#allocation7 + $0x70] sm:$0xff]  ;;  %v570_v63 = vld [vmem:[#allocation7 + $0x40] sm:$0xff]  ;;  %v3285_v0 = vld [vmem:[#allocation7 + $0x48] sm:$0xff] }
  0x3b   : > { %2445 = vmatmul.msk.f32.gmra.mxu2 %vm408_vm1, %v384_v24  ;;  %2450 = vmatmul.msk.f32.gmra.mxu3 %vm408_vm1, %v384_v24  ;;  %v572_v1 = vld [vmem:[#allocation7 + $0x50] sm:$0xff]  ;;  %v3288_v2 = vld [vmem:[#allocation7 + $0x58] sm:$0xff]  ;;  %v566_v3 = vld [vmem:[#allocation7 + $0x20] sm:$0xff] }
  0x3c   : > { %773 = vmatpush.msrb.mxu0 %v606_v25  ;;  %793 = vmatpush.msrb.mxu1 %v3219_v26  ;;  %v3291_v4 = vld [vmem:[#allocation7 + $0x28] sm:$0xff]  ;;  %v568_v5 = vld [vmem:[#allocation7 + $0x30] sm:$0xff]  ;;  %v3294_v6 = vld [vmem:[#allocation7 + $0x38] sm:$0xff] }
  0x3d   : > { %813 = vmatpush.msrb.mxu2 %v608_v27  ;;  %833 = vmatpush.msrb.mxu3 %v3223_v28  ;;  %v3297_v7 = vld [vmem:[#allocation7] sm:$0xff]  ;;  %v3299_v8 = vld [vmem:[#allocation7 + $0x8] sm:$0xff]  ;;  %v3302_v10 = vld [vmem:[#allocation7 + $0x10] sm:$0xff] }
  0x3e   : > { %774 = vmatpush.msrb.mxu0 %v602_v29  ;;  %794 = vmatpush.msrb.mxu1 %v3227_v30  ;;  %5200 = vst [vmem:[#allocation17_spill] sm:$0xff] %v3297_v7  ;;  %v3304_v12 = vld [vmem:[#allocation7 + $0x18] sm:$0xff]  ;;  %v758_v14 = vld [vmem:[#allocation3] sm:$0xff]  ;;  %v3313_v18 = vld [vmem:[#allocation10 + $0x3e8] sm:$0xff] }
  0x3f   : > { %814 = vmatpush.msrb.mxu2 %v604_v31  ;;  %834 = vmatpush.msrb.mxu3 %v3230_v32  ;;  %5201 = vst [vmem:[#allocation18_spill] sm:$0xff] %v3302_v10  ;;  %v3311_v16 = vld [vmem:[#allocation10 + $0x3e0] sm:$0xff]  ;;  %v3317_v22 = vld [vmem:[#allocation10 + $0x3c8] sm:$0xff] }
  0x40   : > { %775 = vmatpush.msrb.mxu0 %v598_v33  ;;  %795 = vmatpush.msrb.mxu1 %v3233_v34  ;;  %v3315_v20 = vld [vmem:[#allocation10 + $0x3c0] sm:$0xff]  ;;  %v3323_v25 = vld [vmem:[#allocation10 + $0x3a8] sm:$0xff] }
  0x41   : > { %815 = vmatpush.msrb.mxu2 %v600_v35  ;;  %835 = vmatpush.msrb.mxu3 %v3236_v36  ;;  %v3321_v24 = vld [vmem:[#allocation10 + $0x3a0] sm:$0xff]  ;;  %v3329_v29 = vld [vmem:[#allocation10 + $0x388] sm:$0xff] }
  0x42   : > { %776 = vmatpush.msrb.mxu0 %v594_v37  ;;  %796 = vmatpush.msrb.mxu1 %v3239_v38  ;;  %v3327_v27 = vld [vmem:[#allocation10 + $0x380] sm:$0xff]  ;;  %v3335_v33 = vld [vmem:[#allocation10 + $0x368] sm:$0xff] }
  0x43   : > { %816 = vmatpush.msrb.mxu2 %v596_v39  ;;  %836 = vmatpush.msrb.mxu3 %v3242_v40  ;;  %v3333_v31 = vld [vmem:[#allocation10 + $0x360] sm:$0xff]  ;;  %v3341_v37 = vld [vmem:[#allocation10 + $0x348] sm:$0xff] }
  0x44   : > { %2436 = vmatmul.msk.f32.gmra.mxu0 %vm408_vm1, %v385_v41  ;;  %2441 = vmatmul.msk.f32.gmra.mxu1 %vm408_vm1, %v385_v41  ;;  %v3339_v35 = vld [vmem:[#allocation10 + $0x340] sm:$0xff] }
  0x45   : > { %2446 = vmatmul.msk.f32.gmra.mxu2 %vm408_vm1, %v385_v41  ;;  %2451 = vmatmul.msk.f32.gmra.mxu3 %vm408_vm1, %v385_v41  ;;  %v3345_v39 = vld [vmem:[#allocation10 + $0x320] sm:$0xff]  ;;  %v3347_v41 = vld [vmem:[#allocation10 + $0x328] sm:$0xff] }
  0x46   : > { %777 = vmatpush.msrb.mxu0 %v590_v42  ;;  %797 = vmatpush.msrb.mxu1 %v3248_v43  ;;  %5202 = vst [vmem:[#allocation19_spill] sm:$0xff] %v3347_v41  ;;  %v3351_v42 = vld [vmem:[#allocation10 + $0x300] sm:$0xff] }
  0x47   : > { %817 = vmatpush.msrb.mxu2 %v592_v44  ;;  %837 = vmatpush.msrb.mxu3 %v3252_v45  ;;  %5203 = vst [vmem:[#allocation20_spill] sm:$0xff] %v3351_v42  ;;  %v3353_v44 = vld [vmem:[#allocation10 + $0x308] sm:$0xff] }
  0x48   : > { %778 = vmatpush.msrb.mxu0 %v586_v46  ;;  %798 = vmatpush.msrb.mxu1 %v3256_v47  ;;  %5204 = vst [vmem:[#allocation21_spill] sm:$0xff] %v3353_v44  ;;  %v3357_v46 = vld [vmem:[#allocation10 + $0x2e0] sm:$0xff] }
  0x49   : > { %818 = vmatpush.msrb.mxu2 %v588_v48  ;;  %838 = vmatpush.msrb.mxu3 %v3259_v49  ;;  %5205 = vst [vmem:[#allocation22_spill] sm:$0xff] %v3357_v46  ;;  %v3359_v48 = vld [vmem:[#allocation10 + $0x2e8] sm:$0xff] }
  0x4a   : > { %779 = vmatpush.msrb.mxu0 %v582_v50  ;;  %799 = vmatpush.msrb.mxu1 %v3262_v51  ;;  %5206 = vst [vmem:[#allocation23_spill] sm:$0xff] %v3359_v48  ;;  %v3365_v50 = vld [vmem:[#allocation10 + $0x2c0] sm:$0xff] }
  0x4b   : > { %819 = vmatpush.msrb.mxu2 %v584_v52  ;;  %839 = vmatpush.msrb.mxu3 %v3265_v53  ;;  %5207 = vst [vmem:[#allocation24_spill] sm:$0xff] %v3365_v50  ;;  %v3367_v52 = vld [vmem:[#allocation10 + $0x2c8] sm:$0xff] }
  0x4c   : > { %780 = vmatpush.msrb.mxu0 %v578_v54  ;;  %800 = vmatpush.msrb.mxu1 %v3268_v55  ;;  %5208 = vst [vmem:[#allocation25_spill] sm:$0xff] %v3367_v52  ;;  %v3369_v54 = vld [vmem:[#allocation10 + $0x2a0] sm:$0xff] }
  0x4d   : > { %820 = vmatpush.msrb.mxu2 %v580_v56  ;;  %840 = vmatpush.msrb.mxu3 %v3271_v57  ;;  %5209 = vst [vmem:[#allocation26_spill] sm:$0xff] %v3369_v54  ;;  %v3373_v56 = vld [vmem:[#allocation10 + $0x2a8] sm:$0xff] }
  0x4e   : > { %2437 = vmatmul.msk.f32.gmra.mxu0 %vm408_vm1, %v386_v58  ;;  %2442 = vmatmul.msk.f32.gmra.mxu1 %vm408_vm1, %v386_v58  ;;  %5210 = vst [vmem:[#allocation27_spill] sm:$0xff] %v3373_v56 }
  0x4f   : > { %2447 = vmatmul.msk.f32.gmra.mxu2 %vm408_vm1, %v386_v58  ;;  %2452 = vmatmul.msk.f32.gmra.mxu3 %vm408_vm1, %v386_v58  ;;  %v3375_v58 = vld [vmem:[#allocation10 + $0x280] sm:$0xff] }
  0x50   : > { %781 = vmatpush.msrb.mxu0 %v574_v59  ;;  %801 = vmatpush.msrb.mxu1 %v3277_v60  ;;  %5211 = vst [vmem:[#allocation28_spill] sm:$0xff] %v3375_v58  ;;  %v3377_v59 = vld [vmem:[#allocation10 + $0x288] sm:$0xff] }
  0x51   : > { %821 = vmatpush.msrb.mxu2 %v576_v61  ;;  %841 = vmatpush.msrb.mxu3 %v3281_v62  ;;  %5212 = vst [vmem:[#allocation29_spill] sm:$0xff] %v3377_v59  ;;  %v3383_v61 = vld [vmem:[#allocation10 + $0x260] sm:$0xff] }
  0x52   : > { %782 = vmatpush.msrb.mxu0 %v570_v63  ;;  %802 = vmatpush.msrb.mxu1 %v3285_v0  ;;  %5213 = vst [vmem:[#allocation30_spill] sm:$0xff] %v3383_v61  ;;  %v3385_v63 = vld [vmem:[#allocation10 + $0x268] sm:$0xff] }
  0x53   : > { %822 = vmatpush.msrb.mxu2 %v572_v1  ;;  %842 = vmatpush.msrb.mxu3 %v3288_v2  ;;  %5214 = vst [vmem:[#allocation31_spill] sm:$0xff] %v3385_v63  ;;  %v3389_v1 = vld [vmem:[#allocation10 + $0x240] sm:$0xff] }
  0x54   : > { %783 = vmatpush.msrb.mxu0 %v566_v3  ;;  %803 = vmatpush.msrb.mxu1 %v3291_v4  ;;  %5215 = vst [vmem:[#allocation32_spill] sm:$0xff] %v3389_v1  ;;  %v3391_v3 = vld [vmem:[#allocation10 + $0x248] sm:$0xff] }
  0x55   : > { %823 = vmatpush.msrb.mxu2 %v568_v5  ;;  %843 = vmatpush.msrb.mxu3 %v3294_v6  ;;  %5216 = vst [vmem:[#allocation33_spill] sm:$0xff] %v3391_v3  ;;  %v3393_v5 = vld [vmem:[#allocation10 + $0x220] sm:$0xff] }
  0x56   : > { %784 = vmatpush.msrb.mxu0 %v3297_v7  ;;  %804 = vmatpush.msrb.mxu1 %v3299_v8  ;;  %5217 = vst [vmem:[#allocation34_spill] sm:$0xff] %v3393_v5  ;;  %v3401_v7 = vld [vmem:[#allocation10 + $0x208] sm:$0xff] }
  0x57   : > { %824 = vmatpush.msrb.mxu2 %v3302_v10  ;;  %844 = vmatpush.msrb.mxu3 %v3304_v12  ;;  %v3399_v10 = vld [vmem:[#allocation10 + $0x200] sm:$0xff]  ;;  %5220 = vst [vmem:[#allocation37_spill] sm:$0xff] %v3401_v7 }
  0x58   : > { %785 = vmatmul.f32.vlgmr.msrb.gmra.mxu0 %v758_v14  ;;  %805 = vmatmul.f32.vlgmr.msrb.gmra.mxu1 %v758_v14  ;;  %5219 = vst [vmem:[#allocation36_spill] sm:$0xff] %v3399_v10 }
  0x59   : > { %825 = vmatmul.f32.vlgmr.msrb.gmra.mxu2 %v758_v14  ;;  %845 = vmatmul.f32.vlgmr.msrb.gmra.mxu3 %v758_v14  ;;  %v3397_v14 = vld [vmem:[#allocation10 + $0x228] sm:$0xff] }
  0x5a   : > { %936 = vmatpush.msra.mxu1 %v3311_v16  ;;  %976 = vmatpush.msra.mxu3 %v3313_v18  ;;  %5218 = vst [vmem:[#allocation35_spill] sm:$0xff] %v3397_v14 }
  0x5c   : > { %937 = vmatpush.msra.mxu1 %v3315_v20  ;;  %977 = vmatpush.msra.mxu3 %v3317_v22 }
  0x5e   : > { %938 = vmatpush.msra.mxu1 %v3321_v24  ;;  %978 = vmatpush.msra.mxu3 %v3323_v25 }
  0x60   : > { %939 = vmatpush.msra.mxu1 %v3327_v27  ;;  %979 = vmatpush.msra.mxu3 %v3329_v29 }
  0x62   : > { %940 = vmatpush.msra.mxu1 %v3333_v31  ;;  %980 = vmatpush.msra.mxu3 %v3335_v33 }
  0x64   : > { %941 = vmatpush.msra.mxu1 %v3339_v35  ;;  %981 = vmatpush.msra.mxu3 %v3341_v37 }
  0x66   : > { %942 = vmatpush.msra.mxu1 %v3345_v39  ;;  %982 = vmatpush.msra.mxu3 %v3347_v41  ;;  %v3610_v41 = vld [vmem:[#allocation10 + $0x230] sm:$0xff] }
  0x68   : > { %943 = vmatpush.msra.mxu1 %v3351_v42  ;;  %983 = vmatpush.msra.mxu3 %v3353_v44  ;;  %v3564_v42 = vld [vmem:[#allocation10 + $0x290] sm:$0xff] }
  0x69   : > { %5269 = vst [vmem:[#allocation86_spill] sm:$0xff] %v3564_v42 }
  0x6a   : > { %944 = vmatpush.msra.mxu1 %v3357_v46  ;;  %984 = vmatpush.msra.mxu3 %v3359_v48  ;;  %v3544_v48 = vld [vmem:[#allocation10 + $0xa8] sm:$0xff]  ;;  %v3546_v46 = vld [vmem:[#allocation10 + $0x2b0] sm:$0xff] }
  0x6b   : > { %5262 = vst [vmem:[#allocation79_spill] sm:$0xff] %v3544_v48 }
  0x6c   : > { %945 = vmatpush.msra.mxu1 %v3365_v50  ;;  %985 = vmatpush.msra.mxu3 %v3367_v52  ;;  %5263 = vst [vmem:[#allocation80_spill] sm:$0xff] %v3546_v46 }
  0x6e   : > { %946 = vmatpush.msra.mxu1 %v3369_v54  ;;  %986 = vmatpush.msra.mxu3 %v3373_v56  ;;  %v3491_v56 = vld [vmem:[#allocation10 + $0x100] sm:$0xff]  ;;  %v3499_v54 = vld [vmem:[#allocation10 + $0x318] sm:$0xff] }
  0x6f   : > { %5249 = vst [vmem:[#allocation66_spill] sm:$0xff] %v3491_v56 }
  0x70   : > { %947 = vmatpush.msra.mxu1 %v3375_v58  ;;  %987 = vmatpush.msra.mxu3 %v3377_v59  ;;  %v3439_v59 = vld [vmem:[#allocation10 + $0x180] sm:$0xff]  ;;  %v3447_v58 = vld [vmem:[#allocation10 + $0x398] sm:$0xff]  ;;  %5252 = vst [vmem:[#allocation69_spill] sm:$0xff] %v3499_v54 }
  0x71   : > { %5233 = vst [vmem:[#allocation50_spill] sm:$0xff] %v3439_v59 }
  0x72   : > { %948 = vmatpush.msra.mxu1 %v3383_v61  ;;  %988 = vmatpush.msra.mxu3 %v3385_v63  ;;  %v3407_v63 = vld [vmem:[#allocation10 + $0x1e0] sm:$0xff]  ;;  %v3409_v61 = vld [vmem:[#allocation10 + $0x1e8] sm:$0xff]  ;;  %5236 = vst [vmem:[#allocation53_spill] sm:$0xff] %v3447_v58 }
  0x73   : > { %5221 = vst [vmem:[#allocation38_spill] sm:$0xff] %v3407_v63  ;;  %916 = vmatpush.msra.mxu0 %v3407_v63  ;;  %956 = vmatpush.msra.mxu2 %v3409_v61  ;;  %v3429_v63 = vld [vmem:[#allocation10 + $0x1a0] sm:$0xff] }
  0x74   : > { %949 = vmatpush.msra.mxu1 %v3389_v1  ;;  %989 = vmatpush.msra.mxu3 %v3391_v3  ;;  %5222 = vst [vmem:[#allocation39_spill] sm:$0xff] %v3409_v61  ;;  %v3411_v1 = vld [vmem:[#allocation10 + $0x3f0] sm:$0xff]  ;;  %v3415_v3 = vld [vmem:[#allocation10 + $0x3f8] sm:$0xff]  ;;  %v3431_v61 = vld [vmem:[#allocation10 + $0x1a8] sm:$0xff] }
  0x75   : > { %5223 = vst [vmem:[#allocation40_spill] sm:$0xff] %v3411_v1 }
  0x76   : > { %950 = vmatpush.msra.mxu1 %v3393_v5  ;;  %990 = vmatpush.msra.mxu3 %v3397_v14  ;;  %5224 = vst [vmem:[#allocation41_spill] sm:$0xff] %v3415_v3  ;;  %v3419_v14 = vld [vmem:[#allocation10 + $0x1c0] sm:$0xff]  ;;  %v3427_v5 = vld [vmem:[#allocation10 + $0x3d8] sm:$0xff] }
  0x77   : > { %5225 = vst [vmem:[#allocation42_spill] sm:$0xff] %v3419_v14  ;;  %917 = vmatpush.msra.mxu0 %v3419_v14  ;;  %v3445_v14 = vld [vmem:[#allocation10 + $0x390] sm:$0xff] }
  0x78   : > { %951 = vmatpush.msra.mxu1 %v3399_v10  ;;  %991 = vmatpush.msra.mxu3 %v3401_v7  ;;  %v3421_v10 = vld [vmem:[#allocation10 + $0x1c8] sm:$0xff]  ;;  %v3423_v7 = vld [vmem:[#allocation10 + $0x3d0] sm:$0xff]  ;;  %5228 = vst [vmem:[#allocation45_spill] sm:$0xff] %v3427_v5 }
  0x79   : > { %5226 = vst [vmem:[#allocation43_spill] sm:$0xff] %v3421_v10  ;;  %957 = vmatpush.msra.mxu2 %v3421_v10  ;;  %918 = vmatpush.msra.mxu0 %v3429_v63  ;;  %v3443_v10 = vld [vmem:[#allocation10 + $0x188] sm:$0xff] }
  0x7a   : > { %1016 = vmatpush.msrb.mxu1 %v3411_v1  ;;  %1056 = vmatpush.msrb.mxu3 %v3415_v3  ;;  %5227 = vst [vmem:[#allocation44_spill] sm:$0xff] %v3423_v7  ;;  %v3435_v3 = vld [vmem:[#allocation10 + $0x3b0] sm:$0xff]  ;;  %v3437_v1 = vld [vmem:[#allocation10 + $0x3b8] sm:$0xff] }
  0x7b   : > { %5229 = vst [vmem:[#allocation46_spill] sm:$0xff] %v3429_v63  ;;  %958 = vmatpush.msra.mxu2 %v3431_v61  ;;  %919 = vmatpush.msra.mxu0 %v3439_v59  ;;  %v3455_v63 = vld [vmem:[#allocation10 + $0x160] sm:$0xff]  ;;  %v3469_v59 = vld [vmem:[#allocation10 + $0x148] sm:$0xff] }
  0x7c   : > { %5230 = vst [vmem:[#allocation47_spill] sm:$0xff] %v3431_v61  ;;  %1017 = vmatpush.msrb.mxu1 %v3423_v7  ;;  %1057 = vmatpush.msrb.mxu3 %v3427_v5  ;;  %v3457_v61 = vld [vmem:[#allocation10 + $0x168] sm:$0xff]  ;;  %v3459_v5 = vld [vmem:[#allocation10 + $0x370] sm:$0xff]  ;;  %v3489_v7 = vld [vmem:[#allocation10 + $0x338] sm:$0xff] }
  0x7d   : > { %5231 = vst [vmem:[#allocation48_spill] sm:$0xff] %v3435_v3  ;;  %959 = vmatpush.msra.mxu2 %v3443_v10  ;;  %920 = vmatpush.msra.mxu0 %v3455_v63 }
  0x7e   : > { %5232 = vst [vmem:[#allocation49_spill] sm:$0xff] %v3437_v1  ;;  %1018 = vmatpush.msrb.mxu1 %v3435_v3  ;;  %1058 = vmatpush.msrb.mxu3 %v3437_v1  ;;  %v3463_v3 = vld [vmem:[#allocation10 + $0x378] sm:$0xff] }
  0x7f   : > { %5234 = vst [vmem:[#allocation51_spill] sm:$0xff] %v3443_v10  ;;  %960 = vmatpush.msra.mxu2 %v3457_v61  ;;  %v3467_v10 = vld [vmem:[#allocation10 + $0x140] sm:$0xff] }
  0x80   : > { %5235 = vst [vmem:[#allocation52_spill] sm:$0xff] %v3445_v14  ;;  %1019 = vmatpush.msrb.mxu1 %v3445_v14  ;;  %1059 = vmatpush.msrb.mxu3 %v3447_v58  ;;  %v3471_v58 = vld [vmem:[#allocation10 + $0x350] sm:$0xff] }
  0x81   : > { %5237 = vst [vmem:[#allocation54_spill] sm:$0xff] %v3455_v63  ;;  %921 = vmatpush.msra.mxu0 %v3467_v10  ;;  %961 = vmatpush.msra.mxu2 %v3469_v59  ;;  %v3481_v63 = vld [vmem:[#allocation10 + $0x120] sm:$0xff] }
  0x82   : > { %5238 = vst [vmem:[#allocation55_spill] sm:$0xff] %v3457_v61  ;;  %1020 = vmatpush.msrb.mxu1 %v3459_v5  ;;  %1060 = vmatpush.msrb.mxu3 %v3463_v3  ;;  %v3479_v61 = vld [vmem:[#allocation10 + $0x358] sm:$0xff] }
  0x83   : > { %5239 = vst [vmem:[#allocation56_spill] sm:$0xff] %v3459_v5  ;;  %v3483_v5 = vld [vmem:[#allocation10 + $0x128] sm:$0xff]  ;;  %922 = vmatpush.msra.mxu0 %v3481_v63 }
  0x84   : > { %5240 = vst [vmem:[#allocation57_spill] sm:$0xff] %v3463_v3  ;;  %1021 = vmatpush.msrb.mxu1 %v3471_v58  ;;  %1061 = vmatpush.msrb.mxu3 %v3479_v61  ;;  %v3487_v3 = vld [vmem:[#allocation10 + $0x330] sm:$0xff] }
  0x85   : > { %5241 = vst [vmem:[#allocation58_spill] sm:$0xff] %v3467_v10  ;;  %962 = vmatpush.msra.mxu2 %v3483_v5  ;;  %v3497_v10 = vld [vmem:[#allocation10 + $0x310] sm:$0xff]  ;;  %923 = vmatpush.msra.mxu0 %v3491_v56  ;;  %v3526_v56 = vld [vmem:[#allocation10 + $0xc0] sm:$0xff] }
  0x86   : > { %5242 = vst [vmem:[#allocation59_spill] sm:$0xff] %v3469_v59  ;;  %v3495_v59 = vld [vmem:[#allocation10 + $0x108] sm:$0xff]  ;;  %1022 = vmatpush.msrb.mxu1 %v3487_v3  ;;  %1062 = vmatpush.msrb.mxu3 %v3489_v7 }
  0x87   : > { %5243 = vst [vmem:[#allocation60_spill] sm:$0xff] %v3471_v58  ;;  %963 = vmatpush.msra.mxu2 %v3495_v59  ;;  %v3514_v58 = vld [vmem:[#allocation10 + $0x2f0] sm:$0xff] }
  0x88   : > { %5244 = vst [vmem:[#allocation61_spill] sm:$0xff] %v3479_v61  ;;  %1023 = vmatpush.msrb.mxu1 %v3497_v10  ;;  %1063 = vmatpush.msrb.mxu3 %v3499_v54  ;;  %v3512_v61 = vld [vmem:[#allocation10 + $0xe8] sm:$0xff] }
  0x89   : > { %5245 = vst [vmem:[#allocation62_spill] sm:$0xff] %v3481_v63  ;;  %v389_v63 = vld [vmem:[%s4971_s3] sm:$0xf]  ;;  %964 = vmatpush.msra.mxu2 %v3512_v61  ;;  %v3528_v54 = vld [vmem:[#allocation10 + $0xc8] sm:$0xff] }
  0x8a   : > { %5246 = vst [vmem:[#allocation63_spill] sm:$0xff] %v3483_v5  ;;  %v3510_v5 = vld [vmem:[#allocation10 + $0xe0] sm:$0xff]  ;;  %1024 = vmatpush.msrb.mxu1 %v3514_v58  ;;  %v3532_v52 = vperm.slane %v389_v63, 0  ;;  %v3534_v50 = vperm.slane %v389_v63, 1 }
  0x8b   : > { %5247 = vst [vmem:[#allocation64_spill] sm:$0xff] %v3487_v3  ;;  %924 = vmatpush.msra.mxu0 %v3510_v5  ;;  %965 = vmatpush.msra.mxu2 %v3528_v54 }
  0x8c   : > { %5248 = vst [vmem:[#allocation65_spill] sm:$0xff] %v3489_v7 }
  0x8d   : > { %5250 = vst [vmem:[#allocation67_spill] sm:$0xff] %v3495_v59  ;;  %v3522_v59 = vld [vmem:[#allocation10 + $0x2f8] sm:$0xff]  ;;  %925 = vmatpush.msra.mxu0 %v3526_v56  ;;  %966 = vmatpush.msra.mxu2 %v3544_v48  ;;  %v3578_v48 = vperm.slane %v389_v63, 2 }
  0x8e   : > { %5251 = vst [vmem:[#allocation68_spill] sm:$0xff] %v3497_v10  ;;  %1064 = vmatpush.msrb.mxu3 %v3522_v59  ;;  %v3530_v10 = vld [vmem:[#allocation10 + $0x2d0] sm:$0xff] }
  0x8f   : > { %5253 = vst [vmem:[#allocation70_spill] sm:$0xff] %v3510_v5  ;;  %1025 = vmatpush.msrb.mxu1 %v3530_v10 }
  0x90   : > { %5254 = vst [vmem:[#allocation71_spill] sm:$0xff] %v3512_v61  ;;  %v3538_v61 = vld [vmem:[#allocation10 + $0x2d8] sm:$0xff] }
  0x91   : > { %5255 = vst [vmem:[#allocation72_spill] sm:$0xff] %v3514_v58  ;;  %1065 = vmatpush.msrb.mxu3 %v3538_v61  ;;  %1026 = vmatpush.msrb.mxu1 %v3546_v46  ;;  %v3592_v46 = vld [vmem:[#allocation10 + $0x250] sm:$0xff] }
  0x92   : > { %5256 = vst [vmem:[#allocation73_spill] sm:$0xff] %v3522_v59  ;;  %v3542_v59 = vld [vmem:[#allocation10 + $0xa0] sm:$0xff] }
  0x93   : > { %5257 = vst [vmem:[#allocation74_spill] sm:$0xff] %v3526_v56  ;;  %926 = vmatpush.msra.mxu0 %v3542_v59  ;;  %1027 = vmatpush.msrb.mxu1 %v3564_v42 }
  0x94   : > { %5258 = vst [vmem:[#allocation75_spill] sm:$0xff] %v3528_v54  ;;  %v3556_v54 = vld [vmem:[#allocation10 + $0x2b8] sm:$0xff] }
  0x95   : > { %5259 = vst [vmem:[#allocation76_spill] sm:$0xff] %v3530_v10  ;;  %1066 = vmatpush.msrb.mxu3 %v3556_v54  ;;  %v3562_v10 = vld [vmem:[#allocation10 + $0x88] sm:$0xff] }
  0x96   : > { %5260 = vst [vmem:[#allocation77_spill] sm:$0xff] %v3538_v61  ;;  %v3560_v61 = vld [vmem:[#allocation10 + $0x80] sm:$0xff]  ;;  %967 = vmatpush.msra.mxu2 %v3562_v10 }
  0x97   : > { %5261 = vst [vmem:[#allocation78_spill] sm:$0xff] %v3542_v59  ;;  %927 = vmatpush.msra.mxu0 %v3560_v61  ;;  %v3580_v59 = vperm.slane %v389_v63, 3 }
  0x98   : > { %5266 = vst [vmem:[#allocation83_spill] sm:$0xff] %v3556_v54  ;;  %v3590_v54 = vld [vmem:[#allocation10 + $0x48] sm:$0xff] }
  0x99   : > { %5267 = vst [vmem:[#allocation84_spill] sm:$0xff] %v3560_v61 }
  0x9a   : > { %5268 = vst [vmem:[#allocation85_spill] sm:$0xff] %v3562_v10  ;;  %v3584_v10 = vld [vmem:[#allocation10 + $0x278] sm:$0xff] }
  0x9b   : > { %5274 = vst [vmem:[#allocation91_spill] sm:$0xff] %v3584_v10 }
  0x9c   : > { %5276 = vst [vmem:[#allocation93_spill] sm:$0xff] %v3590_v54 }
  0x9d   : > { %5277 = vst [vmem:[#allocation94_spill] sm:$0xff] %v3592_v46 }
  0xad   : > { %v3473_v14 = vpop.f32.mrf.mxu0  ;;  %v3475_v1 = vpop.f32.mrf.mxu1 }
  0xb4   : > { %v3516_v3 = vpop.f32.mrf.mxu2  ;;  %v3518_v7 = vpop.f32.mrf.mxu3 }
  0xb7   : > { %v450_v5 = vpop.f32.mrf.mxu0  ;;  %v479_v58 = vpop.f32.mrf.mxu1 }
  0xb8   : > { %v3549_v44 = vadd.f32 %v450_v5, %v3532_v52  ;;  %v3552_v56 = vadd.f32 %v479_v58, %v3534_v50  ;;  %v3568_v58 = vld [vmem:[#allocation10 + $0x298] sm:$0xff]  ;;  %v3572_v5 = vld [vmem:[#allocation10 + $0x60] sm:$0xff] }
  0xb9   : > { %5270 = vst [vmem:[#allocation87_spill] sm:$0xff] %v3568_v58  ;;  %1067 = vmatpush.msrb.mxu3 %v3568_v58  ;;  %928 = vmatpush.msra.mxu0 %v3572_v5  ;;  %v3588_v58 = vld [vmem:[#allocation10 + $0x40] sm:$0xff] }
  0xba   : > { %5264 = vst [vmem:[#allocation81_spill] sm:$0xff] %v3549_v44  ;;  %v3574_v44 = vld [vmem:[#allocation10 + $0x68] sm:$0xff] }
  0xbb   : > { %5265 = vst [vmem:[#allocation82_spill] sm:$0xff] %v3552_v56  ;;  %v3576_v56 = vld [vmem:[#allocation10 + $0x270] sm:$0xff]  ;;  %968 = vmatpush.msra.mxu2 %v3574_v44  ;;  %1068 = vmatpush.msrb.mxu3 %v3584_v10  ;;  %v3606_v10 = vld [vmem:[#allocation10 + $0x20] sm:$0xff] }
  0xbc   : > { %5271 = vst [vmem:[#allocation88_spill] sm:$0xff] %v3572_v5  ;;  %1028 = vmatpush.msrb.mxu1 %v3576_v56  ;;  %929 = vmatpush.msra.mxu0 %v3588_v58 }
  0xbd   : > { %5272 = vst [vmem:[#allocation89_spill] sm:$0xff] %v3574_v44  ;;  %969 = vmatpush.msra.mxu2 %v3590_v54  ;;  %v3602_v44 = vld [vmem:[#allocation10 + $0x258] sm:$0xff] }
  0xbe   : > { %5273 = vst [vmem:[#allocation90_spill] sm:$0xff] %v3576_v56  ;;  %v508_v61 = vpop.f32.mrf.mxu2  ;;  %v537_v42 = vpop.f32.mrf.mxu3  ;;  %1029 = vmatpush.msrb.mxu1 %v3592_v46  ;;  %1069 = vmatpush.msrb.mxu3 %v3602_v44  ;;  %v3608_v56 = vld [vmem:[#allocation10 + $0x28] sm:$0xff]  ;;  %v3628_v46 = vld [vmem:[#allocation10 + $0x210] sm:$0xff] }
  0xbf   : > { %5275 = vst [vmem:[#allocation92_spill] sm:$0xff] %v3588_v58  ;;  %v3595_v63 = vadd.f32 %v508_v61, %v3578_v48  ;;  %v3598_v5 = vadd.f32 %v537_v42, %v3580_v59  ;;  %930 = vmatpush.msra.mxu0 %v3606_v10  ;;  %970 = vmatpush.msra.mxu2 %v3608_v56  ;;  %v3614_v42 = vld [vmem:[#allocation10 + $0x238] sm:$0xff]  ;;  %v3624_v58 = vld [vmem:[#allocation10] sm:$0xff] }
  0xc0   : > { %5280 = vst [vmem:[#allocation97_spill] sm:$0xff] %v3602_v44  ;;  %1030 = vmatpush.msrb.mxu1 %v3610_v41  ;;  %1070 = vmatpush.msrb.mxu3 %v3614_v42  ;;  %v3626_v44 = vld [vmem:[#allocation10 + $0x8] sm:$0xff] }
  0xc1   : > { %5278 = vst [vmem:[#allocation95_spill] sm:$0xff] %v3595_v63  ;;  %v453_v61 = vpop.f32.mrf.mxu0  ;;  %v482_v63 = vpop.f32.mrf.mxu1  ;;  %931 = vmatpush.msra.mxu0 %v3624_v58  ;;  %971 = vmatpush.msra.mxu2 %v3626_v44 }
  0xc2   : > { %5279 = vst [vmem:[#allocation96_spill] sm:$0xff] %v3598_v5  ;;  %v3617_v5 = vadd.f32 %v453_v61, %v3532_v52  ;;  %v3620_v54 = vadd.f32 %v482_v63, %v3534_v50  ;;  %v3634_v61 = vld [vmem:[#allocation5] sm:$0xff]  ;;  %1031 = vmatpush.msrb.mxu1 %v3628_v46 }
  0xc3   : > { %5281 = vst [vmem:[#allocation98_spill] sm:$0xff] %v3606_v10  ;;  %v3636_v63 = vld [vmem:[#allocation10 + $0x1f0] sm:$0xff]  ;;  %952 = vmatmul.f32.vlgmr.msra.gmra.mxu1 %v3634_v61  ;;  %992 = vmatmul.f32.vlgmr.msra.gmra.mxu3 %v3634_v61  ;;  %v3654_v10 = vld [vmem:[#allocation10 + $0x1b8] sm:$0xff] }
  0xc4   : > { %5282 = vst [vmem:[#allocation99_spill] sm:$0xff] %v3608_v56  ;;  %v3632_v56 = vld [vmem:[#allocation10 + $0x218] sm:$0xff]  ;;  %996 = vmatpush.msrb.mxu0 %v3636_v63  ;;  %1166 = vmatpush.msra.mxu1 %v3190_v9  ;;  %v3666_v9 = vld [vmem:[#allocation10 + $0x190] sm:$0xff] }
  0xc5   : > { %5283 = vst [vmem:[#allocation100_spill] sm:$0xff] %v3614_v42  ;;  %1071 = vmatpush.msrb.mxu3 %v3632_v56 }
  0xc6   : > { %5284 = vst [vmem:[#allocation101_spill] sm:$0xff] %v3617_v5  ;;  %v3640_v5 = vld [vmem:[#allocation10 + $0x1f8] sm:$0xff]  ;;  %1167 = vmatpush.msra.mxu1 %v3198_v13 }
  0xc7   : > { %5285 = vst [vmem:[#allocation102_spill] sm:$0xff] %v3620_v54  ;;  %v3644_v54 = vld [vmem:[#allocation10 + $0x1d0] sm:$0xff]  ;;  %1036 = vmatpush.msrb.mxu2 %v3640_v5  ;;  %1206 = vmatpush.msra.mxu3 %v3194_v11  ;;  %v3668_v11 = vld [vmem:[#allocation10 + $0x198] sm:$0xff] }
  0xc8   : > { %5286 = vst [vmem:[#allocation103_spill] sm:$0xff] %v3624_v58  ;;  %v3646_v58 = vld [vmem:[#allocation10 + $0x1d8] sm:$0xff]  ;;  %997 = vmatpush.msrb.mxu0 %v3644_v54  ;;  %1168 = vmatpush.msra.mxu1 %v3204_v17  ;;  %v3688_v17 = vld [vmem:[#allocation10 + $0x150] sm:$0xff] }
  0xc9   : > { %5287 = vst [vmem:[#allocation104_spill] sm:$0xff] %v3626_v44  ;;  %v3652_v44 = vld [vmem:[#allocation10 + $0x1b0] sm:$0xff]  ;;  %1037 = vmatpush.msrb.mxu2 %v3646_v58  ;;  %1207 = vmatpush.msra.mxu3 %v3201_v15 }
  0xca   : > { %5288 = vst [vmem:[#allocation105_spill] sm:$0xff] %v3628_v46  ;;  %v540_v46 = vpop.f32.mrf.mxu3  ;;  %998 = vmatpush.msrb.mxu0 %v3652_v44  ;;  %1169 = vmatpush.msra.mxu1 %v3210_v21  ;;  %v3704_v21 = vld [vmem:[#allocation10 + $0x110] sm:$0xff] }
  0xcb   : > { %5289 = vst [vmem:[#allocation106_spill] sm:$0xff] %v3632_v56  ;;  %v511_v56 = vpop.f32.mrf.mxu2  ;;  %1038 = vmatpush.msrb.mxu2 %v3654_v10  ;;  %1208 = vmatpush.msra.mxu3 %v3207_v19  ;;  %v3690_v19 = vld [vmem:[#allocation10 + $0x158] sm:$0xff] }
  0xcc   : > { %5290 = vst [vmem:[#allocation107_spill] sm:$0xff] %v3636_v63  ;;  %v3659_v42 = vadd.f32 %v511_v56, %v3578_v48  ;;  %v3662_v63 = vadd.f32 %v540_v46, %v3580_v59  ;;  %v3674_v46 = vld [vmem:[#allocation10 + $0x170] sm:$0xff]  ;;  %v3676_v56 = vld [vmem:[#allocation10 + $0x178] sm:$0xff]  ;;  %999 = vmatpush.msrb.mxu0 %v3666_v9  ;;  %1170 = vmatpush.msra.mxu1 %v3219_v26 }
  0xcd   : > { %5291 = vst [vmem:[#allocation108_spill] sm:$0xff] %v3644_v54  ;;  %v456_v54 = vpop.f32.mrf.mxu0  ;;  %1039 = vmatpush.msrb.mxu2 %v3668_v11  ;;  %1209 = vmatpush.msra.mxu3 %v3213_v23  ;;  %v3706_v23 = vld [vmem:[#allocation10 + $0x118] sm:$0xff] }
  0xce   : > { %5292 = vst [vmem:[#allocation109_spill] sm:$0xff] %v3646_v58  ;;  %v485_v58 = vpop.f32.mrf.mxu1  ;;  %v3679_v13 = vadd.f32 %v456_v54, %v3532_v52  ;;  %1000 = vmatpush.msrb.mxu0 %v3674_v46  ;;  %v3696_v54 = vld [vmem:[#allocation10 + $0x130] sm:$0xff]  ;;  %1171 = vmatpush.msra.mxu1 %v3227_v30 }
  0xcf   : > { %5293 = vst [vmem:[#allocation110_spill] sm:$0xff] %v3659_v42  ;;  %v3682_v15 = vadd.f32 %v485_v58, %v3534_v50  ;;  %1040 = vmatpush.msrb.mxu2 %v3676_v56  ;;  %1210 = vmatpush.msra.mxu3 %v3223_v28  ;;  %v3698_v58 = vld [vmem:[#allocation10 + $0x138] sm:$0xff]  ;;  %v3718_v30 = vld [vmem:[#allocation10 + $0xf0] sm:$0xff]  ;;  %v448_v42 = vadd.f32 %v3473_v14, %v3532_v52 }
  0xd0   : > { %5294 = vst [vmem:[#allocation111_spill] sm:$0xff] %v3662_v63  ;;  %1001 = vmatpush.msrb.mxu0 %v3688_v17  ;;  %1172 = vmatpush.msra.mxu1 %v3233_v34  ;;  %v477_v63 = vadd.f32 %v3475_v1, %v3534_v50  ;;  %v3730_v34 = vld [vmem:[#allocation10 + $0xd0] sm:$0xff]  ;;  %v3740_v52 = vld [vmem:[#allocation10 + $0xb8] sm:$0xff] }
  0xd1   : > { %5295 = vst [vmem:[#allocation112_spill] sm:$0xff] %v3679_v13  ;;  %1041 = vmatpush.msrb.mxu2 %v3690_v19  ;;  %1211 = vmatpush.msra.mxu3 %v3230_v32  ;;  %v3720_v32 = vld [vmem:[#allocation10 + $0xf8] sm:$0xff]  ;;  %v3738_v50 = vld [vmem:[#allocation10 + $0xb0] sm:$0xff] }
  0xd2   : > { %5296 = vst [vmem:[#allocation113_spill] sm:$0xff] %v3682_v15  ;;  %v543_v26 = vpop.f32.mrf.mxu3  ;;  %1002 = vmatpush.msrb.mxu0 %v3696_v54  ;;  %1173 = vmatpush.msra.mxu1 %v3239_v38  ;;  %v3746_v1 = vld [vmem:[#allocation10 + $0x90] sm:$0xff]  ;;  %v3748_v14 = vld [vmem:[#allocation10 + $0x98] sm:$0xff] }
  0xd3   : > { %v514_v13 = vpop.f32.mrf.mxu2  ;;  %1042 = vmatpush.msrb.mxu2 %v3698_v58  ;;  %v3714_v15 = vadd.f32 %v543_v26, %v3580_v59  ;;  %1212 = vmatpush.msra.mxu3 %v3236_v36  ;;  %v3732_v36 = vld [vmem:[#allocation10 + $0xd8] sm:$0xff] }
  0xd4   : > { %v3711_v28 = vadd.f32 %v514_v13, %v3578_v48  ;;  %1003 = vmatpush.msrb.mxu0 %v3704_v21  ;;  %1174 = vmatpush.msra.mxu1 %v3248_v43  ;;  %v535_v43 = vadd.f32 %v3518_v7, %v3580_v59 }
  0xd5   : > { %5298 = vst [vmem:[#allocation115_spill] sm:$0xff] %v3714_v15  ;;  %1043 = vmatpush.msrb.mxu2 %v3706_v23  ;;  %v786_v13 = vpop.f32.mrf.mxu0  ;;  %1213 = vmatpush.msra.mxu3 %v3242_v40 }
  0xd6   : > { %5297 = vst [vmem:[#allocation114_spill] sm:$0xff] %v3711_v28  ;;  %v806_v26 = vpop.f32.mrf.mxu1  ;;  %v849_v28 = vadd.f32 %v786_v13, %v448_v42  ;;  %1004 = vmatpush.msrb.mxu0 %v3718_v30  ;;  %1175 = vmatpush.msra.mxu1 %v3256_v47  ;;  %v3758_v47 = vld [vmem:[#allocation10 + $0x70] sm:$0xff] }
  0xd7   : > { %v850_v15 = vadd.f32 %v806_v26, %v477_v63  ;;  %1044 = vmatpush.msrb.mxu2 %v3720_v32  ;;  %1214 = vmatpush.msra.mxu3 %v3252_v45 }
  0xd8   : > { %v2453_v38 = vmul.f32 -1.442695, %v849_v28  ;;  %1005 = vmatpush.msrb.mxu0 %v3730_v34  ;;  %1176 = vmatpush.msra.mxu1 %v3262_v51  ;;  %v3766_v51 = vld [vmem:[#allocation10 + $0x50] sm:$0xff]  ;;  %v506_v28 = vadd.f32 %v3516_v3, %v3578_v48 }
  0xd9   : > { %v2454_v40 = vmul.f32 -1.442695, %v850_v15  ;;  %1045 = vmatpush.msrb.mxu2 %v3732_v36  ;;  %1215 = vmatpush.msra.mxu3 %v3259_v49  ;;  %v3760_v49 = vld [vmem:[#allocation10 + $0x78] sm:$0xff] }
  0xda   : > { %2549 = vpow2.f32 %v2453_v38  ;;  %1006 = vmatpush.msrb.mxu0 %v3738_v50  ;;  %1177 = vmatpush.msra.mxu1 %v3268_v55  ;;  %v3774_v55 = vld [vmem:[#allocation10 + $0x30] sm:$0xff] }
  0xdb   : > { %1046 = vmatpush.msrb.mxu2 %v3740_v52  ;;  %2551 = vpow2.f32 %v2454_v40  ;;  %1216 = vmatpush.msra.mxu3 %v3265_v53  ;;  %v3768_v53 = vld [vmem:[#allocation10 + $0x58] sm:$0xff] }
  0xdc   : > { %v846_v45 = vpop.f32.mrf.mxu3  ;;  %1007 = vmatpush.msrb.mxu0 %v3746_v1  ;;  %1032 = vmatmul.f32.vlgmr.msrb.gmra.mxu1 %v3634_v61 }
  0xdd   : > { %1047 = vmatpush.msrb.mxu2 %v3748_v14  ;;  %v852_v42 = vadd.f32 %v846_v45, %v535_v43  ;;  %1217 = vmatpush.msra.mxu3 %v3271_v57  ;;  %v3776_v57 = vld [vmem:[#allocation10 + $0x38] sm:$0xff] }
  0xde   : > { %1072 = vmatmul.f32.vlgmr.msrb.gmra.mxu3 %v3634_v61  ;;  %1008 = vmatpush.msrb.mxu0 %v3758_v47 }
  0xdf   : > { %v2455_v7 = vmul.f32 -1.442695, %v852_v42  ;;  %1048 = vmatpush.msrb.mxu2 %v3760_v49  ;;  %1178 = vmatpush.msra.mxu1 %v3277_v60  ;;  %v3786_v60 = vld [vmem:[#allocation10 + $0x10] sm:$0xff] }
  0xe0   : > { %v2550_v59 = vpop.eup %2549  ;;  %1218 = vmatpush.msra.mxu3 %v3281_v62  ;;  %1009 = vmatpush.msrb.mxu0 %v3766_v51  ;;  %v3788_v62 = vld [vmem:[#allocation10 + $0x18] sm:$0xff] }
  0xe1   : > { %v2552_v63 = vpop.eup %2551  ;;  %v3778_v61 = vadd.f32 1.0, %v2550_v59  ;;  %2553 = vpow2.f32 %v2455_v7  ;;  %1049 = vmatpush.msrb.mxu2 %v3768_v53  ;;  %1179 = vmatpush.msra.mxu1 %v3285_v0  ;;  %v826_v0 = vpop.f32.mrf.mxu2 }
  0xe2   : > { %v3782_v15 = vadd.f32 1.0, %v2552_v63  ;;  %1219 = vmatpush.msra.mxu3 %v3288_v2  ;;  %1010 = vmatpush.msrb.mxu0 %v3774_v55  ;;  %v851_v13 = vadd.f32 %v826_v0, %v506_v28  ;;  %v5300_v28 = vld [vmem:[#allocation20_spill] sm:$0xff] }
  0xe3   : > { %2555 = vrcp.f32 %v3778_v61  ;;  %1050 = vmatpush.msrb.mxu2 %v3776_v57  ;;  %1180 = vmatpush.msra.mxu1 %v3291_v4  ;;  %v868_v48 = vand.u32 2147483648, %v3778_v61  ;;  %v866_v3 = vand.u32 2147483647, %v3778_v61  ;;  %vm862_vm4 = vweird.f32 %v3778_v61 }
  0xe4   : > { %2557 = vrcp.f32 %v3782_v15  ;;  %1220 = vmatpush.msra.mxu3 %v3294_v6  ;;  %1011 = vmatpush.msrb.mxu0 %v3786_v60  ;;  %vm881_vm5 = vweird.f32 %v3782_v15 }
  0xe5   : > { %1051 = vmatpush.msrb.mxu2 %v3788_v62  ;;  %1181 = vmatpush.msra.mxu1 %v3299_v8  ;;  %vm867_vm8 = vcmp.eq.f32.partialorder %v866_v3, 8.507059e+37 }
  0xe6   : > { %1221 = vmatpush.msra.mxu3 %v3304_v12 }
  0xe7   : > { %v2554_v2 = vpop.eup %2553  ;;  %1313 = vmatpush.msrb.mxu1 %v3311_v16 }
  0xe8   : > { %1353 = vmatpush.msrb.mxu3 %v3313_v18  ;;  %v3804_v4 = vadd.f32 1.0, %v2554_v2 }
  0xe9   : > { %v2556_v6 = vpop.eup %2555  ;;  %1314 = vmatpush.msrb.mxu1 %v3315_v20  ;;  %v887_v20 = vand.u32 2147483648, %v3782_v15 }
  0xea   : > { %1354 = vmatpush.msrb.mxu3 %v3317_v22  ;;  %v2558_v26 = vpop.eup %2557  ;;  %v858_v8 = vmul.f32 %v2556_v6, %v3778_v61  ;;  %2559 = vrcp.f32 %v3804_v4  ;;  %vm863_vm2 = vweird.f32 %v2556_v6  ;;  %v5299_v61 = vld [vmem:[#allocation19_spill] sm:$0xff]  ;;  %vm901_vm11 = vweird.f32 %v3804_v4 }
  0xeb   : > { %v877_v12 = vmul.f32 %v2558_v26, %v3782_v15  ;;  %1315 = vmatpush.msrb.mxu1 %v3321_v24  ;;  %2561 = vtanh.f32 %v851_v13  ;;  %vm882_vm3 = vweird.f32 %v2558_v26  ;;  %v885_v24 = vand.u32 2147483647, %v3782_v15  ;;  %vm864_vm6 = vmor %vm862_vm4, %vm863_vm2 }
  0xec   : > { %1355 = vmatpush.msrb.mxu3 %v3323_v25  ;;  %v859_v16 = vsub.f32 1.0, %v858_v8  ;;  %vm883_vm7 = vmor %vm881_vm5, %vm882_vm3  ;;  %v888_v45 = vor.u32 1.1754944e-38, %v887_v20  ;;  %v5303_v8 = vld [vmem:[#allocation23_spill] sm:$0xff] }
  0xed   : > { %v878_v18 = vsub.f32 1.0, %v877_v12  ;;  %1316 = vmatpush.msrb.mxu1 %v3327_v27  ;;  %v869_v27 = vor.u32 1.1754944e-38, %v868_v48  ;;  %vm886_vm9 = vcmp.eq.f32.partialorder %v885_v24, 8.507059e+37  ;;  %v5304_v12 = vld [vmem:[#allocation24_spill] sm:$0xff]  ;;  %v5306_v48 = vld [vmem:[#allocation26_spill] sm:$0xff]  ;;  %v5307_v20 = vld [vmem:[#allocation27_spill] sm:$0xff] }
  0xee   : > { %1356 = vmatpush.msrb.mxu3 %v3329_v29  ;;  %v860_v22 = vmul.f32 %v2556_v6, %v859_v16  ;;  %v5305_v16 = vld [vmem:[#allocation25_spill] sm:$0xff] }
  0xef   : > { %v879_v38 = vmul.f32 %v2558_v26, %v878_v18  ;;  %1317 = vmatpush.msrb.mxu1 %v3333_v31  ;;  %v759_v31 = vld [vmem:[#allocation4] sm:$0xff]  ;;  %v905_v18 = vand.u32 2147483647, %v3804_v4 }
  0xf0   : > { %1357 = vmatpush.msrb.mxu3 %v3335_v33  ;;  %v2560_v25 = vpop.eup %2559  ;;  %v861_v40 = vadd.f32 %v2556_v6, %v860_v22  ;;  %v5309_v24 = vld [vmem:[#allocation29_spill] sm:$0xff] }
  0xf1   : > { %v880_v29 = vadd.f32 %v2558_v26, %v879_v38  ;;  %v897_v43 = vmul.f32 %v2560_v25, %v3804_v4  ;;  %1318 = vmatpush.msrb.mxu1 %v3339_v35  ;;  %v2562_v33 = vpop.eup %2561  ;;  %vm902_vm10 = vweird.f32 %v2560_v25  ;;  %v5308_v38 = vld [vmem:[#allocation28_spill] sm:$0xff]  ;;  %vm906_vm13 = vcmp.eq.f32.partialorder %v905_v18, 8.507059e+37  ;;  %v5321_v18 = vld [vmem:[#allocation45_spill] sm:$0xff] }
  0xf2   : > { %1358 = vmatpush.msrb.mxu3 %v3341_v37  ;;  %v865_v42 = vsel %vm864_vm6, %v2556_v6, %v861_v40  ;;  %v5301_v37 = vld [vmem:[#allocation21_spill] sm:$0xff]  ;;  %v5302_v6 = vld [vmem:[#allocation22_spill] sm:$0xff]  ;;  %vm903_vm12 = vmor %vm901_vm11, %vm902_vm10 }
  0xf3   : > { %v870_v7 = vsel %vm867_vm8, %v869_v27, %v865_v42  ;;  %v884_v59 = vsel %vm883_vm7, %v2558_v26, %v880_v29  ;;  %v898_v63 = vsub.f32 1.0, %v897_v43  ;;  %1319 = vmatpush.msrb.mxu1 %v3345_v39  ;;  %v907_v39 = vand.u32 2147483648, %v3804_v4  ;;  %v5310_v29 = vld [vmem:[#allocation30_spill] sm:$0xff]  ;;  %v5311_v43 = vld [vmem:[#allocation31_spill] sm:$0xff]  ;;  %v5312_v4 = vld [vmem:[#allocation32_spill] sm:$0xff] }
  0xf4   : > { %1359 = vmatpush.msrb.mxu3 %v5299_v61  ;;  %v889_v15 = vsel %vm886_vm9, %v888_v45, %v884_v59  ;;  %v912_v0 = vmul.f32 %v2562_v33, %v870_v7  ;;  %v3856_v42 = vld [vmem:[#allocation7 + $0x1f0] sm:$0xff]  ;;  %v3860_v33 = vld [vmem:[#allocation7 + $0x1c0] sm:$0xff] }
  0xf5   : > { %v911_v2 = vmul.f32 %v889_v15, %v759_v31  ;;  %v899_v35 = vmul.f32 %v2560_v25, %v898_v63  ;;  %1320 = vmatpush.msrb.mxu1 %v5300_v28  ;;  %v908_v3 = vor.u32 1.1754944e-38, %v907_v39  ;;  %v5313_v31 = vld [vmem:[#allocation33_spill] sm:$0xff]  ;;  %v5314_v7 = vld [vmem:[#allocation34_spill] sm:$0xff]  ;;  %v5315_v63 = vld [vmem:[#allocation35_spill] sm:$0xff] }
  0xf6   : > { %1360 = vmatpush.msrb.mxu3 %v5301_v37  ;;  %v3864_v59 = vld [vmem:[#allocation7 + $0x1d0] sm:$0xff]  ;;  %v3868_v61 = vld [vmem:[#allocation7 + $0x1a0] sm:$0xff] }
  0xf7   : > { %v3830_v13 = vadd.f32 %v912_v0, %v911_v2  ;;  %1321 = vmatpush.msrb.mxu1 %v5302_v6  ;;  %v900_v26 = vadd.f32 %v2560_v25, %v899_v35  ;;  %v5316_v15 = vld [vmem:[#allocation36_spill] sm:$0xff]  ;;  %v3872_v0 = vld [vmem:[#allocation7 + $0x1b0] sm:$0xff]  ;;  %v5317_v2 = vld [vmem:[#allocation37_spill] sm:$0xff] }
  0xf8   : > { %1361 = vmatpush.msrb.mxu3 %v5303_v8  ;;  %v3876_v35 = vld [vmem:[#allocation7 + $0x180] sm:$0xff]  ;;  %v3880_v37 = vld [vmem:[#allocation7 + $0x190] sm:$0xff] }
  0xf9   : > { %2563 = vtanh.f32 %v3830_v13  ;;  %1322 = vmatpush.msrb.mxu1 %v5304_v12  ;;  %v904_v22 = vsel %vm903_vm12, %v2560_v25, %v900_v26  ;;  %v3852_v25 = vld [vmem:[#allocation7 + $0x1e0] sm:$0xff]  ;;  %v3888_v8 = vld [vmem:[#allocation7 + $0x170] sm:$0xff]  ;;  %v5319_v26 = vld [vmem:[#allocation41_spill] sm:$0xff] }
  0xfa   : > { %1362 = vmatpush.msrb.mxu3 %v5305_v16  ;;  %v909_v27 = vsel %vm906_vm13, %v908_v3, %v904_v22  ;;  %v5318_v28 = vld [vmem:[#allocation40_spill] sm:$0xff]  ;;  %v3896_v16 = vld [vmem:[#allocation7 + $0x150] sm:$0xff]  ;;  %v5323_v3 = vld [vmem:[#allocation49_spill] sm:$0xff] }
  0xfb   : > { %1323 = vmatpush.msrb.mxu1 %v5306_v48  ;;  %v3885_v6 = vld [vmem:[#allocation7 + $0x160] sm:$0xff]  ;;  %v3904_v22 = vld [vmem:[#allocation7 + $0x130] sm:$0xff] }
  0xfc   : > { %1363 = vmatpush.msrb.mxu3 %v5307_v20  ;;  %v3892_v39 = vld [vmem:[#allocation7 + $0x140] sm:$0xff] }
  0xfd   : > { %1324 = vmatpush.msrb.mxu1 %v5308_v38  ;;  %v5320_v12 = vld [vmem:[#allocation44_spill] sm:$0xff] }
  0xfe   : > { %1364 = vmatpush.msrb.mxu3 %v5309_v24  ;;  %v3900_v48 = vld [vmem:[#allocation7 + $0x120] sm:$0xff] }
  0xff   : > { %v2564_v40 = vpop.eup %2563  ;;  %1325 = vmatpush.msrb.mxu1 %v5310_v29  ;;  %v5322_v20 = vld [vmem:[#allocation48_spill] sm:$0xff] }
 0x100   : > { %1365 = vmatpush.msrb.mxu3 %v5311_v43  ;;  %v3846_v45 = vmul.f32 %v2564_v40, %v909_v27  ;;  %v3908_v38 = vld [vmem:[#allocation7 + $0x100] sm:$0xff]  ;;  %v3912_v40 = vld [vmem:[#allocation7 + $0x110] sm:$0xff]  ;;  %v5325_v27 = vld [vmem:[#allocation53_spill] sm:$0xff] }
 0x101   : > { %1326 = vmatpush.msrb.mxu1 %v5312_v4  ;;  %v5324_v24 = vld [vmem:[#allocation52_spill] sm:$0xff]  ;;  %v3920_v4 = vld [vmem:[#allocation7 + $0xf0] sm:$0xff] }
 0x102   : > { %1366 = vmatpush.msrb.mxu3 %v5313_v31  ;;  %932 = vmatmul.f32.vlgmr.msra.gmra.mxu0 %v3846_v45  ;;  %v3916_v29 = vld [vmem:[#allocation7 + $0xe0] sm:$0xff]  ;;  %v5327_v31 = vld [vmem:[#allocation57_spill] sm:$0xff] }
 0x103   : > { %972 = vmatmul.f32.vlgmr.msra.gmra.mxu2 %v3846_v45  ;;  %1146 = vmatpush.msra.mxu0 %v3852_v25  ;;  %v5326_v43 = vld [vmem:[#allocation56_spill] sm:$0xff] }
 0x104   : > { %1182 = vmatmul.f32.vlgmr.msra.gmra.mxu1 %v3846_v45  ;;  %1186 = vmatpush.msra.mxu2 %v3856_v42 }
 0x105   : > { %1222 = vmatmul.f32.vlgmr.msra.gmra.mxu3 %v3846_v45  ;;  %1147 = vmatpush.msra.mxu0 %v3860_v33 }
 0x106   : > { %1327 = vmatpush.msrb.mxu1 %v5314_v7  ;;  %1187 = vmatpush.msra.mxu2 %v3864_v59  ;;  %v3924_v7 = vld [vmem:[#allocation7 + $0xc0] sm:$0xff] }
 0x107   : > { %1367 = vmatpush.msrb.mxu3 %v5315_v63  ;;  %1148 = vmatpush.msra.mxu0 %v3868_v61  ;;  %v5328_v63 = vld [vmem:[#allocation60_spill] sm:$0xff] }
 0x108   : > { %1328 = vmatpush.msrb.mxu1 %v5316_v15  ;;  %1188 = vmatpush.msra.mxu2 %v3872_v0  ;;  %v3928_v15 = vld [vmem:[#allocation7 + $0xd0] sm:$0xff] }
 0x109   : > { %1368 = vmatpush.msrb.mxu3 %v5317_v2  ;;  %1149 = vmatpush.msra.mxu0 %v3876_v35  ;;  %v5329_v2 = vld [vmem:[#allocation61_spill] sm:$0xff] }
 0x10a   : > { %1393 = vmatpush.msra.mxu1 %v5318_v28  ;;  %1189 = vmatpush.msra.mxu2 %v3880_v37  ;;  %v3932_v28 = vld [vmem:[#allocation7 + $0xa0] sm:$0xff] }
 0x10b   : > { %1012 = vmatmul.f32.vlgmr.msrb.gmra.mxu0 %v3846_v45  ;;  %1052 = vmatmul.f32.vlgmr.msrb.gmra.mxu2 %v3846_v45 }
 0x10c   : > { %1150 = vmatpush.msra.mxu0 %v3885_v6  ;;  %1190 = vmatpush.msra.mxu2 %v3888_v8 }
 0x10d   : > { %1433 = vmatpush.msra.mxu3 %v5319_v26  ;;  %1394 = vmatpush.msra.mxu1 %v5320_v12  ;;  %v5330_v26 = vld [vmem:[#allocation64_spill] sm:$0xff]  ;;  %v3936_v12 = vld [vmem:[#allocation7 + $0xb0] sm:$0xff] }
 0x10e   : > { %1151 = vmatpush.msra.mxu0 %v3892_v39  ;;  %1191 = vmatpush.msra.mxu2 %v3896_v16 }
 0x10f   : > { %1434 = vmatpush.msra.mxu3 %v5321_v18  ;;  %1395 = vmatpush.msra.mxu1 %v5322_v20  ;;  %v5331_v18 = vld [vmem:[#allocation65_spill] sm:$0xff]  ;;  %v3940_v20 = vld [vmem:[#allocation7 + $0x80] sm:$0xff] }
 0x110   : > { %1152 = vmatpush.msra.mxu0 %v3900_v48  ;;  %1192 = vmatpush.msra.mxu2 %v3904_v22  ;;  %5332 = vst [vmem:[#allocation19_spill] sm:$0xff] %v3940_v20 }
 0x111   : > { %1435 = vmatpush.msra.mxu3 %v5323_v3  ;;  %1396 = vmatpush.msra.mxu1 %v5324_v24  ;;  %v5333_v3 = vld [vmem:[#allocation68_spill] sm:$0xff]  ;;  %v3944_v24 = vld [vmem:[#allocation7 + $0x90] sm:$0xff] }
 0x112   : > { %1153 = vmatpush.msra.mxu0 %v3908_v38  ;;  %1193 = vmatpush.msra.mxu2 %v3912_v40  ;;  %5334 = vst [vmem:[#allocation20_spill] sm:$0xff] %v3944_v24 }
 0x113   : > { %1436 = vmatpush.msra.mxu3 %v5325_v27  ;;  %1397 = vmatpush.msra.mxu1 %v5326_v43  ;;  %v5335_v27 = vld [vmem:[#allocation69_spill] sm:$0xff]  ;;  %v3948_v43 = vld [vmem:[#allocation7 + $0x60] sm:$0xff] }
 0x114   : > { %1154 = vmatpush.msra.mxu0 %v3916_v29  ;;  %1194 = vmatpush.msra.mxu2 %v3920_v4  ;;  %5336 = vst [vmem:[#allocation21_spill] sm:$0xff] %v3948_v43 }
 0x115   : > { %1437 = vmatpush.msra.mxu3 %v5327_v31  ;;  %1398 = vmatpush.msra.mxu1 %v5328_v63  ;;  %v5337_v31 = vld [vmem:[#allocation72_spill] sm:$0xff]  ;;  %v3952_v63 = vld [vmem:[#allocation7 + $0x70] sm:$0xff] }
 0x116   : > { %1155 = vmatpush.msra.mxu0 %v3924_v7  ;;  %1195 = vmatpush.msra.mxu2 %v3928_v15  ;;  %5338 = vst [vmem:[#allocation22_spill] sm:$0xff] %v3952_v63 }
 0x117   : > { %1438 = vmatpush.msra.mxu3 %v5329_v2  ;;  %1399 = vmatpush.msra.mxu1 %v5330_v26  ;;  %v5339_v2 = vld [vmem:[#allocation73_spill] sm:$0xff]  ;;  %v3956_v26 = vld [vmem:[#allocation7 + $0x40] sm:$0xff] }
 0x118   : > { %1156 = vmatpush.msra.mxu0 %v3932_v28  ;;  %1196 = vmatpush.msra.mxu2 %v3936_v12  ;;  %5340 = vst [vmem:[#allocation23_spill] sm:$0xff] %v3956_v26 }
 0x119   : > { %1439 = vmatpush.msra.mxu3 %v5331_v18  ;;  %1400 = vmatpush.msra.mxu1 %v5333_v3  ;;  %v5341_v18 = vld [vmem:[#allocation76_spill] sm:$0xff]  ;;  %v3960_v3 = vld [vmem:[#allocation7 + $0x50] sm:$0xff] }
 0x11a   : > { %1157 = vmatpush.msra.mxu0 %v3940_v20  ;;  %1197 = vmatpush.msra.mxu2 %v3944_v24  ;;  %5342 = vst [vmem:[#allocation24_spill] sm:$0xff] %v3960_v3  ;;  %v5350_v24 = vld [vmem:[#allocation18_spill] sm:$0xff]  ;;  %v5360_v20 = vld [vmem:[#allocation47_spill] sm:$0xff] }
 0x11b   : > { %1440 = vmatpush.msra.mxu3 %v5335_v27  ;;  %1401 = vmatpush.msra.mxu1 %v5337_v31  ;;  %v5343_v27 = vld [vmem:[#allocation77_spill] sm:$0xff]  ;;  %v5345_v31 = vld [vmem:[#allocation80_spill] sm:$0xff] }
 0x11c   : > { %1158 = vmatpush.msra.mxu0 %v3948_v43  ;;  %1198 = vmatpush.msra.mxu2 %v3952_v63  ;;  %v3964_v43 = vld [vmem:[#allocation7 + $0x20] sm:$0xff]  ;;  %v3968_v63 = vld [vmem:[#allocation7 + $0x30] sm:$0xff] }
 0x11d   : > { %1441 = vmatpush.msra.mxu3 %v5339_v2  ;;  %1402 = vmatpush.msra.mxu1 %v5341_v18  ;;  %5344 = vst [vmem:[#allocation25_spill] sm:$0xff] %v3964_v43  ;;  %v5347_v2 = vld [vmem:[#allocation83_spill] sm:$0xff]  ;;  %v5349_v18 = vld [vmem:[#allocation86_spill] sm:$0xff] }
 0x11e   : > { %1159 = vmatpush.msra.mxu0 %v3956_v26  ;;  %1199 = vmatpush.msra.mxu2 %v3960_v3  ;;  %5346 = vst [vmem:[#allocation26_spill] sm:$0xff] %v3968_v63  ;;  %v5348_v26 = vld [vmem:[#allocation17_spill] sm:$0xff]  ;;  %v5354_v3 = vld [vmem:[#allocation42_spill] sm:$0xff] }
 0x11f   : > { %1442 = vmatpush.msra.mxu3 %v5343_v27  ;;  %1403 = vmatpush.msra.mxu1 %v5345_v31  ;;  %v5351_v27 = vld [vmem:[#allocation38_spill] sm:$0xff]  ;;  %v5353_v31 = vld [vmem:[#allocation87_spill] sm:$0xff] }
 0x120   : > { %1160 = vmatpush.msra.mxu0 %v3964_v43  ;;  %1200 = vmatpush.msra.mxu2 %v3968_v63  ;;  %v5352_v43 = vld [vmem:[#allocation39_spill] sm:$0xff]  ;;  %v5355_v63 = vld [vmem:[#allocation90_spill] sm:$0xff] }
 0x121   : > { %1443 = vmatpush.msra.mxu3 %v5347_v2  ;;  %1404 = vmatpush.msra.mxu1 %v5349_v18  ;;  %v5356_v2 = vld [vmem:[#allocation43_spill] sm:$0xff]  ;;  %v5358_v18 = vld [vmem:[#allocation46_spill] sm:$0xff] }
 0x122   : > { %1161 = vmatpush.msra.mxu0 %v5348_v26  ;;  %1201 = vmatpush.msra.mxu2 %v5350_v24  ;;  %v5357_v26 = vld [vmem:[#allocation91_spill] sm:$0xff]  ;;  %v5359_v24 = vld [vmem:[#allocation94_spill] sm:$0xff] }
 0x123   : > { %1162 = vmatmul.f32.vlgmr.msra.gmra.mxu0 %v3846_v45  ;;  %1202 = vmatmul.f32.vlgmr.msra.gmra.mxu2 %v3846_v45  ;;  %v5361_v45 = vld [vmem:[#allocation97_spill] sm:$0xff] }
 0x124   : > { %1293 = vmatpush.msrb.mxu0 %v5351_v27  ;;  %1333 = vmatpush.msrb.mxu2 %v5352_v43  ;;  %v5362_v27 = vld [vmem:[#allocation50_spill] sm:$0xff]  ;;  %v5363_v43 = vld [vmem:[#allocation51_spill] sm:$0xff] }
 0x125   : > { %1444 = vmatpush.msra.mxu3 %v5353_v31  ;;  %1405 = vmatpush.msra.mxu1 %v5355_v63  ;;  %v5365_v63 = vld [vmem:[#allocation54_spill] sm:$0xff]  ;;  %v5366_v31 = vld [vmem:[#allocation105_spill] sm:$0xff] }
 0x126   : > { %1294 = vmatpush.msrb.mxu0 %v5354_v3  ;;  %1334 = vmatpush.msrb.mxu2 %v5356_v2  ;;  %v5364_v3 = vld [vmem:[#allocation100_spill] sm:$0xff]  ;;  %v5367_v2 = vld [vmem:[#allocation55_spill] sm:$0xff] }
 0x127   : > { %1445 = vmatpush.msra.mxu3 %v5357_v26  ;;  %1406 = vmatpush.msra.mxu1 %v5359_v24  ;;  %v5368_v26 = vld [vmem:[#allocation106_spill] sm:$0xff] }
 0x128   : > { %1295 = vmatpush.msrb.mxu0 %v5358_v18  ;;  %1335 = vmatpush.msrb.mxu2 %v5360_v20  ;;  %v5369_v18 = vld [vmem:[#allocation58_spill] sm:$0xff]  ;;  %v5370_v20 = vld [vmem:[#allocation59_spill] sm:$0xff] }
 0x129   : > { %1446 = vmatpush.msra.mxu3 %v5361_v45  ;;  %1407 = vmatpush.msra.mxu1 %v3610_v41  ;;  %v5371_v24 = vld [vmem:[#allocation62_spill] sm:$0xff]  ;;  %v5372_v45 = vld [vmem:[#allocation63_spill] sm:$0xff] }
 0x12a   : > { %1296 = vmatpush.msrb.mxu0 %v5362_v27  ;;  %1336 = vmatpush.msrb.mxu2 %v5363_v43  ;;  %v5373_v41 = vld [vmem:[#allocation66_spill] sm:$0xff]  ;;  %v5374_v27 = vld [vmem:[#allocation67_spill] sm:$0xff] }
 0x12b   : > { %1447 = vmatpush.msra.mxu3 %v5364_v3  ;;  %1408 = vmatpush.msra.mxu1 %v5366_v31  ;;  %v5375_v43 = vld [vmem:[#allocation70_spill] sm:$0xff]  ;;  %v5376_v3 = vld [vmem:[#allocation71_spill] sm:$0xff] }
 0x12c   : > { %1297 = vmatpush.msrb.mxu0 %v5365_v63  ;;  %1337 = vmatpush.msrb.mxu2 %v5367_v2  ;;  %v5377_v63 = vld [vmem:[#allocation74_spill] sm:$0xff]  ;;  %v5378_v31 = vld [vmem:[#allocation75_spill] sm:$0xff] }
 0x12d   : > { %1448 = vmatpush.msra.mxu3 %v5368_v26  ;;  %v5379_v2 = vld [vmem:[#allocation78_spill] sm:$0xff]  ;;  %v5380_v26 = vld [vmem:[#allocation79_spill] sm:$0xff] }
 0x12e   : > { %1298 = vmatpush.msrb.mxu0 %v5369_v18  ;;  %1338 = vmatpush.msrb.mxu2 %v5370_v20  ;;  %v5381_v18 = vld [vmem:[#allocation84_spill] sm:$0xff]  ;;  %v5382_v20 = vld [vmem:[#allocation85_spill] sm:$0xff] }
 0x130   : > { %1299 = vmatpush.msrb.mxu0 %v5371_v24  ;;  %1339 = vmatpush.msrb.mxu2 %v5372_v45  ;;  %v5383_v24 = vld [vmem:[#allocation88_spill] sm:$0xff]  ;;  %v5384_v45 = vld [vmem:[#allocation89_spill] sm:$0xff] }
 0x132   : > { %1300 = vmatpush.msrb.mxu0 %v5373_v41  ;;  %1340 = vmatpush.msrb.mxu2 %v5374_v27  ;;  %v5385_v41 = vld [vmem:[#allocation92_spill] sm:$0xff]  ;;  %v5386_v27 = vld [vmem:[#allocation93_spill] sm:$0xff] }
 0x134   : > { %1301 = vmatpush.msrb.mxu0 %v5375_v43  ;;  %1341 = vmatpush.msrb.mxu2 %v5376_v3  ;;  %v5387_v43 = vld [vmem:[#allocation98_spill] sm:$0xff]  ;;  %v5388_v3 = vld [vmem:[#allocation99_spill] sm:$0xff] }
 0x136   : > { %1302 = vmatpush.msrb.mxu0 %v5377_v63  ;;  %1342 = vmatpush.msrb.mxu2 %v5378_v31  ;;  %v5389_v63 = vld [vmem:[#allocation103_spill] sm:$0xff]  ;;  %v5390_v31 = vld [vmem:[#allocation104_spill] sm:$0xff] }
 0x138   : > { %1303 = vmatpush.msrb.mxu0 %v5379_v2  ;;  %1343 = vmatpush.msrb.mxu2 %v5380_v26  ;;  %v5391_v2 = vld [vmem:[#allocation107_spill] sm:$0xff]  ;;  %v5392_v26 = vld [vmem:[#allocation108_spill] sm:$0xff] }
 0x13a   : > { %1304 = vmatpush.msrb.mxu0 %v5381_v18  ;;  %1344 = vmatpush.msrb.mxu2 %v5382_v20  ;;  %v5393_v18 = vld [vmem:[#allocation109_spill] sm:$0xff] }
 0x13c   : > { %1305 = vmatpush.msrb.mxu0 %v5383_v24  ;;  %1345 = vmatpush.msrb.mxu2 %v5384_v45  ;;  %v5395_v45 = vld [vmem:[#allocation96_spill] sm:$0xff] }
 0x13e   : > { %1306 = vmatpush.msrb.mxu0 %v5385_v41  ;;  %1346 = vmatpush.msrb.mxu2 %v5386_v27 }
 0x140   : > { %1307 = vmatpush.msrb.mxu0 %v5387_v43  ;;  %1347 = vmatpush.msrb.mxu2 %v5388_v3 }
 0x142   : > { %1308 = vmatpush.msrb.mxu0 %v5389_v63  ;;  %1348 = vmatpush.msrb.mxu2 %v5390_v31 }
 0x144   : > { %1373 = vmatpush.msra.mxu0 %v5391_v2  ;;  %1413 = vmatpush.msra.mxu2 %v3640_v5  ;;  %v4053_v5 = vld [vmem:[%s4973_s5] sm:$0xff] }
 0x146   : > { %1374 = vmatpush.msra.mxu0 %v5392_v26  ;;  %1414 = vmatpush.msra.mxu2 %v5393_v18 }
 0x148   : > { %1375 = vmatpush.msra.mxu0 %v3652_v44  ;;  %1415 = vmatpush.msra.mxu2 %v3654_v10  ;;  %v953_v10 = vpop.f32.mrf.mxu1 }
 0x14a   : > { %1376 = vmatpush.msra.mxu0 %v3666_v9  ;;  %1416 = vmatpush.msra.mxu2 %v3668_v11  ;;  %v993_v9 = vpop.f32.mrf.mxu3 }
 0x14c   : > { %1377 = vmatpush.msra.mxu0 %v3674_v46  ;;  %1417 = vmatpush.msra.mxu2 %v3676_v56 }
 0x14e   : > { %1378 = vmatpush.msra.mxu0 %v3688_v17  ;;  %1418 = vmatpush.msra.mxu2 %v3690_v19  ;;  %v4059_v17 = vld [vmem:[%s4973_s5 + $0x8] sm:$0xff] }
 0x150   : > { %1379 = vmatpush.msra.mxu0 %v3696_v54  ;;  %1419 = vmatpush.msra.mxu2 %v3698_v58 }
 0x152   : > { %1380 = vmatpush.msra.mxu0 %v3704_v21  ;;  %1420 = vmatpush.msra.mxu2 %v3706_v23 }
 0x154   : > { %1381 = vmatpush.msra.mxu0 %v3718_v30  ;;  %1421 = vmatpush.msra.mxu2 %v3720_v32  ;;  %v5394_v32 = vld [vmem:[#allocation82_spill] sm:$0xff] }
 0x156   : > { %1382 = vmatpush.msra.mxu0 %v3730_v34  ;;  %1422 = vmatpush.msra.mxu2 %v3732_v36 }
 0x158   : > { %1383 = vmatpush.msra.mxu0 %v3738_v50  ;;  %1423 = vmatpush.msra.mxu2 %v3740_v52 }
 0x159   : > { %v1033_v44 = vpop.f32.mrf.mxu1 }
 0x15a   : > { %1384 = vmatpush.msra.mxu0 %v3746_v1  ;;  %1424 = vmatpush.msra.mxu2 %v3748_v14  ;;  %v4066_v14 = vld [vmem:[%s4973_s5 + $0x18] sm:$0xff] }
 0x15c   : > { %1385 = vmatpush.msra.mxu0 %v3758_v47  ;;  %1425 = vmatpush.msra.mxu2 %v3760_v49 }
 0x15e   : > { %1386 = vmatpush.msra.mxu0 %v3766_v51  ;;  %1426 = vmatpush.msra.mxu2 %v3768_v53 }
 0x160   : > { %1387 = vmatpush.msra.mxu0 %v3774_v55  ;;  %1427 = vmatpush.msra.mxu2 %v3776_v57 }
 0x161   : > { %v1073_v23 = vpop.f32.mrf.mxu3 }
 0x162   : > { %1388 = vmatpush.msra.mxu0 %v3786_v60  ;;  %1428 = vmatpush.msra.mxu2 %v3788_v62  ;;  %v4072_v60 = vld [vmem:[%s4973_s5 + $0x10] sm:$0xff] }
 0x17f   : > { %v933_v11 = vpop.f32.mrf.mxu0 }
 0x180   : > { %v934_v46 = vadd.f32 %v933_v11, %v4053_v5 }
 0x181   : > { %v1183_v58 = vpop.f32.mrf.mxu1 }
 0x182   : > { %v954_v56 = vadd.f32 %v953_v10, %v934_v46  ;;  %v1227_v34 = vadd.f32 %v1183_v58, %v5394_v32 }
 0x184   : > { %v2456_v19 = vmul.f32 -1.442695, %v954_v56  ;;  %v2460_v1 = vmul.f32 -1.442695, %v1227_v34 }
 0x186   : > { %v973_v54 = vpop.f32.mrf.mxu2  ;;  %2565 = vpow2.f32 %v2456_v19 }
 0x187   : > { %v974_v21 = vadd.f32 %v973_v54, %v4059_v17 }
 0x188   : > { %v1223_v53 = vpop.f32.mrf.mxu3  ;;  %v1013_v62 = vpop.f32.mrf.mxu0 }
 0x189   : > { %v994_v30 = vadd.f32 %v993_v9, %v974_v21  ;;  %v1229_v41 = vadd.f32 %v1223_v53, %v5395_v45  ;;  %v1014_v3 = vadd.f32 %v1013_v62, %v4072_v60  ;;  %v761_v53 = vld [vmem:[#allocation6] sm:$0xff] }
 0x18b   : > { %v2457_v36 = vmul.f32 -1.442695, %v994_v30  ;;  %v2461_v31 = vmul.f32 -1.442695, %v1229_v41  ;;  %v1034_v10 = vadd.f32 %v1033_v44, %v1014_v3 }
 0x18c   : > { %v2566_v50 = vpop.eup %2565 }
 0x18d   : > { %2567 = vpow2.f32 %v2457_v36  ;;  %v1079_v52 = vadd.f32 1.0, %v2566_v50  ;;  %v5398_v36 = vld [vmem:[#allocation81_spill] sm:$0xff] }
 0x18e   : > { %v1053_v47 = vpop.f32.mrf.mxu2 }
 0x18f   : > { %2569 = vrcp.f32 %v1079_v52  ;;  %v1054_v49 = vadd.f32 %v1053_v47, %v4066_v14  ;;  %v1091_v46 = vand.u32 2147483648, %v1079_v52  ;;  %vm1085_vm15 = vweird.f32 %v1079_v52 }
 0x190   : > { %2571 = vpow2.f32 %v2460_v1  ;;  %v1089_v54 = vand.u32 2147483647, %v1079_v52 }
 0x191   : > { %v1074_v55 = vadd.f32 %v1073_v23, %v1054_v49  ;;  %v1092_v1 = vor.u32 1.1754944e-38, %v1091_v46 }
 0x192   : > { %vm1090_vm3 = vcmp.eq.f32.partialorder %v1089_v54, 8.507059e+37 }
 0x193   : > { %v2568_v51 = vpop.eup %2567  ;;  %v2458_v20 = vmul.f32 -1.442695, %v1074_v55 }
 0x194   : > { %v1098_v57 = vadd.f32 1.0, %v2568_v51 }
 0x195   : > { %v2570_v24 = vpop.eup %2569 }
 0x196   : > { %2573 = vrcp.f32 %v1098_v57  ;;  %v1081_v27 = vmul.f32 %v2570_v24, %v1079_v52  ;;  %v2572_v43 = vpop.eup %2571  ;;  %vm1086_vm14 = vweird.f32 %v2570_v24  ;;  %v1110_v58 = vand.u32 2147483648, %v1098_v57 }
 0x197   : > { %2575 = vpow2.f32 %v2458_v20  ;;  %v4076_v2 = vadd.f32 1.0, %v2572_v43  ;;  %vm4079_vm0 = vmor %vm1085_vm15, %vm1086_vm14  ;;  %v1108_v23 = vand.u32 2147483647, %v1098_v57  ;;  %vm1104_vm2 = vweird.f32 %v1098_v57 }
 0x198   : > { %v1082_v63 = vsub.f32 1.0, %v1081_v27  ;;  %2577 = vpow2.f32 %v2461_v31  ;;  %v1111_v51 = vor.u32 1.1754944e-38, %v1110_v58 }
 0x199   : > { %2579 = vrcp.f32 %v4076_v2  ;;  %vm1109_vm5 = vcmp.eq.f32.partialorder %v1108_v23, 8.507059e+37  ;;  %vm1258_vm11 = vweird.f32 %v4076_v2 }
 0x19a   : > { %v1083_v26 = vmul.f32 %v2570_v24, %v1082_v63  ;;  %2581 = vtanh.f32 %v1034_v10 }
 0x19c   : > { %v2574_v18 = vpop.eup %2573  ;;  %v1084_v11 = vadd.f32 %v2570_v24, %v1083_v26 }
 0x19d   : > { %v1100_v9 = vmul.f32 %v2574_v18, %v1098_v57  ;;  %v2576_v56 = vpop.eup %2575  ;;  %vm1105_vm1 = vweird.f32 %v2574_v18 }
 0x19e   : > { %v1118_v30 = vadd.f32 1.0, %v2576_v56  ;;  %v1088_v34 = vsel %vm4079_vm0, %v2570_v24, %v1084_v11  ;;  %v2578_v49 = vpop.eup %2577  ;;  %vm1106_vm4 = vmor %vm1104_vm2, %vm1105_vm1 }
 0x19f   : > { %v1101_v19 = vsub.f32 1.0, %v1100_v9  ;;  %v1093_v55 = vsel %vm1090_vm3, %v1092_v1, %v1088_v34  ;;  %v4086_v62 = vpop.eup %2579  ;;  %v4088_v3 = vadd.f32 1.0, %v2578_v49  ;;  %v5399_v1 = vld [vmem:[#allocation95_spill] sm:$0xff]  ;;  %v1264_v49 = vand.u32 2147483648, %v4076_v2 }
 0x1a0   : > { %v1163_v44 = vpop.f32.mrf.mxu0  ;;  %2583 = vrcp.f32 %v1118_v30  ;;  %v2582_v45 = vpop.eup %2581  ;;  %v1254_v57 = vmul.f32 %v4086_v62, %v4076_v2  ;;  %v1130_v9 = vand.u32 2147483648, %v1118_v30  ;;  %v1128_v56 = vand.u32 2147483647, %v1118_v30 }
 0x1a1   : > { %v1102_v32 = vmul.f32 %v2574_v18, %v1101_v19  ;;  %v1226_v50 = vadd.f32 %v1163_v44, %v5398_v36  ;;  %v1135_v27 = vmul.f32 %v2582_v45, %v1093_v55  ;;  %vm1124_vm7 = vweird.f32 %v1118_v30  ;;  %v4112_v55 = vld [vmem:[#allocation7 + $0x1f8] sm:$0xff] }
 0x1a2   : > { %v1255_v11 = vsub.f32 1.0, %v1254_v57  ;;  %v1131_v54 = vor.u32 1.1754944e-38, %v1130_v9  ;;  %vm1129_vm9 = vcmp.eq.f32.partialorder %v1128_v56, 8.507059e+37  ;;  %vm1259_vm10 = vweird.f32 %v4086_v62  ;;  %v4132_v9 = vld [vmem:[#allocation7 + $0x1a8] sm:$0xff] }
 0x1a3   : > { %v1103_v52 = vadd.f32 %v2574_v18, %v1102_v32  ;;  %v2459_v47 = vmul.f32 -1.442695, %v1226_v50  ;;  %v1262_v45 = vand.u32 2147483647, %v4076_v2  ;;  %vm4117_vm12 = vmor %vm1258_vm11, %vm1259_vm10  ;;  %vm1278_vm3 = vweird.f32 %v4088_v3 }
 0x1a4   : > { %v1256_v21 = vmul.f32 %v4086_v62, %v1255_v11  ;;  %v4135_v11 = vld [vmem:[#allocation7 + $0x1b8] sm:$0xff] }
 0x1a5   : > { %v1107_v20 = vsel %vm1106_vm4, %v2574_v18, %v1103_v52  ;;  %2585 = vpow2.f32 %v2459_v47  ;;  %vm1263_vm15 = vcmp.eq.f32.partialorder %v1262_v45, 8.507059e+37  ;;  %v4173_v45 = vld [vmem:[#allocation7 + $0x108] sm:$0xff] }
 0x1a6   : > { %v1112_v24 = vsel %vm1109_vm5, %v1111_v51, %v1107_v20  ;;  %v2584_v43 = vpop.eup %2583  ;;  %v1203_v23 = vpop.f32.mrf.mxu2 }
 0x1a7   : > { %v1134_v41 = vmul.f32 %v1112_v24, %v761_v53  ;;  %v1120_v31 = vmul.f32 %v2584_v43, %v1118_v30  ;;  %vm1125_vm6 = vweird.f32 %v2584_v43  ;;  %v1228_v52 = vadd.f32 %v1203_v23, %v5399_v1  ;;  %v4109_v53 = vld [vmem:[#allocation7 + $0x1e8] sm:$0xff]  ;;  %v4176_v24 = vld [vmem:[#allocation7 + $0x118] sm:$0xff] }
 0x1a8   : > { %vm1126_vm8 = vmor %vm1124_vm7, %vm1125_vm6  ;;  %v1257_v30 = vadd.f32 %v4086_v62, %v1256_v21 }
 0x1a9   : > { %v4092_v63 = vadd.f32 %v1135_v27, %v1134_v41  ;;  %v1121_v10 = vsub.f32 1.0, %v1120_v31  ;;  %v4122_v27 = vld [vmem:[#allocation7 + $0x1c8] sm:$0xff] }
 0x1aa   : > { %v1261_v2 = vsel %vm4117_vm12, %v4086_v62, %v1257_v30  ;;  %v4142_v62 = vld [vmem:[#allocation7 + $0x198] sm:$0xff] }
 0x1ab   : > { %v2586_v26 = vpop.eup %2585  ;;  %2587 = vtanh.f32 %v4092_v63  ;;  %v1122_v46 = vmul.f32 %v2584_v43, %v1121_v10 }
 0x1ac   : > { %2589 = vrcp.f32 %v4088_v3  ;;  %v4096_v18 = vadd.f32 1.0, %v2586_v26  ;;  %v1265_v26 = vor.u32 1.1754944e-38, %v1264_v49  ;;  %v4163_v49 = vld [vmem:[#allocation7 + $0x128] sm:$0xff] }
 0x1ad   : > { %v1123_v19 = vadd.f32 %v2584_v43, %v1122_v46 }
 0x1ae   : > { %2591 = vrcp.f32 %v4096_v18  ;;  %v1245_v41 = vand.u32 2147483648, %v4096_v18  ;;  %v1243_v31 = vand.u32 2147483647, %v4096_v18  ;;  %vm1239_vm14 = vweird.f32 %v4096_v18 }
 0x1af   : > { %v1127_v44 = vsel %vm1126_vm8, %v2584_v43, %v1123_v19  ;;  %2593 = vtanh.f32 %v1228_v52  ;;  %v4125_v43 = vld [vmem:[#allocation7 + $0x1d8] sm:$0xff]  ;;  %v1266_v19 = vsel %vm1263_vm15, %v1265_v26, %v1261_v2  ;;  %v4186_v2 = vld [vmem:[#allocation7 + $0xc8] sm:$0xff] }
 0x1b0   : > { %v1132_v34 = vsel %vm1129_vm9, %v1131_v54, %v1127_v44  ;;  %v1246_v56 = vor.u32 1.1754944e-38, %v1245_v41  ;;  %v4139_v54 = vld [vmem:[#allocation7 + $0x188] sm:$0xff]  ;;  %vm1244_vm1 = vcmp.eq.f32.partialorder %v1243_v31, 8.507059e+37  ;;  %v1288_v1 = vmul.f32 %v1266_v19, %v3830_v13  ;;  %v4166_v13 = vld [vmem:[#allocation7 + $0x138] sm:$0xff] }
 0x1b1   : > { %v2588_v58 = vpop.eup %2587  ;;  %v4146_v44 = vld [vmem:[#allocation7 + $0x168] sm:$0xff]  ;;  %v4183_v31 = vld [vmem:[#allocation7 + $0xf8] sm:$0xff] }
 0x1b2   : > { %v4100_v32 = vpop.eup %2589  ;;  %v1138_v36 = vmul.f32 %v2588_v58, %v1132_v34  ;;  %v4149_v34 = vld [vmem:[#allocation7 + $0x178] sm:$0xff] }
 0x1b3   : > { %v1274_v51 = vmul.f32 %v4100_v32, %v4088_v3  ;;  %vm1279_vm2 = vweird.f32 %v4100_v32  ;;  %v4189_v26 = vld [vmem:[#allocation7 + $0xd8] sm:$0xff] }
 0x1b4   : > { %v2592_v50 = vpop.eup %2591  ;;  %1329 = vmatmul.f32.vlgmr.msrb.gmra.mxu1 %v1138_v36  ;;  %1369 = vmatmul.f32.vlgmr.msrb.gmra.mxu3 %v1138_v36  ;;  %vm1280_vm4 = vmor %vm1278_vm3, %vm1279_vm2  ;;  %v4197_v19 = vld [vmem:[#allocation7 + $0xb8] sm:$0xff] }
 0x1b5   : > { %v1235_v47 = vmul.f32 %v2592_v50, %v4096_v18  ;;  %1543 = vmatpush.msrb.mxu1 %v4109_v53  ;;  %1583 = vmatpush.msrb.mxu3 %v4112_v55  ;;  %vm1240_vm13 = vweird.f32 %v2592_v50  ;;  %v1275_v10 = vsub.f32 1.0, %v1274_v51  ;;  %v2594_v21 = vpop.eup %2593  ;;  %v1284_v51 = vand.u32 2147483648, %v4088_v3 }
 0x1b6   : > { %vm1241_vm0 = vmor %vm1239_vm14, %vm1240_vm13 }
 0x1b7   : > { %v1236_v20 = vsub.f32 1.0, %v1235_v47  ;;  %1544 = vmatpush.msrb.mxu1 %v4122_v27  ;;  %1584 = vmatpush.msrb.mxu3 %v4125_v43  ;;  %v1276_v23 = vmul.f32 %v4100_v32, %v1275_v10  ;;  %v4153_v47 = vld [vmem:[#allocation7 + $0x148] sm:$0xff] }
 0x1b9   : > { %v1237_v57 = vmul.f32 %v2592_v50, %v1236_v20  ;;  %1545 = vmatpush.msrb.mxu1 %v4132_v9  ;;  %1585 = vmatpush.msrb.mxu3 %v4135_v11  ;;  %v1277_v30 = vadd.f32 %v4100_v32, %v1276_v23  ;;  %v1282_v20 = vand.u32 2147483647, %v4088_v3  ;;  %v1285_v3 = vor.u32 1.1754944e-38, %v1284_v51  ;;  %v4210_v23 = vld [vmem:[#allocation7 + $0x68] sm:$0xff] }
 0x1ba   : > { %v4307_v51 = vld [vmem:[#allocation10 + $0x308] sm:$0xff] }
 0x1bb   : > { %v1238_v46 = vadd.f32 %v2592_v50, %v1237_v57  ;;  %1546 = vmatpush.msrb.mxu1 %v4139_v54  ;;  %1586 = vmatpush.msrb.mxu3 %v4142_v62  ;;  %v1281_v41 = vsel %vm1280_vm4, %v4100_v32, %v1277_v30  ;;  %v4180_v57 = vld [vmem:[#allocation7 + $0xe8] sm:$0xff]  ;;  %vm1283_vm5 = vcmp.eq.f32.partialorder %v1282_v20, 8.507059e+37  ;;  %v4303_v30 = vld [vmem:[#allocation10 + $0x300] sm:$0xff]  ;;  %5416 = vst [vmem:[#allocation37_spill] sm:$0xff] %v4307_v51  ;;  %v5417_v20 = vld [vmem:[#allocation23_spill] sm:$0xff] }
 0x1bc   : > { %1409 = vmatmul.f32.vlgmr.msra.gmra.mxu1 %v1138_v36  ;;  %1449 = vmatmul.f32.vlgmr.msra.gmra.mxu3 %v1138_v36  ;;  %v4156_v36 = vld [vmem:[#allocation7 + $0x158] sm:$0xff]  ;;  %v1286_v32 = vsel %vm1283_vm5, %v1285_v3, %v1281_v41  ;;  %5414 = vst [vmem:[#allocation36_spill] sm:$0xff] %v4303_v30  ;;  %v4311_v41 = vld [vmem:[#allocation10 + $0x2e0] sm:$0xff] }
 0x1bd   : > { %v1242_v58 = vsel %vm1241_vm0, %v2592_v50, %v1238_v46  ;;  %1547 = vmatpush.msrb.mxu1 %v4146_v44  ;;  %1587 = vmatpush.msrb.mxu3 %v4149_v34  ;;  %5418 = vst [vmem:[#allocation40_spill] sm:$0xff] %v4311_v41  ;;  %v5419_v3 = vld [vmem:[#allocation24_spill] sm:$0xff] }
 0x1be   : > { %v1247_v18 = vsel %vm1244_vm1, %v1246_v56, %v1242_v58  ;;  %v4194_v56 = vld [vmem:[#allocation7 + $0xa8] sm:$0xff] }
 0x1bf   : > { %v1289_v52 = vmul.f32 %v2594_v21, %v1247_v18  ;;  %1548 = vmatpush.msrb.mxu1 %v4153_v47  ;;  %1588 = vmatpush.msrb.mxu3 %v4156_v36  ;;  %v4200_v58 = vld [vmem:[#allocation7 + $0x88] sm:$0xff]  ;;  %v4203_v21 = vld [vmem:[#allocation7 + $0x98] sm:$0xff] }
 0x1c0   : > { %v4213_v18 = vld [vmem:[#allocation7 + $0x78] sm:$0xff] }
 0x1c1   : > { %v4159_v50 = vadd.f32 %v1289_v52, %v1288_v1  ;;  %1549 = vmatpush.msrb.mxu1 %v4163_v49  ;;  %1589 = vmatpush.msrb.mxu3 %v4166_v13  ;;  %v4218_v1 = vld [vmem:[#allocation7 + $0x48] sm:$0xff]  ;;  %v4221_v52 = vld [vmem:[#allocation7 + $0x58] sm:$0xff] }
 0x1c3   : > { %2595 = vtanh.f32 %v4159_v50  ;;  %1550 = vmatpush.msrb.mxu1 %v4173_v45  ;;  %1590 = vmatpush.msrb.mxu3 %v4176_v24 }
 0x1c5   : > { %1551 = vmatpush.msrb.mxu1 %v4180_v57  ;;  %1591 = vmatpush.msrb.mxu3 %v4183_v31 }
 0x1c7   : > { %1552 = vmatpush.msrb.mxu1 %v4186_v2  ;;  %1592 = vmatpush.msrb.mxu3 %v4189_v26 }
 0x1c9   : > { %v2596_v10 = vpop.eup %2595  ;;  %1553 = vmatpush.msrb.mxu1 %v4194_v56  ;;  %1593 = vmatpush.msrb.mxu3 %v4197_v19 }
 0x1ca   : > { %v4192_v46 = vmul.f32 %v2596_v10, %v1286_v32  ;;  %v4315_v10 = vld [vmem:[#allocation10 + $0x2e8] sm:$0xff] }
 0x1cb   : > { %1554 = vmatpush.msrb.mxu1 %v4200_v58  ;;  %1594 = vmatpush.msrb.mxu3 %v4203_v21  ;;  %5420 = vst [vmem:[#allocation41_spill] sm:$0xff] %v4315_v10  ;;  %v5421_v32 = vld [vmem:[#allocation25_spill] sm:$0xff] }
 0x1cc   : > { %1309 = vmatmul.f32.vlgmr.msrb.gmra.mxu0 %v4192_v46  ;;  %1349 = vmatmul.f32.vlgmr.msrb.gmra.mxu2 %v4192_v46 }
 0x1cd   : > { %1523 = vmatpush.msrb.mxu0 %v3852_v25  ;;  %1563 = vmatpush.msrb.mxu2 %v3856_v42  ;;  %v4226_v25 = vld [vmem:[#allocation7 + $0x28] sm:$0xff]  ;;  %v4229_v42 = vld [vmem:[#allocation7 + $0x38] sm:$0xff] }
 0x1ce   : > { %1555 = vmatpush.msrb.mxu1 %v4210_v23  ;;  %1595 = vmatpush.msrb.mxu3 %v4213_v18 }
 0x1cf   : > { %1524 = vmatpush.msrb.mxu0 %v3860_v33  ;;  %1564 = vmatpush.msrb.mxu2 %v3864_v59  ;;  %v4234_v33 = vld [vmem:[#allocation7 + $0x8] sm:$0xff]  ;;  %v4237_v59 = vld [vmem:[#allocation7 + $0x18] sm:$0xff] }
 0x1d0   : > { %1556 = vmatpush.msrb.mxu1 %v4218_v1  ;;  %1596 = vmatpush.msrb.mxu3 %v4221_v52 }
 0x1d1   : > { %1525 = vmatpush.msrb.mxu0 %v3868_v61  ;;  %1565 = vmatpush.msrb.mxu2 %v3872_v0  ;;  %v4247_v61 = vld [vmem:[#allocation10 + $0x3e0] sm:$0xff]  ;;  %v4251_v0 = vld [vmem:[#allocation10 + $0x3e8] sm:$0xff] }
 0x1d2   : > { %1557 = vmatpush.msrb.mxu1 %v4226_v25  ;;  %1597 = vmatpush.msrb.mxu3 %v4229_v42 }
 0x1d3   : > { %1526 = vmatpush.msrb.mxu0 %v3876_v35  ;;  %1566 = vmatpush.msrb.mxu2 %v3880_v37  ;;  %v4255_v35 = vld [vmem:[#allocation10 + $0x3c0] sm:$0xff]  ;;  %v4259_v37 = vld [vmem:[#allocation10 + $0x3c8] sm:$0xff] }
 0x1d4   : > { %1558 = vmatpush.msrb.mxu1 %v4234_v33  ;;  %1598 = vmatpush.msrb.mxu3 %v4237_v59 }
 0x1d5   : > { %1389 = vmatmul.f32.vlgmr.msra.gmra.mxu0 %v4192_v46  ;;  %1429 = vmatmul.f32.vlgmr.msra.gmra.mxu2 %v4192_v46 }
 0x1d6   : > { %1527 = vmatpush.msrb.mxu0 %v3885_v6  ;;  %1559 = vmatmul.f32.vlgmr.msrb.gmra.mxu1 %v4192_v46  ;;  %v4263_v6 = vld [vmem:[#allocation10 + $0x3a0] sm:$0xff] }
 0x1d7   : > { %1567 = vmatpush.msrb.mxu2 %v3888_v8  ;;  %1599 = vmatmul.f32.vlgmr.msrb.gmra.mxu3 %v4192_v46  ;;  %v4267_v8 = vld [vmem:[#allocation10 + $0x3a8] sm:$0xff] }
 0x1d8   : > { %1528 = vmatpush.msrb.mxu0 %v3892_v39  ;;  %1690 = vmatpush.msra.mxu1 %v4247_v61  ;;  %5402 = vst [vmem:[#allocation27_spill] sm:$0xff] %v4267_v8  ;;  %v4271_v39 = vld [vmem:[#allocation10 + $0x380] sm:$0xff] }
 0x1d9   : > { %1568 = vmatpush.msrb.mxu2 %v3896_v16  ;;  %1730 = vmatpush.msra.mxu3 %v4251_v0  ;;  %5403 = vst [vmem:[#allocation28_spill] sm:$0xff] %v4271_v39  ;;  %v4275_v16 = vld [vmem:[#allocation10 + $0x388] sm:$0xff] }
 0x1da   : > { %1529 = vmatpush.msrb.mxu0 %v3900_v48  ;;  %1691 = vmatpush.msra.mxu1 %v4255_v35  ;;  %5404 = vst [vmem:[#allocation29_spill] sm:$0xff] %v4275_v16  ;;  %v4279_v48 = vld [vmem:[#allocation10 + $0x360] sm:$0xff] }
 0x1db   : > { %1569 = vmatpush.msrb.mxu2 %v3904_v22  ;;  %1731 = vmatpush.msra.mxu3 %v4259_v37  ;;  %5405 = vst [vmem:[#allocation30_spill] sm:$0xff] %v4279_v48  ;;  %v4283_v22 = vld [vmem:[#allocation10 + $0x368] sm:$0xff] }
 0x1dc   : > { %1530 = vmatpush.msrb.mxu0 %v3908_v38  ;;  %1692 = vmatpush.msra.mxu1 %v4263_v6  ;;  %5406 = vst [vmem:[#allocation31_spill] sm:$0xff] %v4283_v22  ;;  %v4287_v38 = vld [vmem:[#allocation10 + $0x340] sm:$0xff] }
 0x1dd   : > { %1570 = vmatpush.msrb.mxu2 %v3912_v40  ;;  %1732 = vmatpush.msra.mxu3 %v4267_v8  ;;  %5407 = vst [vmem:[#allocation32_spill] sm:$0xff] %v4287_v38  ;;  %v4291_v40 = vld [vmem:[#allocation10 + $0x348] sm:$0xff] }
 0x1de   : > { %1531 = vmatpush.msrb.mxu0 %v3916_v29  ;;  %1693 = vmatpush.msra.mxu1 %v4271_v39  ;;  %5408 = vst [vmem:[#allocation33_spill] sm:$0xff] %v4291_v40  ;;  %v5409_v29 = vld [vmem:[#allocation19_spill] sm:$0xff] }
 0x1df   : > { %1571 = vmatpush.msrb.mxu2 %v3920_v4  ;;  %1733 = vmatpush.msra.mxu3 %v4275_v16  ;;  %v4295_v4 = vld [vmem:[#allocation10 + $0x320] sm:$0xff] }
 0x1e0   : > { %1532 = vmatpush.msrb.mxu0 %v3924_v7  ;;  %1694 = vmatpush.msra.mxu1 %v4279_v48  ;;  %5410 = vst [vmem:[#allocation34_spill] sm:$0xff] %v4295_v4  ;;  %v5411_v7 = vld [vmem:[#allocation20_spill] sm:$0xff] }
 0x1e1   : > { %1572 = vmatpush.msrb.mxu2 %v3928_v15  ;;  %1734 = vmatpush.msra.mxu3 %v4283_v22  ;;  %v4299_v15 = vld [vmem:[#allocation10 + $0x328] sm:$0xff] }
 0x1e2   : > { %1533 = vmatpush.msrb.mxu0 %v3932_v28  ;;  %1695 = vmatpush.msra.mxu1 %v4287_v38  ;;  %5412 = vst [vmem:[#allocation35_spill] sm:$0xff] %v4299_v15  ;;  %v5413_v28 = vld [vmem:[#allocation21_spill] sm:$0xff] }
 0x1e3   : > { %1573 = vmatpush.msrb.mxu2 %v3936_v12  ;;  %1735 = vmatpush.msra.mxu3 %v4291_v40  ;;  %v5415_v12 = vld [vmem:[#allocation22_spill] sm:$0xff] }
 0x1e4   : > { %1534 = vmatpush.msrb.mxu0 %v5409_v29  ;;  %1696 = vmatpush.msra.mxu1 %v4295_v4  ;;  %v4319_v29 = vld [vmem:[#allocation10 + $0x2c0] sm:$0xff]  ;;  %v5535_v40 = vld [vmem:[#allocation102_spill] sm:$0xff] }
 0x1e5   : > { %1574 = vmatpush.msrb.mxu2 %v5411_v7  ;;  %1736 = vmatpush.msra.mxu3 %v4299_v15  ;;  %5422 = vst [vmem:[#allocation44_spill] sm:$0xff] %v4319_v29  ;;  %v5423_v7 = vld [vmem:[#allocation26_spill] sm:$0xff] }
 0x1e6   : > { %1535 = vmatpush.msrb.mxu0 %v5413_v28  ;;  %1697 = vmatpush.msra.mxu1 %v4303_v30  ;;  %v4323_v28 = vld [vmem:[#allocation10 + $0x2c8] sm:$0xff] }
 0x1e7   : > { %1575 = vmatpush.msrb.mxu2 %v5415_v12  ;;  %1737 = vmatpush.msra.mxu3 %v4307_v51  ;;  %5424 = vst [vmem:[#allocation45_spill] sm:$0xff] %v4323_v28  ;;  %v4326_v12 = vld [vmem:[#allocation7] sm:$0xff] }
 0x1e8   : > { %1536 = vmatpush.msrb.mxu0 %v5417_v20  ;;  %1698 = vmatpush.msra.mxu1 %v4311_v41  ;;  %5425 = vst [vmem:[#allocation48_spill] sm:$0xff] %v4326_v12  ;;  %v4329_v20 = vld [vmem:[#allocation10 + $0x2a0] sm:$0xff] }
 0x1e9   : > { %1576 = vmatpush.msrb.mxu2 %v5419_v3  ;;  %1738 = vmatpush.msra.mxu3 %v4315_v10  ;;  %5426 = vst [vmem:[#allocation49_spill] sm:$0xff] %v4329_v20  ;;  %v4332_v3 = vld [vmem:[#allocation7 + $0x10] sm:$0xff] }
 0x1ea   : > { %1537 = vmatpush.msrb.mxu0 %v5421_v32  ;;  %1699 = vmatpush.msra.mxu1 %v4319_v29  ;;  %5427 = vst [vmem:[#allocation52_spill] sm:$0xff] %v4332_v3  ;;  %v4337_v32 = vld [vmem:[#allocation10 + $0x2a8] sm:$0xff] }
 0x1eb   : > { %1577 = vmatpush.msrb.mxu2 %v5423_v7  ;;  %1739 = vmatpush.msra.mxu3 %v4323_v28  ;;  %5428 = vst [vmem:[#allocation53_spill] sm:$0xff] %v4337_v32  ;;  %v4340_v7 = vld [vmem:[#allocation10 + $0x280] sm:$0xff] }
 0x1ec   : > { %1538 = vmatpush.msrb.mxu0 %v4326_v12  ;;  %1700 = vmatpush.msra.mxu1 %v4329_v20  ;;  %5429 = vst [vmem:[#allocation56_spill] sm:$0xff] %v4340_v7  ;;  %v4343_v12 = vld [vmem:[#allocation10 + $0x1e0] sm:$0xff]  ;;  %v4346_v20 = vld [vmem:[#allocation10 + $0x288] sm:$0xff] }
 0x1ed   : > { %1578 = vmatpush.msrb.mxu2 %v4332_v3  ;;  %1539 = vmatmul.f32.vlgmr.msrb.gmra.mxu0 %v4192_v46  ;;  %5430 = vst [vmem:[#allocation57_spill] sm:$0xff] %v4343_v12  ;;  %v4349_v3 = vld [vmem:[#allocation10 + $0x1e8] sm:$0xff] }
 0x1ee   : > { %1579 = vmatmul.f32.vlgmr.msrb.gmra.mxu2 %v4192_v46  ;;  %1740 = vmatpush.msra.mxu3 %v4337_v32  ;;  %5431 = vst [vmem:[#allocation60_spill] sm:$0xff] %v4346_v20  ;;  %v4352_v46 = vld [vmem:[#allocation10 + $0x260] sm:$0xff] }
 0x1ef   : > { %1701 = vmatpush.msra.mxu1 %v4340_v7  ;;  %1670 = vmatpush.msra.mxu0 %v4343_v12  ;;  %5432 = vst [vmem:[#allocation61_spill] sm:$0xff] %v4349_v3  ;;  %v4355_v32 = vld [vmem:[#allocation10 + $0x1c0] sm:$0xff]  ;;  %v4358_v7 = vld [vmem:[#allocation10 + $0x268] sm:$0xff] }
 0x1f0   : > { %1741 = vmatpush.msra.mxu3 %v4346_v20  ;;  %1710 = vmatpush.msra.mxu2 %v4349_v3  ;;  %5433 = vst [vmem:[#allocation64_spill] sm:$0xff] %v4352_v46  ;;  %v4361_v12 = vld [vmem:[#allocation10 + $0x1c8] sm:$0xff]  ;;  %v4364_v20 = vld [vmem:[#allocation10 + $0x240] sm:$0xff] }
 0x1f1   : > { %1702 = vmatpush.msra.mxu1 %v4352_v46  ;;  %5434 = vst [vmem:[#allocation65_spill] sm:$0xff] %v4355_v32  ;;  %1671 = vmatpush.msra.mxu0 %v4355_v32  ;;  %v4367_v3 = vld [vmem:[#allocation10 + $0x1a0] sm:$0xff]  ;;  %v4370_v46 = vld [vmem:[#allocation10 + $0x248] sm:$0xff] }
 0x1f2   : > { %5435 = vst [vmem:[#allocation68_spill] sm:$0xff] %v4358_v7  ;;  %1742 = vmatpush.msra.mxu3 %v4358_v7  ;;  %1711 = vmatpush.msra.mxu2 %v4361_v12  ;;  %v4373_v32 = vld [vmem:[#allocation10 + $0x1a8] sm:$0xff]  ;;  %v4376_v7 = vld [vmem:[#allocation10 + $0x220] sm:$0xff] }
 0x1f3   : > { %5436 = vst [vmem:[#allocation69_spill] sm:$0xff] %v4361_v12  ;;  %1703 = vmatpush.msra.mxu1 %v4364_v20  ;;  %1672 = vmatpush.msra.mxu0 %v4367_v3  ;;  %v4379_v12 = vld [vmem:[#allocation10 + $0x180] sm:$0xff] }
 0x1f4   : > { %5437 = vst [vmem:[#allocation72_spill] sm:$0xff] %v4364_v20  ;;  %1743 = vmatpush.msra.mxu3 %v4370_v46  ;;  %1712 = vmatpush.msra.mxu2 %v4373_v32  ;;  %v4382_v20 = vld [vmem:[#allocation10 + $0x228] sm:$0xff] }
 0x1f5   : > { %5438 = vst [vmem:[#allocation73_spill] sm:$0xff] %v4367_v3  ;;  %1704 = vmatpush.msra.mxu1 %v4376_v7  ;;  %1673 = vmatpush.msra.mxu0 %v4379_v12  ;;  %v4385_v3 = vld [vmem:[#allocation10 + $0x188] sm:$0xff] }
 0x1f6   : > { %5439 = vst [vmem:[#allocation76_spill] sm:$0xff] %v4370_v46  ;;  %1744 = vmatpush.msra.mxu3 %v4382_v20  ;;  %1713 = vmatpush.msra.mxu2 %v4385_v3  ;;  %v4388_v46 = vld [vmem:[#allocation10 + $0x200] sm:$0xff] }
 0x1f7   : > { %5440 = vst [vmem:[#allocation77_spill] sm:$0xff] %v4373_v32  ;;  %1705 = vmatpush.msra.mxu1 %v4388_v46  ;;  %v4391_v32 = vld [vmem:[#allocation10 + $0x160] sm:$0xff] }
 0x1f8   : > { %5441 = vst [vmem:[#allocation80_spill] sm:$0xff] %v4376_v7  ;;  %1674 = vmatpush.msra.mxu0 %v4391_v32  ;;  %v4394_v7 = vld [vmem:[#allocation10 + $0x208] sm:$0xff] }
 0x1f9   : > { %5442 = vst [vmem:[#allocation83_spill] sm:$0xff] %v4379_v12  ;;  %1745 = vmatpush.msra.mxu3 %v4394_v7  ;;  %v4397_v12 = vld [vmem:[#allocation10 + $0x168] sm:$0xff] }
 0x1fa   : > { %5443 = vst [vmem:[#allocation17_spill] sm:$0xff] %v4382_v20  ;;  %1714 = vmatpush.msra.mxu2 %v4397_v12  ;;  %v4400_v20 = vld [vmem:[#allocation10 + $0x3f0] sm:$0xff] }
 0x1fb   : > { %5444 = vst [vmem:[#allocation86_spill] sm:$0xff] %v4385_v3  ;;  %1770 = vmatpush.msrb.mxu1 %v4400_v20  ;;  %v4403_v3 = vld [vmem:[#allocation10 + $0x3f8] sm:$0xff] }
 0x1fc   : > { %5445 = vst [vmem:[#allocation18_spill] sm:$0xff] %v4388_v46  ;;  %1810 = vmatpush.msrb.mxu3 %v4403_v3  ;;  %v4406_v46 = vld [vmem:[#allocation10 + $0x140] sm:$0xff] }
 0x1fd   : > { %5446 = vst [vmem:[#allocation38_spill] sm:$0xff] %v4391_v32  ;;  %1675 = vmatpush.msra.mxu0 %v4406_v46  ;;  %v4409_v32 = vld [vmem:[#allocation10 + $0x148] sm:$0xff] }
 0x1fe   : > { %5447 = vst [vmem:[#allocation39_spill] sm:$0xff] %v4394_v7  ;;  %1715 = vmatpush.msra.mxu2 %v4409_v32  ;;  %v4412_v7 = vld [vmem:[#allocation10 + $0x3d0] sm:$0xff] }
 0x1ff   : > { %5448 = vst [vmem:[#allocation87_spill] sm:$0xff] %v4397_v12  ;;  %1771 = vmatpush.msrb.mxu1 %v4412_v7  ;;  %v4415_v12 = vld [vmem:[#allocation10 + $0x3d8] sm:$0xff] }
 0x200   : > { %5449 = vst [vmem:[#allocation42_spill] sm:$0xff] %v4400_v20  ;;  %1811 = vmatpush.msrb.mxu3 %v4415_v12  ;;  %v4418_v20 = vld [vmem:[#allocation10 + $0x120] sm:$0xff] }
 0x201   : > { %5450 = vst [vmem:[#allocation90_spill] sm:$0xff] %v4403_v3  ;;  %1676 = vmatpush.msra.mxu0 %v4418_v20  ;;  %v4421_v3 = vld [vmem:[#allocation10 + $0x128] sm:$0xff] }
 0x202   : > { %5451 = vst [vmem:[#allocation43_spill] sm:$0xff] %v4406_v46  ;;  %1716 = vmatpush.msra.mxu2 %v4421_v3  ;;  %v4424_v46 = vld [vmem:[#allocation10 + $0x3b0] sm:$0xff] }
 0x203   : > { %5452 = vst [vmem:[#allocation91_spill] sm:$0xff] %v4409_v32  ;;  %1772 = vmatpush.msrb.mxu1 %v4424_v46  ;;  %v4427_v32 = vld [vmem:[#allocation10 + $0x3b8] sm:$0xff] }
 0x204   : > { %5453 = vst [vmem:[#allocation46_spill] sm:$0xff] %v4412_v7  ;;  %1812 = vmatpush.msrb.mxu3 %v4427_v32  ;;  %v4430_v7 = vld [vmem:[#allocation10 + $0x100] sm:$0xff] }
 0x205   : > { %5454 = vst [vmem:[#allocation94_spill] sm:$0xff] %v4415_v12  ;;  %1677 = vmatpush.msra.mxu0 %v4430_v7  ;;  %v4433_v12 = vld [vmem:[#allocation10 + $0x108] sm:$0xff] }
 0x206   : > { %5455 = vst [vmem:[#allocation47_spill] sm:$0xff] %v4418_v20  ;;  %1717 = vmatpush.msra.mxu2 %v4433_v12  ;;  %v4436_v20 = vld [vmem:[#allocation10 + $0x390] sm:$0xff] }
 0x207   : > { %5456 = vst [vmem:[#allocation97_spill] sm:$0xff] %v4421_v3  ;;  %1773 = vmatpush.msrb.mxu1 %v4436_v20  ;;  %v4439_v3 = vld [vmem:[#allocation10 + $0x398] sm:$0xff] }
 0x208   : > { %5457 = vst [vmem:[#allocation50_spill] sm:$0xff] %v4424_v46  ;;  %1813 = vmatpush.msrb.mxu3 %v4439_v3  ;;  %v4442_v46 = vld [vmem:[#allocation10 + $0xe0] sm:$0xff] }
 0x209   : > { %5458 = vst [vmem:[#allocation51_spill] sm:$0xff] %v4427_v32  ;;  %1678 = vmatpush.msra.mxu0 %v4442_v46  ;;  %v4445_v32 = vld [vmem:[#allocation10 + $0xe8] sm:$0xff] }
 0x20a   : > { %5459 = vst [vmem:[#allocation100_spill] sm:$0xff] %v4430_v7  ;;  %1718 = vmatpush.msra.mxu2 %v4445_v32  ;;  %v4448_v7 = vld [vmem:[#allocation10 + $0x370] sm:$0xff] }
 0x20b   : > { %5460 = vst [vmem:[#allocation54_spill] sm:$0xff] %v4433_v12  ;;  %1774 = vmatpush.msrb.mxu1 %v4448_v7  ;;  %v4451_v12 = vld [vmem:[#allocation10 + $0x378] sm:$0xff] }
 0x20c   : > { %5461 = vst [vmem:[#allocation105_spill] sm:$0xff] %v4436_v20  ;;  %1814 = vmatpush.msrb.mxu3 %v4451_v12  ;;  %v4454_v20 = vld [vmem:[#allocation10 + $0xc0] sm:$0xff] }
 0x20d   : > { %5462 = vst [vmem:[#allocation55_spill] sm:$0xff] %v4439_v3  ;;  %1679 = vmatpush.msra.mxu0 %v4454_v20  ;;  %v4457_v3 = vld [vmem:[#allocation10 + $0xc8] sm:$0xff] }
 0x20e   : > { %5463 = vst [vmem:[#allocation106_spill] sm:$0xff] %v4442_v46  ;;  %1719 = vmatpush.msra.mxu2 %v4457_v3  ;;  %v4460_v46 = vld [vmem:[#allocation10 + $0x350] sm:$0xff] }
 0x20f   : > { %5464 = vst [vmem:[#allocation58_spill] sm:$0xff] %v4445_v32  ;;  %1775 = vmatpush.msrb.mxu1 %v4460_v46  ;;  %v4463_v32 = vld [vmem:[#allocation10 + $0x358] sm:$0xff] }
 0x210   : > { %5465 = vst [vmem:[#allocation59_spill] sm:$0xff] %v4448_v7  ;;  %1815 = vmatpush.msrb.mxu3 %v4463_v32  ;;  %v4466_v7 = vld [vmem:[#allocation10 + $0xa0] sm:$0xff] }
 0x211   : > { %5466 = vst [vmem:[#allocation62_spill] sm:$0xff] %v4451_v12  ;;  %1680 = vmatpush.msra.mxu0 %v4466_v7  ;;  %v4469_v12 = vld [vmem:[#allocation10 + $0xa8] sm:$0xff] }
 0x212   : > { %5467 = vst [vmem:[#allocation63_spill] sm:$0xff] %v4454_v20  ;;  %1720 = vmatpush.msra.mxu2 %v4469_v12  ;;  %v4472_v20 = vld [vmem:[#allocation10 + $0x330] sm:$0xff] }
 0x213   : > { %5468 = vst [vmem:[#allocation66_spill] sm:$0xff] %v4457_v3  ;;  %1776 = vmatpush.msrb.mxu1 %v4472_v20  ;;  %v4475_v3 = vld [vmem:[#allocation10 + $0x338] sm:$0xff] }
 0x214   : > { %5469 = vst [vmem:[#allocation67_spill] sm:$0xff] %v4460_v46  ;;  %1816 = vmatpush.msrb.mxu3 %v4475_v3  ;;  %v4478_v46 = vld [vmem:[#allocation10 + $0x80] sm:$0xff] }
 0x215   : > { %5470 = vst [vmem:[#allocation70_spill] sm:$0xff] %v4463_v32  ;;  %1681 = vmatpush.msra.mxu0 %v4478_v46  ;;  %v4481_v32 = vld [vmem:[#allocation10 + $0x88] sm:$0xff] }
 0x216   : > { %5471 = vst [vmem:[#allocation71_spill] sm:$0xff] %v4466_v7  ;;  %1721 = vmatpush.msra.mxu2 %v4481_v32  ;;  %v4484_v7 = vld [vmem:[#allocation10 + $0x310] sm:$0xff] }
 0x217   : > { %5472 = vst [vmem:[#allocation74_spill] sm:$0xff] %v4469_v12  ;;  %1777 = vmatpush.msrb.mxu1 %v4484_v7  ;;  %v4487_v12 = vld [vmem:[#allocation10 + $0x318] sm:$0xff] }
 0x218   : > { %5473 = vst [vmem:[#allocation75_spill] sm:$0xff] %v4472_v20  ;;  %1817 = vmatpush.msrb.mxu3 %v4487_v12  ;;  %v4490_v20 = vld [vmem:[#allocation10 + $0x60] sm:$0xff] }
 0x219   : > { %5474 = vst [vmem:[#allocation78_spill] sm:$0xff] %v4475_v3  ;;  %1682 = vmatpush.msra.mxu0 %v4490_v20  ;;  %v4493_v3 = vld [vmem:[#allocation10 + $0x68] sm:$0xff] }
 0x21a   : > { %5475 = vst [vmem:[#allocation79_spill] sm:$0xff] %v4478_v46  ;;  %1722 = vmatpush.msra.mxu2 %v4493_v3  ;;  %v4496_v46 = vld [vmem:[#allocation10 + $0x2f0] sm:$0xff] }
 0x21b   : > { %5476 = vst [vmem:[#allocation84_spill] sm:$0xff] %v4481_v32  ;;  %1778 = vmatpush.msrb.mxu1 %v4496_v46  ;;  %v4499_v32 = vld [vmem:[#allocation10 + $0x2f8] sm:$0xff] }
 0x21c   : > { %5477 = vst [vmem:[#allocation85_spill] sm:$0xff] %v4484_v7  ;;  %1818 = vmatpush.msrb.mxu3 %v4499_v32  ;;  %v4502_v7 = vld [vmem:[#allocation10 + $0x40] sm:$0xff] }
 0x21d   : > { %5478 = vst [vmem:[#allocation88_spill] sm:$0xff] %v4487_v12  ;;  %1683 = vmatpush.msra.mxu0 %v4502_v7  ;;  %v4505_v12 = vld [vmem:[#allocation10 + $0x48] sm:$0xff] }
 0x21e   : > { %5479 = vst [vmem:[#allocation89_spill] sm:$0xff] %v4490_v20  ;;  %1723 = vmatpush.msra.mxu2 %v4505_v12  ;;  %v4508_v20 = vld [vmem:[#allocation10 + $0x2d0] sm:$0xff] }
 0x21f   : > { %5480 = vst [vmem:[#allocation92_spill] sm:$0xff] %v4493_v3  ;;  %1779 = vmatpush.msrb.mxu1 %v4508_v20  ;;  %v4511_v3 = vld [vmem:[#allocation10 + $0x2d8] sm:$0xff] }
 0x220   : > { %5481 = vst [vmem:[#allocation93_spill] sm:$0xff] %v4496_v46  ;;  %1819 = vmatpush.msrb.mxu3 %v4511_v3  ;;  %v4514_v46 = vld [vmem:[#allocation10 + $0x20] sm:$0xff] }
 0x221   : > { %5482 = vst [vmem:[#allocation98_spill] sm:$0xff] %v4499_v32  ;;  %1684 = vmatpush.msra.mxu0 %v4514_v46  ;;  %v4517_v32 = vld [vmem:[#allocation10 + $0x28] sm:$0xff] }
 0x222   : > { %5483 = vst [vmem:[#allocation99_spill] sm:$0xff] %v4502_v7  ;;  %1724 = vmatpush.msra.mxu2 %v4517_v32  ;;  %v4520_v7 = vld [vmem:[#allocation10 + $0x2b0] sm:$0xff] }
 0x223   : > { %5484 = vst [vmem:[#allocation103_spill] sm:$0xff] %v4505_v12  ;;  %1780 = vmatpush.msrb.mxu1 %v4520_v7  ;;  %v4523_v12 = vld [vmem:[#allocation10 + $0x2b8] sm:$0xff] }
 0x224   : > { %5485 = vst [vmem:[#allocation104_spill] sm:$0xff] %v4508_v20  ;;  %1820 = vmatpush.msrb.mxu3 %v4523_v12  ;;  %v4526_v20 = vld [vmem:[#allocation10] sm:$0xff] }
 0x225   : > { %5486 = vst [vmem:[#allocation107_spill] sm:$0xff] %v4511_v3  ;;  %1685 = vmatpush.msra.mxu0 %v4526_v20  ;;  %v4529_v3 = vld [vmem:[#allocation10 + $0x8] sm:$0xff] }
 0x226   : > { %5487 = vst [vmem:[#allocation108_spill] sm:$0xff] %v4514_v46  ;;  %1725 = vmatpush.msra.mxu2 %v4529_v3  ;;  %v4532_v46 = vld [vmem:[#allocation10 + $0x290] sm:$0xff] }
 0x227   : > { %5488 = vst [vmem:[#allocation109_spill] sm:$0xff] %v4517_v32  ;;  %1781 = vmatpush.msrb.mxu1 %v4532_v46  ;;  %v4535_v32 = vld [vmem:[#allocation10 + $0x298] sm:$0xff] }
 0x228   : > { %5489 = vst [vmem:[#allocation82_spill] sm:$0xff] %v4520_v7  ;;  %1821 = vmatpush.msrb.mxu3 %v4535_v32  ;;  %v4538_v7 = vld [vmem:[#allocation10 + $0x1f0] sm:$0xff] }
 0x229   : > { %5490 = vst [vmem:[#allocation96_spill] sm:$0xff] %v4523_v12  ;;  %1750 = vmatpush.msrb.mxu0 %v4538_v7  ;;  %v4541_v12 = vld [vmem:[#allocation10 + $0x1f8] sm:$0xff] }
 0x22a   : > { %5491 = vst [vmem:[#allocation81_spill] sm:$0xff] %v4526_v20  ;;  %1790 = vmatpush.msrb.mxu2 %v4541_v12  ;;  %v4544_v20 = vld [vmem:[#allocation10 + $0x270] sm:$0xff] }
 0x22b   : > { %5492 = vst [vmem:[#allocation95_spill] sm:$0xff] %v4529_v3  ;;  %1782 = vmatpush.msrb.mxu1 %v4544_v20  ;;  %v4547_v3 = vld [vmem:[#allocation10 + $0x278] sm:$0xff] }
 0x22c   : > { %5493 = vst [vmem:[#allocation19_spill] sm:$0xff] %v4532_v46  ;;  %1822 = vmatpush.msrb.mxu3 %v4547_v3  ;;  %v4550_v46 = vld [vmem:[#allocation10 + $0x1d0] sm:$0xff] }
 0x22d   : > { %5494 = vst [vmem:[#allocation20_spill] sm:$0xff] %v4535_v32  ;;  %1751 = vmatpush.msrb.mxu0 %v4550_v46  ;;  %v4553_v32 = vld [vmem:[#allocation10 + $0x1d8] sm:$0xff] }
 0x22e   : > { %5495 = vst [vmem:[#allocation21_spill] sm:$0xff] %v4538_v7  ;;  %1791 = vmatpush.msrb.mxu2 %v4553_v32  ;;  %v4556_v7 = vld [vmem:[#allocation10 + $0x250] sm:$0xff] }
 0x22f   : > { %5496 = vst [vmem:[#allocation22_spill] sm:$0xff] %v4541_v12  ;;  %1783 = vmatpush.msrb.mxu1 %v4556_v7  ;;  %v4559_v12 = vld [vmem:[#allocation10 + $0x258] sm:$0xff] }
 0x230   : > { %5497 = vst [vmem:[#allocation23_spill] sm:$0xff] %v4544_v20  ;;  %1823 = vmatpush.msrb.mxu3 %v4559_v12  ;;  %v4562_v20 = vld [vmem:[#allocation10 + $0x1b0] sm:$0xff] }
 0x231   : > { %5498 = vst [vmem:[#allocation24_spill] sm:$0xff] %v4547_v3  ;;  %1752 = vmatpush.msrb.mxu0 %v4562_v20  ;;  %v4565_v3 = vld [vmem:[#allocation10 + $0x1b8] sm:$0xff] }
 0x232   : > { %5499 = vst [vmem:[#allocation25_spill] sm:$0xff] %v4550_v46  ;;  %1792 = vmatpush.msrb.mxu2 %v4565_v3  ;;  %v4568_v46 = vld [vmem:[#allocation10 + $0x230] sm:$0xff] }
 0x233   : > { %5500 = vst [vmem:[#allocation26_spill] sm:$0xff] %v4553_v32  ;;  %1784 = vmatpush.msrb.mxu1 %v4568_v46  ;;  %v4571_v32 = vld [vmem:[#allocation10 + $0x238] sm:$0xff] }
 0x234   : > { %5501 = vst [vmem:[#allocation116_spill] sm:$0xff] %v4556_v7  ;;  %1824 = vmatpush.msrb.mxu3 %v4571_v32  ;;  %v4574_v7 = vld [vmem:[#allocation10 + $0x190] sm:$0xff] }
 0x235   : > { %5502 = vst [vmem:[#allocation117_spill] sm:$0xff] %v4559_v12  ;;  %1753 = vmatpush.msrb.mxu0 %v4574_v7  ;;  %v4577_v12 = vld [vmem:[#allocation10 + $0x198] sm:$0xff] }
 0x236   : > { %5503 = vst [vmem:[#allocation118_spill] sm:$0xff] %v4562_v20  ;;  %1793 = vmatpush.msrb.mxu2 %v4577_v12  ;;  %v4580_v20 = vld [vmem:[#allocation10 + $0x210] sm:$0xff] }
 0x237   : > { %5504 = vst [vmem:[#allocation119_spill] sm:$0xff] %v4565_v3  ;;  %1785 = vmatpush.msrb.mxu1 %v4580_v20  ;;  %v4583_v3 = vld [vmem:[#allocation10 + $0x218] sm:$0xff]  ;;  %v1370_v29 = vpop.f32.mrf.mxu3 }
 0x238   : > { %5505 = vst [vmem:[#allocation120_spill] sm:$0xff] %v4568_v46  ;;  %1825 = vmatpush.msrb.mxu3 %v4583_v3  ;;  %v4586_v46 = vld [vmem:[#allocation10 + $0x170] sm:$0xff] }
 0x239   : > { %5506 = vst [vmem:[#allocation121_spill] sm:$0xff] %v4571_v32  ;;  %1754 = vmatpush.msrb.mxu0 %v4586_v46  ;;  %v4589_v32 = vld [vmem:[#allocation10 + $0x178] sm:$0xff] }
 0x23a   : > { %5507 = vst [vmem:[#allocation122_spill] sm:$0xff] %v4574_v7  ;;  %1794 = vmatpush.msrb.mxu2 %v4589_v32  ;;  %v4592_v7 = vld [vmem:[#allocation10 + $0x150] sm:$0xff] }
 0x23b   : > { %5508 = vst [vmem:[#allocation123_spill] sm:$0xff] %v4577_v12  ;;  %1755 = vmatpush.msrb.mxu0 %v4592_v7  ;;  %v4595_v12 = vld [vmem:[#allocation10 + $0x158] sm:$0xff] }
 0x23c   : > { %5509 = vst [vmem:[#allocation124_spill] sm:$0xff] %v4580_v20  ;;  %1795 = vmatpush.msrb.mxu2 %v4595_v12  ;;  %v4598_v20 = vld [vmem:[#allocation10 + $0x130] sm:$0xff] }
 0x23d   : > { %5510 = vst [vmem:[#allocation125_spill] sm:$0xff] %v4583_v3  ;;  %1756 = vmatpush.msrb.mxu0 %v4598_v20  ;;  %v4601_v3 = vld [vmem:[#allocation10 + $0x138] sm:$0xff] }
 0x23e   : > { %5511 = vst [vmem:[#allocation126_spill] sm:$0xff] %v4586_v46  ;;  %1796 = vmatpush.msrb.mxu2 %v4601_v3  ;;  %v4604_v46 = vld [vmem:[#allocation10 + $0x110] sm:$0xff] }
 0x23f   : > { %5512 = vst [vmem:[#allocation127_spill] sm:$0xff] %v4589_v32  ;;  %1757 = vmatpush.msrb.mxu0 %v4604_v46  ;;  %v4607_v32 = vld [vmem:[#allocation10 + $0x118] sm:$0xff] }
 0x240   : > { %5513 = vst [vmem:[#allocation128_spill] sm:$0xff] %v4592_v7  ;;  %1797 = vmatpush.msrb.mxu2 %v4607_v32  ;;  %v4610_v7 = vld [vmem:[#allocation10 + $0xf0] sm:$0xff] }
 0x241   : > { %5514 = vst [vmem:[#allocation129_spill] sm:$0xff] %v4595_v12  ;;  %1758 = vmatpush.msrb.mxu0 %v4610_v7  ;;  %v4613_v12 = vld [vmem:[#allocation10 + $0xf8] sm:$0xff] }
 0x242   : > { %5515 = vst [vmem:[#allocation130_spill] sm:$0xff] %v4598_v20  ;;  %1798 = vmatpush.msrb.mxu2 %v4613_v12  ;;  %v4616_v20 = vld [vmem:[#allocation10 + $0xd0] sm:$0xff] }
 0x243   : > { %5516 = vst [vmem:[#allocation131_spill] sm:$0xff] %v4601_v3  ;;  %1759 = vmatpush.msrb.mxu0 %v4616_v20  ;;  %v4619_v3 = vld [vmem:[#allocation10 + $0xd8] sm:$0xff] }
 0x244   : > { %5517 = vst [vmem:[#allocation132_spill] sm:$0xff] %v4604_v46  ;;  %1799 = vmatpush.msrb.mxu2 %v4619_v3  ;;  %v4622_v46 = vld [vmem:[#allocation10 + $0xb0] sm:$0xff] }
 0x245   : > { %5518 = vst [vmem:[#allocation133_spill] sm:$0xff] %v4607_v32  ;;  %1760 = vmatpush.msrb.mxu0 %v4622_v46  ;;  %v4625_v32 = vld [vmem:[#allocation10 + $0xb8] sm:$0xff] }
 0x246   : > { %5519 = vst [vmem:[#allocation134_spill] sm:$0xff] %v4610_v7  ;;  %1800 = vmatpush.msrb.mxu2 %v4625_v32  ;;  %v4628_v7 = vld [vmem:[#allocation10 + $0x90] sm:$0xff] }
 0x247   : > { %5520 = vst [vmem:[#allocation135_spill] sm:$0xff] %v4613_v12  ;;  %1761 = vmatpush.msrb.mxu0 %v4628_v7  ;;  %v4631_v12 = vld [vmem:[#allocation10 + $0x98] sm:$0xff] }
 0x248   : > { %5521 = vst [vmem:[#allocation136_spill] sm:$0xff] %v4616_v20  ;;  %1801 = vmatpush.msrb.mxu2 %v4631_v12  ;;  %v4634_v20 = vld [vmem:[#allocation10 + $0x70] sm:$0xff] }
 0x249   : > { %5522 = vst [vmem:[#allocation137_spill] sm:$0xff] %v4619_v3  ;;  %1762 = vmatpush.msrb.mxu0 %v4634_v20  ;;  %v4637_v3 = vld [vmem:[#allocation10 + $0x78] sm:$0xff]  ;;  %v1310_v28 = vpop.f32.mrf.mxu0 }
 0x24a   : > { %5523 = vst [vmem:[#allocation138_spill] sm:$0xff] %v4622_v46  ;;  %1802 = vmatpush.msrb.mxu2 %v4637_v3  ;;  %v4640_v46 = vld [vmem:[#allocation10 + $0x50] sm:$0xff] }
 0x24b   : > { %5524 = vst [vmem:[#allocation139_spill] sm:$0xff] %v4625_v32  ;;  %1763 = vmatpush.msrb.mxu0 %v4640_v46  ;;  %v4643_v32 = vld [vmem:[#allocation10 + $0x58] sm:$0xff] }
 0x24c   : > { %5525 = vst [vmem:[#allocation140_spill] sm:$0xff] %v4628_v7  ;;  %1803 = vmatpush.msrb.mxu2 %v4643_v32  ;;  %v4646_v7 = vld [vmem:[#allocation10 + $0x30] sm:$0xff] }
 0x24d   : > { %5526 = vst [vmem:[#allocation141_spill] sm:$0xff] %v4631_v12  ;;  %1764 = vmatpush.msrb.mxu0 %v4646_v7  ;;  %v4649_v12 = vld [vmem:[#allocation10 + $0x38] sm:$0xff] }
 0x24e   : > { %5527 = vst [vmem:[#allocation142_spill] sm:$0xff] %v4634_v20  ;;  %1804 = vmatpush.msrb.mxu2 %v4649_v12  ;;  %v4652_v20 = vld [vmem:[#allocation10 + $0x10] sm:$0xff] }
 0x24f   : > { %5528 = vst [vmem:[#allocation143_spill] sm:$0xff] %v4637_v3  ;;  %1765 = vmatpush.msrb.mxu0 %v4652_v20  ;;  %v4655_v3 = vld [vmem:[#allocation10 + $0x18] sm:$0xff]  ;;  %v1350_v51 = vpop.f32.mrf.mxu2 }
 0x250   : > { %5529 = vst [vmem:[#allocation144_spill] sm:$0xff] %v4640_v46  ;;  %1805 = vmatpush.msrb.mxu2 %v4655_v3  ;;  %v1330_v46 = vpop.f32.mrf.mxu1 }
 0x251   : > { %5530 = vst [vmem:[#allocation145_spill] sm:$0xff] %v4643_v32  ;;  %v1311_v32 = vadd.f32 %v1310_v28, %v4053_v5 }
 0x252   : > { %5531 = vst [vmem:[#allocation146_spill] sm:$0xff] %v4646_v7 }
 0x253   : > { %5532 = vst [vmem:[#allocation147_spill] sm:$0xff] %v4649_v12  ;;  %v1331_v41 = vadd.f32 %v1330_v46, %v1311_v32  ;;  %v1351_v12 = vadd.f32 %v1350_v51, %v4059_v17 }
 0x254   : > { %5533 = vst [vmem:[#allocation148_spill] sm:$0xff] %v4652_v20  ;;  %v1450_v20 = vpop.f32.mrf.mxu3 }
 0x255   : > { %5534 = vst [vmem:[#allocation149_spill] sm:$0xff] %v4655_v3  ;;  %v2462_v7 = vmul.f32 -1.442695, %v1331_v41  ;;  %v1371_v30 = vadd.f32 %v1370_v29, %v1351_v12  ;;  %v1390_v41 = vpop.f32.mrf.mxu0 }
 0x257   : > { %2597 = vpow2.f32 %v2462_v7  ;;  %v2463_v4 = vmul.f32 -1.442695, %v1371_v30  ;;  %v1391_v30 = vadd.f32 %v1390_v41, %v4072_v60 }
 0x258   : > { %v1410_v10 = vpop.f32.mrf.mxu1  ;;  %v1430_v48 = vpop.f32.mrf.mxu2 }
 0x259   : > { %2599 = vpow2.f32 %v2463_v4  ;;  %v1431_v28 = vadd.f32 %v1430_v48, %v4066_v14  ;;  %v5536_v4 = vld [vmem:[#allocation111_spill] sm:$0xff] }
 0x25b   : > { %v1451_v46 = vadd.f32 %v1450_v20, %v1431_v28 }
 0x25c   : > { %v1600_v17 = vpop.f32.mrf.mxu3 }
 0x25d   : > { %v2598_v22 = vpop.eup %2597  ;;  %v2464_v51 = vmul.f32 -1.442695, %v1451_v46 }
 0x25e   : > { %v1456_v3 = vadd.f32 1.0, %v2598_v22  ;;  %v1606_v22 = vadd.f32 %v1600_v17, %v5536_v4  ;;  %v5539_v4 = vld [vmem:[#allocation101_spill] sm:$0xff] }
 0x25f   : > { %v2600_v32 = vpop.eup %2599 }
 0x260   : > { %v1560_v15 = vpop.f32.mrf.mxu1  ;;  %2601 = vrcp.f32 %v1456_v3  ;;  %v1475_v7 = vadd.f32 1.0, %v2600_v32  ;;  %v2467_v14 = vmul.f32 -1.442695, %v1606_v22  ;;  %v1468_v32 = vand.u32 2147483648, %v1456_v3 }
 0x261   : > { %v1604_v38 = vadd.f32 %v1560_v15, %v5535_v40  ;;  %vm1462_vm7 = vweird.f32 %v1456_v3  ;;  %v1466_v41 = vand.u32 2147483647, %v1456_v3 }
 0x262   : > { %v1487_v17 = vand.u32 2147483648, %v1475_v7  ;;  %vm1481_vm10 = vweird.f32 %v1475_v7 }
 0x263   : > { %v2466_v5 = vmul.f32 -1.442695, %v1604_v38  ;;  %v1411_v38 = vadd.f32 %v1410_v10, %v1391_v30  ;;  %v1485_v10 = vand.u32 2147483647, %v1475_v7  ;;  %vm1467_vm11 = vcmp.eq.f32.partialorder %v1466_v41, 8.507059e+37 }
 0x265   : > { %2603 = vpow2.f32 %v2466_v5  ;;  %vm1486_vm13 = vcmp.eq.f32.partialorder %v1485_v10, 8.507059e+37 }
 0x266   : > { %v2602_v29 = vpop.eup %2601  ;;  %2605 = vrcp.f32 %v1475_v7 }
 0x267   : > { %v1458_v40 = vmul.f32 %v2602_v29, %v1456_v3  ;;  %2607 = vpow2.f32 %v2464_v51  ;;  %vm1463_vm6 = vweird.f32 %v2602_v29 }
 0x268   : > { %2609 = vtanh.f32 %v1411_v38  ;;  %vm4666_vm8 = vmor %vm1462_vm7, %vm1463_vm6 }
 0x269   : > { %v1459_v15 = vsub.f32 1.0, %v1458_v40  ;;  %2611 = vpow2.f32 %v2467_v14 }
 0x26a   : > { %v1540_v40 = vpop.f32.mrf.mxu0 }
 0x26b   : > { %v2604_v12 = vpop.eup %2603  ;;  %v1460_v16 = vmul.f32 %v2602_v29, %v1459_v15  ;;  %v1603_v22 = vadd.f32 %v1540_v40, %v5539_v4 }
 0x26c   : > { %v2606_v48 = vpop.eup %2605  ;;  %v4664_v5 = vadd.f32 1.0, %v2604_v12  ;;  %v1488_v12 = vor.u32 1.1754944e-38, %v1487_v17 }
 0x26d   : > { %v2608_v39 = vpop.eup %2607  ;;  %v1477_v20 = vmul.f32 %v2606_v48, %v1475_v7  ;;  %v1461_v28 = vadd.f32 %v2602_v29, %v1460_v16  ;;  %vm1482_vm9 = vweird.f32 %v2606_v48  ;;  %v2465_v14 = vmul.f32 -1.442695, %v1603_v22 }
 0x26e   : > { %v1495_v46 = vadd.f32 1.0, %v2608_v39  ;;  %v1469_v39 = vor.u32 1.1754944e-38, %v1468_v32  ;;  %v2610_v15 = vpop.eup %2609  ;;  %vm1483_vm12 = vmor %vm1481_vm10, %vm1482_vm9  ;;  %vm1635_vm3 = vweird.f32 %v4664_v5 }
 0x26f   : > { %v1478_v60 = vsub.f32 1.0, %v1477_v20  ;;  %v1465_v16 = vsel %vm4666_vm8, %v2602_v29, %v1461_v28  ;;  %v2612_v20 = vpop.eup %2611 }
 0x270   : > { %2613 = vrcp.f32 %v1495_v46  ;;  %v1470_v38 = vsel %vm1467_vm11, %v1469_v39, %v1465_v16  ;;  %v1507_v10 = vand.u32 2147483648, %v1495_v46  ;;  %v1505_v39 = vand.u32 2147483647, %v1495_v46 }
 0x271   : > { %v1479_v30 = vmul.f32 %v2606_v48, %v1478_v60  ;;  %2615 = vrcp.f32 %v4664_v5  ;;  %v1512_v32 = vmul.f32 %v2610_v15, %v1470_v38  ;;  %vm1501_vm15 = vweird.f32 %v1495_v46 }
 0x272   : > { %2617 = vpow2.f32 %v2465_v14  ;;  %vm1506_vm1 = vcmp.eq.f32.partialorder %v1505_v39, 8.507059e+37 }
 0x273   : > { %v1480_v3 = vadd.f32 %v2606_v48, %v1479_v30  ;;  %v4681_v30 = vadd.f32 1.0, %v2612_v20  ;;  %v1580_v20 = vpop.f32.mrf.mxu2 }
 0x275   : > { %v1484_v60 = vsel %vm1483_vm12, %v2606_v48, %v1480_v3  ;;  %v1508_v3 = vor.u32 1.1754944e-38, %v1507_v10  ;;  %vm1655_vm11 = vweird.f32 %v4681_v30 }
 0x276   : > { %v2614_v8 = vpop.eup %2613  ;;  %v1489_v51 = vsel %vm1486_vm13, %v1488_v12, %v1484_v60 }
 0x277   : > { %v4674_v29 = vpop.eup %2615  ;;  %v1511_v28 = vmul.f32 %v1489_v51, %v4092_v63  ;;  %v1497_v40 = vmul.f32 %v2614_v8, %v1495_v46  ;;  %vm1502_vm14 = vweird.f32 %v2614_v8 }
 0x278   : > { %v1631_v17 = vmul.f32 %v4674_v29, %v4664_v5  ;;  %v2618_v16 = vpop.eup %2617  ;;  %vm1503_vm0 = vmor %vm1501_vm15, %vm1502_vm14  ;;  %vm1636_vm2 = vweird.f32 %v4674_v29 }
 0x279   : > { %v4677_v7 = vadd.f32 %v1512_v32, %v1511_v28  ;;  %v1498_v41 = vsub.f32 1.0, %v1497_v40  ;;  %v1610_v4 = vadd.f32 1.0, %v2618_v16  ;;  %v5540_v32 = vld [vmem:[#allocation110_spill] sm:$0xff]  ;;  %vm4700_vm4 = vmor %vm1635_vm3, %vm1636_vm2 }
 0x27a   : > { %v1632_v63 = vsub.f32 1.0, %v1631_v17  ;;  %v1605_v40 = vadd.f32 %v1580_v20, %v5540_v32  ;;  %v5548_v20 = vld [vmem:[#allocation32_spill] sm:$0xff]  ;;  %v5550_v32 = vld [vmem:[#allocation34_spill] sm:$0xff] }
 0x27b   : > { %2619 = vtanh.f32 %v4677_v7  ;;  %v1499_v48 = vmul.f32 %v2614_v8, %v1498_v41  ;;  %v1641_v41 = vand.u32 2147483648, %v4664_v5  ;;  %v1622_v10 = vand.u32 2147483648, %v1610_v4 }
 0x27c   : > { %2621 = vrcp.f32 %v4681_v30  ;;  %v1633_v14 = vmul.f32 %v4674_v29, %v1632_v63  ;;  %vm1616_vm6 = vweird.f32 %v1610_v4 }
 0x27d   : > { %v1500_v22 = vadd.f32 %v2614_v8, %v1499_v48  ;;  %2623 = vrcp.f32 %v1610_v4  ;;  %v1642_v39 = vor.u32 1.1754944e-38, %v1641_v41  ;;  %v5552_v41 = vld [vmem:[#allocation36_spill] sm:$0xff] }
 0x27e   : > { %v1634_v46 = vadd.f32 %v4674_v29, %v1633_v14  ;;  %2625 = vtanh.f32 %v1605_v40  ;;  %v5547_v14 = vld [vmem:[#allocation31_spill] sm:$0xff]  ;;  %v2892_v40 = vld [vmem:[#allocation7 + $0x90] sm:$0xff] }
 0x27f   : > { %v1504_v15 = vsel %vm1503_vm0, %v2614_v8, %v1500_v22 }
 0x280   : > { %v1509_v38 = vsel %vm1506_vm1, %v1508_v3, %v1504_v15  ;;  %v5544_v15 = vld [vmem:[#allocation28_spill] sm:$0xff] }
 0x281   : > { %v2620_v12 = vpop.eup %2619 }
 0x282   : > { %v1515_v60 = vmul.f32 %v2620_v12, %v1509_v38  ;;  %v4686_v51 = vpop.eup %2621  ;;  %v5545_v12 = vld [vmem:[#allocation29_spill] sm:$0xff]  ;;  %v5546_v38 = vld [vmem:[#allocation30_spill] sm:$0xff] }
 0x283   : > { %v2624_v28 = vpop.eup %2623  ;;  %v1651_v17 = vmul.f32 %v4686_v51, %v4681_v30  ;;  %vm1656_vm10 = vweird.f32 %v4686_v51 }
 0x284   : > { %1706 = vmatmul.f32.vlgmr.msra.gmra.mxu1 %v1515_v60  ;;  %1746 = vmatmul.f32.vlgmr.msra.gmra.mxu3 %v1515_v60  ;;  %v1612_v8 = vmul.f32 %v2624_v28, %v1610_v4  ;;  %vm1617_vm5 = vweird.f32 %v2624_v28  ;;  %vm1657_vm12 = vmor %vm1655_vm11, %vm1656_vm10 }
 0x285   : > { %1920 = vmatpush.msra.mxu1 %v4109_v53  ;;  %1960 = vmatpush.msra.mxu3 %v4112_v55  ;;  %v1639_v53 = vand.u32 2147483647, %v4664_v5  ;;  %v1652_v22 = vsub.f32 1.0, %v1651_v17  ;;  %vm1618_vm8 = vmor %vm1616_vm6, %vm1617_vm5  ;;  %v2894_v17 = vld [vmem:[#allocation7 + $0x70] sm:$0xff]  ;;  %v5554_v55 = vld [vmem:[#allocation40_spill] sm:$0xff] }
 0x286   : > { %v1613_v48 = vsub.f32 1.0, %v1612_v8  ;;  %v5551_v8 = vld [vmem:[#allocation35_spill] sm:$0xff] }
 0x287   : > { %1921 = vmatpush.msra.mxu1 %v4122_v27  ;;  %1961 = vmatpush.msra.mxu3 %v4125_v43  ;;  %v1620_v27 = vand.u32 2147483647, %v1610_v4  ;;  %v1638_v43 = vsel %vm4700_vm4, %v4674_v29, %v1634_v46  ;;  %vm1640_vm7 = vcmp.eq.f32.partialorder %v1639_v53, 8.507059e+37  ;;  %v2626_v29 = vpop.eup %2625  ;;  %v1653_v3 = vmul.f32 %v4686_v51, %v1652_v22  ;;  %v2893_v46 = vld [vmem:[#allocation7 + $0x60] sm:$0xff]  ;;  %v5557_v22 = vld [vmem:[#allocation45_spill] sm:$0xff] }
 0x288   : > { %v1614_v16 = vmul.f32 %v2624_v28, %v1613_v48  ;;  %v5553_v48 = vld [vmem:[#allocation37_spill] sm:$0xff]  ;;  %v2895_v53 = vld [vmem:[#allocation7 + $0x40] sm:$0xff] }
 0x289   : > { %1922 = vmatpush.msra.mxu1 %v4132_v9  ;;  %1962 = vmatpush.msra.mxu3 %v4135_v11  ;;  %v1623_v9 = vor.u32 1.1754944e-38, %v1622_v10  ;;  %v1643_v11 = vsel %vm1640_vm7, %v1642_v39, %v1638_v43  ;;  %vm1621_vm9 = vcmp.eq.f32.partialorder %v1620_v27, 8.507059e+37  ;;  %v2896_v10 = vld [vmem:[#allocation7 + $0x50] sm:$0xff]  ;;  %v2897_v27 = vld [vmem:[#allocation7 + $0x20] sm:$0xff] }
 0x28a   : > { %v1615_v5 = vadd.f32 %v2624_v28, %v1614_v16  ;;  %v5555_v16 = vld [vmem:[#allocation41_spill] sm:$0xff]  ;;  %v5556_v43 = vld [vmem:[#allocation44_spill] sm:$0xff]  ;;  %v2898_v39 = vld [vmem:[#allocation7 + $0x30] sm:$0xff] }
 0x28b   : > { %1923 = vmatpush.msra.mxu1 %v4139_v54  ;;  %1963 = vmatpush.msra.mxu3 %v4142_v62  ;;  %v1665_v62 = vmul.f32 %v1643_v11, %v4159_v50  ;;  %v5560_v11 = vld [vmem:[#allocation52_spill] sm:$0xff] }
 0x28c   : > { %1786 = vmatmul.f32.vlgmr.msrb.gmra.mxu1 %v1515_v60  ;;  %1826 = vmatmul.f32.vlgmr.msrb.gmra.mxu3 %v1515_v60  ;;  %v1619_v63 = vsel %vm1618_vm8, %v2624_v28, %v1615_v5  ;;  %v2890_v60 = vld [vmem:[#allocation7 + $0xb0] sm:$0xff]  ;;  %v2891_v28 = vld [vmem:[#allocation7 + $0x80] sm:$0xff] }
 0x28d   : > { %1924 = vmatpush.msra.mxu1 %v4146_v44  ;;  %1964 = vmatpush.msra.mxu3 %v4149_v34  ;;  %v1624_v54 = vsel %vm1621_vm9, %v1623_v9, %v1619_v63  ;;  %v1654_v34 = vadd.f32 %v4686_v51, %v1653_v3  ;;  %v5558_v5 = vld [vmem:[#allocation48_spill] sm:$0xff]  ;;  %v5559_v9 = vld [vmem:[#allocation49_spill] sm:$0xff] }
 0x28e   : > { %v1666_v4 = vmul.f32 %v2626_v29, %v1624_v54  ;;  %v5561_v63 = vld [vmem:[#allocation53_spill] sm:$0xff]  ;;  %v5562_v29 = vld [vmem:[#allocation56_spill] sm:$0xff] }
 0x28f   : > { %1925 = vmatpush.msra.mxu1 %v4153_v47  ;;  %1965 = vmatpush.msra.mxu3 %v4156_v36  ;;  %v1661_v47 = vand.u32 2147483648, %v4681_v30  ;;  %v1659_v36 = vand.u32 2147483647, %v4681_v30  ;;  %v1658_v50 = vsel %vm1657_vm12, %v4686_v51, %v1654_v34  ;;  %v5543_v30 = vld [vmem:[#allocation27_spill] sm:$0xff]  ;;  %v5549_v51 = vld [vmem:[#allocation33_spill] sm:$0xff]  ;;  %v5564_v54 = vld [vmem:[#allocation60_spill] sm:$0xff] }
 0x290   : > { %v4719_v44 = vadd.f32 %v1666_v4, %v1665_v62  ;;  %v5563_v3 = vld [vmem:[#allocation57_spill] sm:$0xff]  ;;  %v5566_v4 = vld [vmem:[#allocation64_spill] sm:$0xff] }
 0x291   : > { %1926 = vmatpush.msra.mxu1 %v4163_v49  ;;  %1966 = vmatpush.msra.mxu3 %v4166_v13  ;;  %v1662_v49 = vor.u32 1.1754944e-38, %v1661_v47  ;;  %vm1660_vm13 = vcmp.eq.f32.partialorder %v1659_v36, 8.507059e+37  ;;  %v5565_v62 = vld [vmem:[#allocation61_spill] sm:$0xff]  ;;  %v5568_v47 = vld [vmem:[#allocation68_spill] sm:$0xff] }
 0x292   : > { %2627 = vtanh.f32 %v4719_v44  ;;  %v5567_v34 = vld [vmem:[#allocation65_spill] sm:$0xff] }
 0x293   : > { %1927 = vmatpush.msra.mxu1 %v4173_v45  ;;  %1967 = vmatpush.msra.mxu3 %v4176_v24  ;;  %v1663_v45 = vsel %vm1660_vm13, %v1662_v49, %v1658_v50  ;;  %v5569_v36 = vld [vmem:[#allocation69_spill] sm:$0xff]  ;;  %v5570_v50 = vld [vmem:[#allocation72_spill] sm:$0xff] }
 0x294   : > { %v5571_v49 = vld [vmem:[#allocation73_spill] sm:$0xff] }
 0x295   : > { %1928 = vmatpush.msra.mxu1 %v4180_v57  ;;  %1968 = vmatpush.msra.mxu3 %v4183_v31  ;;  %v2869_v57 = vld [vmem:[#allocation7 + $0x1e0] sm:$0xff]  ;;  %v2870_v31 = vld [vmem:[#allocation7 + $0x1f0] sm:$0xff] }
 0x297   : > { %1929 = vmatpush.msra.mxu1 %v4186_v2  ;;  %1969 = vmatpush.msra.mxu3 %v4189_v26  ;;  %v2871_v2 = vld [vmem:[#allocation7 + $0x1c0] sm:$0xff]  ;;  %v2872_v26 = vld [vmem:[#allocation7 + $0x1d0] sm:$0xff] }
 0x298   : > { %v2628_v13 = vpop.eup %2627 }
 0x299   : > { %1930 = vmatpush.msra.mxu1 %v4194_v56  ;;  %1970 = vmatpush.msra.mxu3 %v4197_v19  ;;  %v4736_v24 = vmul.f32 %v2628_v13, %v1663_v45  ;;  %v2873_v56 = vld [vmem:[#allocation7 + $0x1a0] sm:$0xff]  ;;  %v2874_v19 = vld [vmem:[#allocation7 + $0x1b0] sm:$0xff]  ;;  %v5573_v45 = vld [vmem:[#allocation77_spill] sm:$0xff] }
 0x29a   : > { %v5572_v13 = vld [vmem:[#allocation76_spill] sm:$0xff] }
 0x29b   : > { %1931 = vmatpush.msra.mxu1 %v4200_v58  ;;  %1971 = vmatpush.msra.mxu3 %v4203_v21  ;;  %v2875_v58 = vld [vmem:[#allocation7 + $0x180] sm:$0xff]  ;;  %v2876_v21 = vld [vmem:[#allocation7 + $0x190] sm:$0xff] }
 0x29c   : > { %1686 = vmatmul.f32.vlgmr.msra.gmra.mxu0 %v4736_v24  ;;  %1726 = vmatmul.f32.vlgmr.msra.gmra.mxu2 %v4736_v24 }
 0x29d   : > { %1900 = vmatpush.msra.mxu0 %v2869_v57  ;;  %1940 = vmatpush.msra.mxu2 %v2870_v31  ;;  %v5575_v57 = vld [vmem:[#allocation83_spill] sm:$0xff]  ;;  %v5576_v31 = vld [vmem:[#allocation17_spill] sm:$0xff] }
 0x29e   : > { %1932 = vmatpush.msra.mxu1 %v4210_v23  ;;  %1972 = vmatpush.msra.mxu3 %v4213_v18  ;;  %v2877_v23 = vld [vmem:[#allocation7 + $0x160] sm:$0xff]  ;;  %v2878_v18 = vld [vmem:[#allocation7 + $0x170] sm:$0xff] }
 0x29f   : > { %1901 = vmatpush.msra.mxu0 %v2871_v2  ;;  %1941 = vmatpush.msra.mxu2 %v2872_v26  ;;  %v5577_v2 = vld [vmem:[#allocation86_spill] sm:$0xff] }
 0x2a0   : > { %1933 = vmatpush.msra.mxu1 %v4218_v1  ;;  %1973 = vmatpush.msra.mxu3 %v4221_v52  ;;  %v2879_v1 = vld [vmem:[#allocation7 + $0x140] sm:$0xff]  ;;  %v2880_v52 = vld [vmem:[#allocation7 + $0x150] sm:$0xff] }
 0x2a1   : > { %1902 = vmatpush.msra.mxu0 %v2873_v56  ;;  %1942 = vmatpush.msra.mxu2 %v2874_v19  ;;  %v5578_v26 = vld [vmem:[#allocation18_spill] sm:$0xff]  ;;  %v5580_v19 = vld [vmem:[#allocation39_spill] sm:$0xff] }
 0x2a2   : > { %1934 = vmatpush.msra.mxu1 %v4226_v25  ;;  %1974 = vmatpush.msra.mxu3 %v4229_v42  ;;  %v2881_v25 = vld [vmem:[#allocation7 + $0x120] sm:$0xff]  ;;  %v2882_v42 = vld [vmem:[#allocation7 + $0x130] sm:$0xff] }
 0x2a3   : > { %1903 = vmatpush.msra.mxu0 %v2875_v58  ;;  %1943 = vmatpush.msra.mxu2 %v2876_v21  ;;  %v5579_v56 = vld [vmem:[#allocation38_spill] sm:$0xff]  ;;  %v5581_v58 = vld [vmem:[#allocation87_spill] sm:$0xff] }
 0x2a4   : > { %1935 = vmatpush.msra.mxu1 %v4234_v33  ;;  %1975 = vmatpush.msra.mxu3 %v4237_v59  ;;  %v2883_v33 = vld [vmem:[#allocation7 + $0x100] sm:$0xff]  ;;  %v2884_v59 = vld [vmem:[#allocation7 + $0x110] sm:$0xff] }
 0x2a5   : > { %1766 = vmatmul.f32.vlgmr.msrb.gmra.mxu0 %v4736_v24  ;;  %1806 = vmatmul.f32.vlgmr.msrb.gmra.mxu2 %v4736_v24  ;;  %v5582_v21 = vld [vmem:[#allocation42_spill] sm:$0xff] }
 0x2a6   : > { %1904 = vmatpush.msra.mxu0 %v2877_v23  ;;  %1936 = vmatmul.f32.vlgmr.msra.gmra.mxu1 %v4736_v24  ;;  %v5583_v23 = vld [vmem:[#allocation90_spill] sm:$0xff] }
 0x2a7   : > { %1944 = vmatpush.msra.mxu2 %v2878_v18  ;;  %1976 = vmatmul.f32.vlgmr.msra.gmra.mxu3 %v4736_v24  ;;  %v5584_v18 = vld [vmem:[#allocation43_spill] sm:$0xff] }
 0x2a8   : > { %1905 = vmatpush.msra.mxu0 %v2879_v1  ;;  %2067 = vmatpush.msrb.mxu1 %v4247_v61  ;;  %v2885_v61 = vld [vmem:[#allocation7 + $0xe0] sm:$0xff]  ;;  %v5585_v1 = vld [vmem:[#allocation91_spill] sm:$0xff] }
 0x2a9   : > { %1945 = vmatpush.msra.mxu2 %v2880_v52  ;;  %2107 = vmatpush.msrb.mxu3 %v4251_v0  ;;  %v2886_v0 = vld [vmem:[#allocation7 + $0xf0] sm:$0xff] }
 0x2aa   : > { %1906 = vmatpush.msra.mxu0 %v2881_v25  ;;  %2068 = vmatpush.msrb.mxu1 %v4255_v35  ;;  %v2887_v35 = vld [vmem:[#allocation7 + $0xc0] sm:$0xff]  ;;  %v5586_v52 = vld [vmem:[#allocation46_spill] sm:$0xff] }
 0x2ab   : > { %1946 = vmatpush.msra.mxu2 %v2882_v42  ;;  %2108 = vmatpush.msrb.mxu3 %v4259_v37  ;;  %v2888_v37 = vld [vmem:[#allocation7 + $0xd0] sm:$0xff]  ;;  %v5588_v42 = vld [vmem:[#allocation47_spill] sm:$0xff] }
 0x2ac   : > { %1907 = vmatpush.msra.mxu0 %v2883_v33  ;;  %2069 = vmatpush.msrb.mxu1 %v4263_v6  ;;  %v2889_v6 = vld [vmem:[#allocation7 + $0xa0] sm:$0xff]  ;;  %v5587_v25 = vld [vmem:[#allocation94_spill] sm:$0xff]  ;;  %v5589_v33 = vld [vmem:[#allocation97_spill] sm:$0xff] }
 0x2ad   : > { %1947 = vmatpush.msra.mxu2 %v2884_v59  ;;  %2109 = vmatpush.msrb.mxu3 %v5543_v30  ;;  %v5590_v59 = vld [vmem:[#allocation50_spill] sm:$0xff]  ;;  %v5591_v30 = vld [vmem:[#allocation51_spill] sm:$0xff] }
 0x2ae   : > { %1908 = vmatpush.msra.mxu0 %v2885_v61  ;;  %2070 = vmatpush.msrb.mxu1 %v5544_v15  ;;  %v5592_v61 = vld [vmem:[#allocation100_spill] sm:$0xff]  ;;  %v5593_v15 = vld [vmem:[#allocation54_spill] sm:$0xff] }
 0x2af   : > { %1948 = vmatpush.msra.mxu2 %v2886_v0  ;;  %2110 = vmatpush.msrb.mxu3 %v5545_v12  ;;  %v5594_v0 = vld [vmem:[#allocation105_spill] sm:$0xff]  ;;  %v5595_v12 = vld [vmem:[#allocation55_spill] sm:$0xff] }
 0x2b0   : > { %1909 = vmatpush.msra.mxu0 %v2887_v35  ;;  %2071 = vmatpush.msrb.mxu1 %v5546_v38  ;;  %v5596_v35 = vld [vmem:[#allocation106_spill] sm:$0xff] }
 0x2b1   : > { %1949 = vmatpush.msra.mxu2 %v2888_v37  ;;  %2111 = vmatpush.msrb.mxu3 %v5547_v14  ;;  %v5597_v38 = vld [vmem:[#allocation58_spill] sm:$0xff]  ;;  %v5598_v37 = vld [vmem:[#allocation59_spill] sm:$0xff] }
 0x2b2   : > { %1910 = vmatpush.msra.mxu0 %v2889_v6  ;;  %2072 = vmatpush.msrb.mxu1 %v5548_v20  ;;  %v5599_v14 = vld [vmem:[#allocation62_spill] sm:$0xff]  ;;  %v5600_v6 = vld [vmem:[#allocation63_spill] sm:$0xff] }
 0x2b3   : > { %1950 = vmatpush.msra.mxu2 %v2890_v60  ;;  %2112 = vmatpush.msrb.mxu3 %v5549_v51  ;;  %v5601_v20 = vld [vmem:[#allocation66_spill] sm:$0xff]  ;;  %v5602_v60 = vld [vmem:[#allocation67_spill] sm:$0xff] }
 0x2b4   : > { %1911 = vmatpush.msra.mxu0 %v2891_v28  ;;  %2073 = vmatpush.msrb.mxu1 %v5550_v32  ;;  %v5603_v51 = vld [vmem:[#allocation70_spill] sm:$0xff]  ;;  %v5604_v28 = vld [vmem:[#allocation71_spill] sm:$0xff] }
 0x2b5   : > { %1951 = vmatpush.msra.mxu2 %v2892_v40  ;;  %2113 = vmatpush.msrb.mxu3 %v5551_v8  ;;  %v5605_v32 = vld [vmem:[#allocation74_spill] sm:$0xff]  ;;  %v5606_v40 = vld [vmem:[#allocation75_spill] sm:$0xff] }
 0x2b6   : > { %1912 = vmatpush.msra.mxu0 %v2893_v46  ;;  %2074 = vmatpush.msrb.mxu1 %v5552_v41  ;;  %v5607_v8 = vld [vmem:[#allocation78_spill] sm:$0xff]  ;;  %v5608_v46 = vld [vmem:[#allocation79_spill] sm:$0xff]  ;;  %v5609_v41 = vld [vmem:[#allocation84_spill] sm:$0xff] }
 0x2b7   : > { %1952 = vmatpush.msra.mxu2 %v2894_v17  ;;  %2114 = vmatpush.msrb.mxu3 %v5553_v48  ;;  %v5610_v17 = vld [vmem:[#allocation85_spill] sm:$0xff]  ;;  %v5611_v48 = vld [vmem:[#allocation88_spill] sm:$0xff] }
 0x2b8   : > { %1913 = vmatpush.msra.mxu0 %v2895_v53  ;;  %2075 = vmatpush.msrb.mxu1 %v5554_v55  ;;  %v5612_v53 = vld [vmem:[#allocation89_spill] sm:$0xff]  ;;  %v5613_v55 = vld [vmem:[#allocation92_spill] sm:$0xff] }
 0x2b9   : > { %1953 = vmatpush.msra.mxu2 %v2896_v10  ;;  %2115 = vmatpush.msrb.mxu3 %v5555_v16  ;;  %v5614_v10 = vld [vmem:[#allocation93_spill] sm:$0xff]  ;;  %v5615_v16 = vld [vmem:[#allocation98_spill] sm:$0xff] }
 0x2ba   : > { %1914 = vmatpush.msra.mxu0 %v2897_v27  ;;  %2076 = vmatpush.msrb.mxu1 %v5556_v43  ;;  %v5616_v27 = vld [vmem:[#allocation99_spill] sm:$0xff] }
 0x2bb   : > { %1954 = vmatpush.msra.mxu2 %v2898_v39  ;;  %2116 = vmatpush.msrb.mxu3 %v5557_v22  ;;  %v5617_v43 = vld [vmem:[#allocation103_spill] sm:$0xff]  ;;  %v5618_v39 = vld [vmem:[#allocation104_spill] sm:$0xff] }
 0x2bc   : > { %1915 = vmatpush.msra.mxu0 %v5558_v5  ;;  %2077 = vmatpush.msrb.mxu1 %v5559_v9  ;;  %v5619_v22 = vld [vmem:[#allocation107_spill] sm:$0xff]  ;;  %v5620_v5 = vld [vmem:[#allocation108_spill] sm:$0xff]  ;;  %v5621_v9 = vld [vmem:[#allocation109_spill] sm:$0xff] }
 0x2bd   : > { %1955 = vmatpush.msra.mxu2 %v5560_v11  ;;  %1916 = vmatmul.f32.vlgmr.msra.gmra.mxu0 %v4736_v24  ;;  %v5622_v11 = vld [vmem:[#allocation82_spill] sm:$0xff] }
 0x2be   : > { %1956 = vmatmul.f32.vlgmr.msra.gmra.mxu2 %v4736_v24  ;;  %2117 = vmatpush.msrb.mxu3 %v5561_v63  ;;  %v5574_v24 = vld [vmem:[#allocation80_spill] sm:$0xff] }
 0x2bf   : > { %2078 = vmatpush.msrb.mxu1 %v5562_v29  ;;  %2047 = vmatpush.msrb.mxu0 %v5563_v3  ;;  %v5623_v63 = vld [vmem:[#allocation96_spill] sm:$0xff]  ;;  %v5624_v29 = vld [vmem:[#allocation81_spill] sm:$0xff]  ;;  %v5625_v3 = vld [vmem:[#allocation95_spill] sm:$0xff] }
 0x2c0   : > { %2118 = vmatpush.msrb.mxu3 %v5564_v54  ;;  %2087 = vmatpush.msrb.mxu2 %v5565_v62  ;;  %v5626_v54 = vld [vmem:[#allocation19_spill] sm:$0xff]  ;;  %v5627_v62 = vld [vmem:[#allocation20_spill] sm:$0xff] }
 0x2c1   : > { %2079 = vmatpush.msrb.mxu1 %v5566_v4  ;;  %2048 = vmatpush.msrb.mxu0 %v5567_v34  ;;  %v5628_v4 = vld [vmem:[#allocation21_spill] sm:$0xff]  ;;  %v5629_v34 = vld [vmem:[#allocation22_spill] sm:$0xff] }
 0x2c2   : > { %2119 = vmatpush.msrb.mxu3 %v5568_v47  ;;  %2088 = vmatpush.msrb.mxu2 %v5569_v36  ;;  %v5630_v47 = vld [vmem:[#allocation23_spill] sm:$0xff]  ;;  %v5631_v36 = vld [vmem:[#allocation24_spill] sm:$0xff] }
 0x2c3   : > { %2080 = vmatpush.msrb.mxu1 %v5570_v50  ;;  %2049 = vmatpush.msrb.mxu0 %v5571_v49  ;;  %v5632_v50 = vld [vmem:[#allocation25_spill] sm:$0xff]  ;;  %v5633_v49 = vld [vmem:[#allocation26_spill] sm:$0xff] }
 0x2c4   : > { %2120 = vmatpush.msrb.mxu3 %v5572_v13  ;;  %2089 = vmatpush.msrb.mxu2 %v5573_v45  ;;  %v5634_v13 = vld [vmem:[#allocation116_spill] sm:$0xff]  ;;  %v5635_v45 = vld [vmem:[#allocation117_spill] sm:$0xff] }
 0x2c5   : > { %2081 = vmatpush.msrb.mxu1 %v5574_v24  ;;  %2050 = vmatpush.msrb.mxu0 %v5575_v57  ;;  %v5636_v24 = vld [vmem:[#allocation118_spill] sm:$0xff]  ;;  %v5637_v57 = vld [vmem:[#allocation119_spill] sm:$0xff] }
 0x2c6   : > { %2121 = vmatpush.msrb.mxu3 %v5576_v31  ;;  %2090 = vmatpush.msrb.mxu2 %v5577_v2  ;;  %v5638_v31 = vld [vmem:[#allocation120_spill] sm:$0xff]  ;;  %v5639_v2 = vld [vmem:[#allocation121_spill] sm:$0xff] }
 0x2c7   : > { %2082 = vmatpush.msrb.mxu1 %v5578_v26  ;;  %2051 = vmatpush.msrb.mxu0 %v5579_v56  ;;  %v5640_v26 = vld [vmem:[#allocation122_spill] sm:$0xff]  ;;  %v5641_v56 = vld [vmem:[#allocation123_spill] sm:$0xff] }
 0x2c8   : > { %2122 = vmatpush.msrb.mxu3 %v5580_v19  ;;  %2091 = vmatpush.msrb.mxu2 %v5581_v58  ;;  %v5642_v19 = vld [vmem:[#allocation124_spill] sm:$0xff]  ;;  %v5643_v58 = vld [vmem:[#allocation125_spill] sm:$0xff] }
 0x2c9   : > { %2147 = vmatpush.msra.mxu1 %v5582_v21  ;;  %2052 = vmatpush.msrb.mxu0 %v5584_v18  ;;  %v5644_v21 = vld [vmem:[#allocation126_spill] sm:$0xff]  ;;  %v5646_v18 = vld [vmem:[#allocation128_spill] sm:$0xff] }
 0x2ca   : > { %2187 = vmatpush.msra.mxu3 %v5583_v23  ;;  %2092 = vmatpush.msrb.mxu2 %v5585_v1  ;;  %v5645_v23 = vld [vmem:[#allocation127_spill] sm:$0xff]  ;;  %v5647_v1 = vld [vmem:[#allocation129_spill] sm:$0xff] }
 0x2cb   : > { %2148 = vmatpush.msra.mxu1 %v5586_v52  ;;  %2053 = vmatpush.msrb.mxu0 %v5588_v42  ;;  %v5648_v52 = vld [vmem:[#allocation130_spill] sm:$0xff]  ;;  %v5650_v42 = vld [vmem:[#allocation132_spill] sm:$0xff] }
 0x2cc   : > { %2188 = vmatpush.msra.mxu3 %v5587_v25  ;;  %2093 = vmatpush.msrb.mxu2 %v5589_v33  ;;  %v5649_v25 = vld [vmem:[#allocation131_spill] sm:$0xff]  ;;  %v5651_v33 = vld [vmem:[#allocation133_spill] sm:$0xff] }
 0x2cd   : > { %2149 = vmatpush.msra.mxu1 %v5590_v59  ;;  %2054 = vmatpush.msrb.mxu0 %v5592_v61  ;;  %v5652_v59 = vld [vmem:[#allocation134_spill] sm:$0xff]  ;;  %v5654_v61 = vld [vmem:[#allocation136_spill] sm:$0xff] }
 0x2ce   : > { %2189 = vmatpush.msra.mxu3 %v5591_v30  ;;  %2094 = vmatpush.msrb.mxu2 %v5593_v15  ;;  %v5653_v30 = vld [vmem:[#allocation135_spill] sm:$0xff]  ;;  %v5655_v15 = vld [vmem:[#allocation137_spill] sm:$0xff] }
 0x2cf   : > { %2150 = vmatpush.msra.mxu1 %v5594_v0  ;;  %2055 = vmatpush.msrb.mxu0 %v5596_v35  ;;  %v5656_v0 = vld [vmem:[#allocation138_spill] sm:$0xff]  ;;  %v5658_v35 = vld [vmem:[#allocation140_spill] sm:$0xff] }
 0x2d0   : > { %2190 = vmatpush.msra.mxu3 %v5595_v12  ;;  %2095 = vmatpush.msrb.mxu2 %v5597_v38  ;;  %v5657_v12 = vld [vmem:[#allocation139_spill] sm:$0xff]  ;;  %v5659_v38 = vld [vmem:[#allocation141_spill] sm:$0xff] }
 0x2d1   : > { %2151 = vmatpush.msra.mxu1 %v5598_v37  ;;  %2056 = vmatpush.msrb.mxu0 %v5600_v6  ;;  %v5660_v37 = vld [vmem:[#allocation142_spill] sm:$0xff]  ;;  %v5662_v6 = vld [vmem:[#allocation144_spill] sm:$0xff] }
 0x2d2   : > { %2191 = vmatpush.msra.mxu3 %v5599_v14  ;;  %2096 = vmatpush.msrb.mxu2 %v5601_v20  ;;  %v5661_v14 = vld [vmem:[#allocation143_spill] sm:$0xff]  ;;  %v5663_v20 = vld [vmem:[#allocation145_spill] sm:$0xff] }
 0x2d3   : > { %2152 = vmatpush.msra.mxu1 %v5602_v60  ;;  %2057 = vmatpush.msrb.mxu0 %v5604_v28  ;;  %v5664_v60 = vld [vmem:[#allocation146_spill] sm:$0xff]  ;;  %v5666_v28 = vld [vmem:[#allocation148_spill] sm:$0xff] }
 0x2d4   : > { %2192 = vmatpush.msra.mxu3 %v5603_v51  ;;  %2097 = vmatpush.msrb.mxu2 %v5605_v32  ;;  %v5665_v51 = vld [vmem:[#allocation147_spill] sm:$0xff]  ;;  %v5667_v32 = vld [vmem:[#allocation149_spill] sm:$0xff] }
 0x2d5   : > { %2153 = vmatpush.msra.mxu1 %v5606_v40  ;;  %2058 = vmatpush.msrb.mxu0 %v5608_v46  ;;  %v4889_v46 = vld [vmem:[%s4973_s5] sm:$0xff] }
 0x2d6   : > { %2193 = vmatpush.msra.mxu3 %v5607_v8  ;;  %2098 = vmatpush.msrb.mxu2 %v5609_v41 }
 0x2d7   : > { %2154 = vmatpush.msra.mxu1 %v5610_v17  ;;  %2059 = vmatpush.msrb.mxu0 %v5612_v53 }
 0x2d8   : > { %2194 = vmatpush.msra.mxu3 %v5611_v48  ;;  %2099 = vmatpush.msrb.mxu2 %v5613_v55 }
 0x2d9   : > { %2155 = vmatpush.msra.mxu1 %v5614_v10  ;;  %2060 = vmatpush.msrb.mxu0 %v5616_v27 }
 0x2da   : > { %2195 = vmatpush.msra.mxu3 %v5615_v16  ;;  %2100 = vmatpush.msrb.mxu2 %v5617_v43  ;;  %v4895_v16 = vld [vmem:[%s4973_s5 + $0x8] sm:$0xff] }
 0x2db   : > { %2156 = vmatpush.msra.mxu1 %v5618_v39  ;;  %2061 = vmatpush.msrb.mxu0 %v5620_v5 }
 0x2dc   : > { %2196 = vmatpush.msra.mxu3 %v5619_v22  ;;  %2101 = vmatpush.msrb.mxu2 %v5621_v9  ;;  %v5668_v9 = vld [vmem:[#allocation113_spill] sm:$0xff] }
 0x2dd   : > { %2157 = vmatpush.msra.mxu1 %v5622_v11  ;;  %2062 = vmatpush.msrb.mxu0 %v5624_v29 }
 0x2de   : > { %2197 = vmatpush.msra.mxu3 %v5623_v63  ;;  %2102 = vmatpush.msrb.mxu2 %v5625_v3 }
 0x2df   : > { %2158 = vmatpush.msra.mxu1 %v5626_v54  ;;  %2127 = vmatpush.msra.mxu0 %v5628_v4 }
 0x2e0   : > { %2198 = vmatpush.msra.mxu3 %v5627_v62  ;;  %2167 = vmatpush.msra.mxu2 %v5629_v34  ;;  %v4902_v62 = vld [vmem:[%s4973_s5 + $0x18] sm:$0xff] }
 0x2e1   : > { %2159 = vmatpush.msra.mxu1 %v5630_v47  ;;  %2128 = vmatpush.msra.mxu0 %v5632_v50 }
 0x2e2   : > { %2199 = vmatpush.msra.mxu3 %v5631_v36  ;;  %2168 = vmatpush.msra.mxu2 %v5633_v49 }
 0x2e3   : > { %2160 = vmatpush.msra.mxu1 %v5634_v13  ;;  %2129 = vmatpush.msra.mxu0 %v5636_v24  ;;  %v4908_v24 = vld [vmem:[%s4973_s5 + $0x10] sm:$0xff] }
 0x2e4   : > { %2200 = vmatpush.msra.mxu3 %v5635_v45  ;;  %2169 = vmatpush.msra.mxu2 %v5637_v57 }
 0x2e5   : > { %2161 = vmatpush.msra.mxu1 %v5638_v31  ;;  %2130 = vmatpush.msra.mxu0 %v5640_v26 }
 0x2e6   : > { %2201 = vmatpush.msra.mxu3 %v5639_v2  ;;  %2170 = vmatpush.msra.mxu2 %v5641_v56  ;;  %v5669_v2 = vld [vmem:[#allocation115_spill] sm:$0xff] }
 0x2e7   : > { %2162 = vmatpush.msra.mxu1 %v5642_v19  ;;  %2131 = vmatpush.msra.mxu0 %v5644_v21 }
 0x2e8   : > { %2202 = vmatpush.msra.mxu3 %v5643_v58  ;;  %2171 = vmatpush.msra.mxu2 %v5645_v23 }
 0x2e9   : > { %2132 = vmatpush.msra.mxu0 %v5646_v18 }
 0x2ea   : > { %2172 = vmatpush.msra.mxu2 %v5647_v1 }
 0x2eb   : > { %2133 = vmatpush.msra.mxu0 %v5648_v52 }
 0x2ec   : > { %2173 = vmatpush.msra.mxu2 %v5649_v25 }
 0x2ed   : > { %2134 = vmatpush.msra.mxu0 %v5650_v42 }
 0x2ee   : > { %2174 = vmatpush.msra.mxu2 %v5651_v33 }
 0x2ef   : > { %2135 = vmatpush.msra.mxu0 %v5652_v59 }
 0x2f0   : > { %2175 = vmatpush.msra.mxu2 %v5653_v30 }
 0x2f1   : > { %2136 = vmatpush.msra.mxu0 %v5654_v61 }
 0x2f2   : > { %2176 = vmatpush.msra.mxu2 %v5655_v15 }
 0x2f3   : > { %2137 = vmatpush.msra.mxu0 %v5656_v0 }
 0x2f4   : > { %2177 = vmatpush.msra.mxu2 %v5657_v12 }
 0x2f5   : > { %2138 = vmatpush.msra.mxu0 %v5658_v35 }
 0x2f6   : > { %2178 = vmatpush.msra.mxu2 %v5659_v38 }
 0x2f7   : > { %2139 = vmatpush.msra.mxu0 %v5660_v37 }
 0x2f8   : > { %2179 = vmatpush.msra.mxu2 %v5661_v14 }
 0x2f9   : > { %2140 = vmatpush.msra.mxu0 %v5662_v6  ;;  %v5672_v6 = vld [vmem:[#allocation112_spill] sm:$0xff] }
 0x2fa   : > { %2180 = vmatpush.msra.mxu2 %v5663_v20 }
 0x2fb   : > { %2141 = vmatpush.msra.mxu0 %v5664_v60 }
 0x2fc   : > { %2181 = vmatpush.msra.mxu2 %v5665_v51 }
 0x2fd   : > { %2142 = vmatpush.msra.mxu0 %v5666_v28 }
 0x2fe   : > { %2182 = vmatpush.msra.mxu2 %v5667_v32 }
 0x301   : > { %v1707_v40 = vpop.f32.mrf.mxu1 }
 0x307   : > { %v1747_v17 = vpop.f32.mrf.mxu3 }
 0x309   : > { %v1787_v48 = vpop.f32.mrf.mxu1 }
 0x30f   : > { %v1827_v5 = vpop.f32.mrf.mxu3 }
 0x319   : > { %v1687_v8 = vpop.f32.mrf.mxu0 }
 0x31a   : > { %v1688_v41 = vadd.f32 %v4889_v46, %v1687_v8 }
 0x31c   : > { %v1708_v53 = vadd.f32 %v1707_v40, %v1688_v41 }
 0x31e   : > { %v2468_v55 = vmul.f32 -1.442695, %v1708_v53 }
 0x31f   : > { %v1727_v10 = vpop.f32.mrf.mxu2 }
 0x320   : > { %2629 = vpow2.f32 %v2468_v55  ;;  %v1728_v27 = vadd.f32 %v4895_v16, %v1727_v10 }
 0x322   : > { %v1748_v43 = vadd.f32 %v1747_v17, %v1728_v27  ;;  %v1767_v47 = vpop.f32.mrf.mxu0 }
 0x323   : > { %v1937_v39 = vpop.f32.mrf.mxu1  ;;  %v1768_v57 = vadd.f32 %v4908_v24, %v1767_v47 }
 0x324   : > { %v2469_v22 = vmul.f32 -1.442695, %v1748_v43  ;;  %v1981_v11 = vadd.f32 %v1937_v39, %v5668_v9 }
 0x325   : > { %v1788_v58 = vadd.f32 %v1787_v48, %v1768_v57 }
 0x326   : > { %v2630_v63 = vpop.eup %2629  ;;  %2631 = vpow2.f32 %v2469_v22  ;;  %v2472_v54 = vmul.f32 -1.442695, %v1981_v11 }
 0x327   : > { %v1833_v29 = vadd.f32 1.0, %v2630_v63 }
 0x328   : > { %v1807_v3 = vpop.f32.mrf.mxu2 }
 0x329   : > { %2633 = vrcp.f32 %v1833_v29  ;;  %v1808_v4 = vadd.f32 %v4902_v62, %v1807_v3  ;;  %v1845_v33 = vand.u32 2147483648, %v1833_v29  ;;  %vm1839_vm15 = vweird.f32 %v1833_v29 }
 0x32a   : > { %2635 = vpow2.f32 %v2472_v54  ;;  %v1977_v49 = vpop.f32.mrf.mxu3  ;;  %v1843_v61 = vand.u32 2147483647, %v1833_v29 }
 0x32b   : > { %v1828_v36 = vadd.f32 %v1827_v5, %v1808_v4  ;;  %v1983_v26 = vadd.f32 %v1977_v49, %v5669_v2  ;;  %v1846_v14 = vor.u32 1.1754944e-38, %v1845_v33 }
 0x32c   : > { %v2632_v34 = vpop.eup %2631  ;;  %vm1844_vm3 = vcmp.eq.f32.partialorder %v1843_v61, 8.507059e+37 }
 0x32d   : > { %v1852_v50 = vadd.f32 1.0, %v2632_v34  ;;  %v2470_v13 = vmul.f32 -1.442695, %v1828_v36  ;;  %v2473_v23 = vmul.f32 -1.442695, %v1983_v26 }
 0x32f   : > { %v2634_v45 = vpop.eup %2633  ;;  %2637 = vrcp.f32 %v1852_v50  ;;  %v1864_v15 = vand.u32 2147483648, %v1852_v50  ;;  %v1862_v12 = vand.u32 2147483647, %v1852_v50  ;;  %vm1858_vm2 = vweird.f32 %v1852_v50 }
 0x330   : > { %v1835_v31 = vmul.f32 %v2634_v45, %v1833_v29  ;;  %2639 = vpow2.f32 %v2470_v13  ;;  %v2636_v19 = vpop.eup %2635  ;;  %vm1840_vm14 = vweird.f32 %v2634_v45 }
 0x331   : > { %v4912_v42 = vadd.f32 1.0, %v2636_v19  ;;  %2641 = vtanh.f32 %v1788_v58  ;;  %vm4914_vm0 = vmor %vm1839_vm15, %vm1840_vm14  ;;  %v1865_v28 = vor.u32 1.1754944e-38, %v1864_v15  ;;  %vm1863_vm5 = vcmp.eq.f32.partialorder %v1862_v12, 8.507059e+37 }
 0x332   : > { %v1836_v56 = vsub.f32 1.0, %v1835_v31  ;;  %2643 = vpow2.f32 %v2473_v23  ;;  %v5673_v31 = vld [vmem:[#allocation114_spill] sm:$0xff] }
 0x333   : > { %v2018_v19 = vand.u32 2147483648, %v4912_v42  ;;  %vm2012_vm11 = vweird.f32 %v4912_v42  ;;  %v2016_v23 = vand.u32 2147483647, %v4912_v42 }
 0x334   : > { %v1837_v21 = vmul.f32 %v2634_v45, %v1836_v56 }
 0x335   : > { %v2638_v18 = vpop.eup %2637  ;;  %vm2017_vm15 = vcmp.eq.f32.partialorder %v2016_v23, 8.507059e+37 }
 0x336   : > { %v2640_v1 = vpop.eup %2639  ;;  %v1854_v52 = vmul.f32 %v2638_v18, %v1852_v50  ;;  %v1838_v25 = vadd.f32 %v2634_v45, %v1837_v21  ;;  %vm1859_vm1 = vweird.f32 %v2638_v18 }
 0x337   : > { %v1872_v59 = vadd.f32 1.0, %v2640_v1  ;;  %v2642_v51 = vpop.eup %2641  ;;  %vm1860_vm4 = vmor %vm1858_vm2, %vm1859_vm1 }
 0x338   : > { %v1855_v30 = vsub.f32 1.0, %v1854_v52  ;;  %v1842_v38 = vsel %vm4914_vm0, %v2634_v45, %v1838_v25  ;;  %v2644_v8 = vpop.eup %2643 }
 0x339   : > { %2645 = vrcp.f32 %v1872_v59  ;;  %v1847_v32 = vsel %vm1844_vm3, %v1846_v14, %v1842_v38  ;;  %v4926_v5 = vadd.f32 1.0, %v2644_v8  ;;  %v1884_v11 = vand.u32 2147483648, %v1872_v59 }
 0x33a   : > { %v1856_v35 = vmul.f32 %v2638_v18, %v1855_v30  ;;  %2647 = vrcp.f32 %v4912_v42  ;;  %v1917_v37 = vpop.f32.mrf.mxu0  ;;  %v1889_v10 = vmul.f32 %v2642_v51, %v1847_v32  ;;  %v1882_v29 = vand.u32 2147483647, %v1872_v59 }
 0x33b   : > { %v1980_v20 = vadd.f32 %v1917_v37, %v5672_v6  ;;  %vm1878_vm7 = vweird.f32 %v1872_v59  ;;  %vm2032_vm3 = vweird.f32 %v4926_v5  ;;  %v2036_v51 = vand.u32 2147483647, %v4926_v5 }
 0x33c   : > { %v1857_v60 = vadd.f32 %v2638_v18, %v1856_v35  ;;  %vm1883_vm9 = vcmp.eq.f32.partialorder %v1882_v29, 8.507059e+37 }
 0x33d   : > { %v2471_v40 = vmul.f32 -1.442695, %v1980_v20 }
 0x33e   : > { %v1861_v41 = vsel %vm1860_vm4, %v2638_v18, %v1857_v60  ;;  %v2038_v60 = vand.u32 2147483648, %v4926_v5 }
 0x33f   : > { %v2646_v17 = vpop.eup %2645  ;;  %v1866_v48 = vsel %vm1863_vm5, %v1865_v28, %v1861_v41  ;;  %2649 = vpow2.f32 %v2471_v40  ;;  %vm2037_vm5 = vcmp.eq.f32.partialorder %v2036_v51, 8.507059e+37 }
 0x340   : > { %v2648_v53 = vpop.eup %2647  ;;  %v1888_v55 = vmul.f32 %v1866_v48, %v4677_v7  ;;  %v1874_v27 = vmul.f32 %v2646_v17, %v1872_v59  ;;  %vm1879_vm6 = vweird.f32 %v2646_v17  ;;  %v1885_v7 = vor.u32 1.1754944e-38, %v1884_v11 }
 0x341   : > { %v2008_v22 = vmul.f32 %v2648_v53, %v4912_v42  ;;  %vm1880_vm8 = vmor %vm1878_vm7, %vm1879_vm6  ;;  %v1957_v49 = vpop.f32.mrf.mxu2  ;;  %vm2013_vm10 = vweird.f32 %v2648_v53  ;;  %v2019_v59 = vor.u32 1.1754944e-38, %v2018_v19  ;;  %v2039_v32 = vor.u32 1.1754944e-38, %v2038_v60 }
 0x342   : > { %v4923_v43 = vadd.f32 %v1889_v10, %v1888_v55  ;;  %v1875_v39 = vsub.f32 1.0, %v1874_v27  ;;  %v1982_v2 = vadd.f32 %v1957_v49, %v5673_v31  ;;  %vm4935_vm12 = vmor %vm2012_vm11, %vm2013_vm10 }
 0x343   : > { %v2009_v4 = vsub.f32 1.0, %v2008_v22 }
 0x344   : > { %2651 = vtanh.f32 %v4923_v43  ;;  %v1876_v9 = vmul.f32 %v2646_v17, %v1875_v39 }
 0x345   : > { %v2650_v63 = vpop.eup %2649  ;;  %2653 = vrcp.f32 %v4926_v5  ;;  %v2010_v50 = vmul.f32 %v2648_v53, %v2009_v4 }
 0x346   : > { %v1987_v3 = vadd.f32 1.0, %v2650_v63  ;;  %v1877_v54 = vadd.f32 %v2646_v17, %v1876_v9 }
 0x347   : > { %v2011_v56 = vadd.f32 %v2648_v53, %v2010_v50 }
 0x348   : > { %2655 = vrcp.f32 %v1987_v3  ;;  %v1881_v34 = vsel %vm1880_vm8, %v2646_v17, %v1877_v54  ;;  %v1999_v1 = vand.u32 2147483648, %v1987_v3  ;;  %v1997_v25 = vand.u32 2147483647, %v1987_v3 }
 0x349   : > { %v1886_v36 = vsel %vm1883_vm9, %v1885_v7, %v1881_v34  ;;  %2657 = vtanh.f32 %v1982_v2  ;;  %v2015_v33 = vsel %vm4935_vm12, %v2648_v53, %v2011_v56  ;;  %vm1993_vm14 = vweird.f32 %v1987_v3 }
 0x34a   : > { %v2652_v47 = vpop.eup %2651  ;;  %v2000_v42 = vor.u32 1.1754944e-38, %v1999_v1  ;;  %v2020_v15 = vsel %vm2017_vm15, %v2019_v59, %v2015_v33  ;;  %vm1998_vm1 = vcmp.eq.f32.partialorder %v1997_v25, 8.507059e+37 }
 0x34b   : > { %v1892_v13 = vmul.f32 %v2652_v47, %v1886_v36  ;;  %v2654_v45 = vpop.eup %2653  ;;  %v2042_v37 = vmul.f32 %v2020_v15, %v4719_v44 }
 0x34c   : > { %v2028_v58 = vmul.f32 %v2654_v45, %v4926_v5  ;;  %vm2033_vm2 = vweird.f32 %v2654_v45 }
 0x34d   : > { %2083 = vmatmul.f32.vlgmr.msrb.gmra.mxu1 %v1892_v13  ;;  %2123 = vmatmul.f32.vlgmr.msrb.gmra.mxu3 %v1892_v13  ;;  %vm2034_vm4 = vmor %vm2032_vm3, %vm2033_vm2 }
 0x34e   : > { %v2656_v57 = vpop.eup %2655  ;;  %v2029_v30 = vsub.f32 1.0, %v2028_v58 }
 0x34f   : > { %v1989_v26 = vmul.f32 %v2656_v57, %v1987_v3  ;;  %vm1994_vm13 = vweird.f32 %v2656_v57  ;;  %v2658_v12 = vpop.eup %2657 }
 0x350   : > { %vm1995_vm0 = vmor %vm1993_vm14, %vm1994_vm13  ;;  %v2030_v35 = vmul.f32 %v2654_v45, %v2029_v30 }
 0x351   : > { %v1990_v21 = vsub.f32 1.0, %v1989_v26 }
 0x352   : > { %v2031_v20 = vadd.f32 %v2654_v45, %v2030_v35 }
 0x353   : > { %v1991_v52 = vmul.f32 %v2656_v57, %v1990_v21 }
 0x354   : > { %v2035_v28 = vsel %vm2034_vm4, %v2654_v45, %v2031_v20 }
 0x355   : > { %v1992_v61 = vadd.f32 %v2656_v57, %v1991_v52  ;;  %2163 = vmatmul.f32.vlgmr.msra.gmra.mxu1 %v1892_v13  ;;  %2203 = vmatmul.f32.vlgmr.msra.gmra.mxu3 %v1892_v13  ;;  %v2040_v8 = vsel %vm2037_vm5, %v2039_v32, %v2035_v28 }
 0x357   : > { %v1996_v0 = vsel %vm1995_vm0, %v2656_v57, %v1992_v61 }
 0x358   : > { %v2001_v38 = vsel %vm1998_vm1, %v2000_v42, %v1996_v0 }
 0x359   : > { %v2043_v14 = vmul.f32 %v2658_v12, %v2001_v38 }
 0x35b   : > { %v2044_v6 = vadd.f32 %v2043_v14, %v2042_v37 }
 0x35d   : > { %2659 = vtanh.f32 %v2044_v6  ;;  %2271 = vst [vmem:[#allocation4] sm:$0xff] %v2044_v6 }
 0x363   : > { %v2660_v40 = vpop.eup %2659 }
 0x364   : > { %v2046_v41 = vmul.f32 %v2660_v40, %v2040_v8 }
 0x366   : > { %2063 = vmatmul.f32.vlgmr.msrb.gmra.mxu0 %v2046_v41  ;;  %2270 = vst [vmem:[#allocation3] sm:$0xff] %v2046_v41  ;;  %2103 = vmatmul.f32.vlgmr.msrb.gmra.mxu2 %v2046_v41 }
 0x36e   : > { %2143 = vmatmul.f32.vlgmr.msra.gmra.mxu0 %v2046_v41  ;;  %2183 = vmatmul.f32.vlgmr.msra.gmra.mxu2 %v2046_v41 }
 0x3ca   : > { %v2084_v48 = vpop.f32.mrf.mxu1 }
 0x3d0   : > { %v2124_v10 = vpop.f32.mrf.mxu3 }
 0x3d2   : > { %v2164_v13 = vpop.f32.mrf.mxu1 }
 0x3d8   : > { %v2204_v3 = vpop.f32.mrf.mxu3 }
 0x3e3   : > { %v2064_v44 = vpop.f32.mrf.mxu0 }
 0x3e4   : > { %v2065_v17 = vadd.f32 %v4889_v46, %v2064_v44 }
 0x3e6   : > { %v2085_v53 = vadd.f32 %v2084_v48, %v2065_v17 }
 0x3e8   : > { %v2474_v55 = vmul.f32 -1.442695, %v2085_v53 }
 0x3e9   : > { %v2104_v27 = vpop.f32.mrf.mxu2 }
 0x3ea   : > { %2661 = vpow2.f32 %v2474_v55  ;;  %v2105_v39 = vadd.f32 %v4895_v16, %v2104_v27 }
 0x3eb   : > { %v2144_v34 = vpop.f32.mrf.mxu0 }
 0x3ec   : > { %v2125_v22 = vadd.f32 %v2124_v10, %v2105_v39  ;;  %v2145_v16 = vadd.f32 %v4908_v24, %v2144_v34 }
 0x3ee   : > { %v2475_v5 = vmul.f32 -1.442695, %v2125_v22  ;;  %v2165_v31 = vadd.f32 %v2164_v13, %v2145_v16 }
 0x3f0   : > { %v2662_v9 = vpop.eup %2661  ;;  %2663 = vpow2.f32 %v2475_v5 }
 0x3f1   : > { %v2210_v11 = vadd.f32 1.0, %v2662_v9  ;;  %v2184_v63 = vpop.f32.mrf.mxu2 }
 0x3f2   : > { %v2185_v29 = vadd.f32 %v4902_v62, %v2184_v63 }
 0x3f3   : > { %2665 = vrcp.f32 %v2210_v11  ;;  %v2222_v56 = vand.u32 2147483648, %v2210_v11  ;;  %vm2216_vm7 = vweird.f32 %v2210_v11  ;;  %v2220_v58 = vand.u32 2147483647, %v2210_v11 }
 0x3f4   : > { %v2205_v54 = vadd.f32 %v2204_v3, %v2185_v29 }
 0x3f5   : > { %v2223_v1 = vor.u32 1.1754944e-38, %v2222_v56  ;;  %vm2221_vm11 = vcmp.eq.f32.partialorder %v2220_v58, 8.507059e+37 }
 0x3f6   : > { %v2664_v46 = vpop.eup %2663  ;;  %v2476_v4 = vmul.f32 -1.442695, %v2205_v54 }
 0x3f7   : > { %v2229_v7 = vadd.f32 1.0, %v2664_v46 }
 0x3f8   : > { %2667 = vpow2.f32 %v2476_v4 }
 0x3f9   : > { %v2666_v47 = vpop.eup %2665  ;;  %2669 = vrcp.f32 %v2229_v7  ;;  %v2241_v21 = vand.u32 2147483648, %v2229_v7  ;;  %v2239_v18 = vand.u32 2147483647, %v2229_v7  ;;  %vm2235_vm10 = vweird.f32 %v2229_v7 }
 0x3fa   : > { %v2212_v36 = vmul.f32 %v2666_v47, %v2210_v11  ;;  %vm2217_vm6 = vweird.f32 %v2666_v47 }
 0x3fb   : > { %vm2218_vm8 = vmor %vm2216_vm7, %vm2217_vm6  ;;  %v2242_v33 = vor.u32 1.1754944e-38, %v2241_v21  ;;  %vm2240_vm13 = vcmp.eq.f32.partialorder %v2239_v18, 8.507059e+37 }
 0x3fc   : > { %v2213_v50 = vsub.f32 1.0, %v2212_v36 }
 0x3fe   : > { %v2668_v49 = vpop.eup %2667  ;;  %v2214_v45 = vmul.f32 %v2666_v47, %v2213_v50 }
 0x3ff   : > { %v2670_v57 = vpop.eup %2669  ;;  %v2249_v62 = vadd.f32 1.0, %v2668_v49 }
 0x400   : > { %v2231_v2 = vmul.f32 %v2670_v57, %v2229_v7  ;;  %v2215_v26 = vadd.f32 %v2666_v47, %v2214_v45  ;;  %vm2236_vm9 = vweird.f32 %v2670_v57 }
 0x401   : > { %2671 = vrcp.f32 %v2249_v62  ;;  %vm2237_vm12 = vmor %vm2235_vm10, %vm2236_vm9  ;;  %v2261_v6 = vand.u32 2147483648, %v2249_v62  ;;  %vm2255_vm15 = vweird.f32 %v2249_v62  ;;  %v2259_v20 = vand.u32 2147483647, %v2249_v62 }
 0x402   : > { %v2232_v19 = vsub.f32 1.0, %v2231_v2  ;;  %2673 = vtanh.f32 %v2165_v31  ;;  %v2219_v24 = vsel %vm2218_vm8, %v2666_v47, %v2215_v26 }
 0x403   : > { %v2224_v59 = vsel %vm2221_vm11, %v2223_v1, %v2219_v24  ;;  %v2262_v51 = vor.u32 1.1754944e-38, %v2261_v6  ;;  %vm2260_vm1 = vcmp.eq.f32.partialorder %v2259_v20, 8.507059e+37 }
 0x404   : > { %v2233_v23 = vmul.f32 %v2670_v57, %v2232_v19 }
 0x406   : > { %v2234_v52 = vadd.f32 %v2670_v57, %v2233_v23 }
 0x407   : > { %v2672_v25 = vpop.eup %2671 }
 0x408   : > { %v2238_v30 = vsel %vm2237_vm12, %v2670_v57, %v2234_v52  ;;  %v2251_v61 = vmul.f32 %v2672_v25, %v2249_v62  ;;  %v2674_v42 = vpop.eup %2673  ;;  %vm2256_vm14 = vweird.f32 %v2672_v25 }
 0x409   : > { %v2243_v15 = vsel %vm2240_vm13, %v2242_v33, %v2238_v30  ;;  %v2266_v12 = vmul.f32 %v2674_v42, %v2224_v59  ;;  %vm2257_vm0 = vmor %vm2255_vm15, %vm2256_vm14 }
 0x40a   : > { %v2265_v0 = vmul.f32 %v2243_v15, %v4923_v43  ;;  %v2252_v35 = vsub.f32 1.0, %v2251_v61 }
 0x40c   : > { %v2267_v38 = vadd.f32 %v2266_v12, %v2265_v0  ;;  %v2253_v37 = vmul.f32 %v2672_v25, %v2252_v35 }
 0x40e   : > { %2675 = vtanh.f32 %v2267_v38  ;;  %2273 = vst [vmem:[#allocation6] sm:$0xff] %v2267_v38  ;;  %v2254_v14 = vadd.f32 %v2672_v25, %v2253_v37 }
 0x410   : > { %v2258_v60 = vsel %vm2257_vm0, %v2672_v25, %v2254_v14 }
 0x411   : > { %v2263_v32 = vsel %vm2260_vm1, %v2262_v51, %v2258_v60 }
 0x413   : > { %2277 = sbr.rel (%p2477_p9) target bundleno = 1209 (0x4b9), region = 72 }
 0x414   : > { %v2676_v28 = vpop.eup %2675 }
 0x415   : > { %v2269_v40 = vmul.f32 %v2676_v28, %v2263_v32 }
 0x417   : > { %2272 = vst [vmem:[#allocation5] sm:$0xff] %v2269_v40 }
 0x418   : > { %v2293_v43 = vld [vmem:[#allocation12 + $0x78] sm:$0xff]  ;;  %v2292_v8 = vld [vmem:[#allocation12 + $0x70] sm:$0xff]  ;;  %v2291_v41 = vld [vmem:[#allocation12 + $0x68] sm:$0xff] }
 0x419   : > { %2298 = vmatpush.msra.mxu0 %v2293_v43  ;;  %v2290_v44 = vld [vmem:[#allocation12 + $0x60] sm:$0xff]  ;;  %v2289_v17 = vld [vmem:[#allocation12 + $0x58] sm:$0xff]  ;;  %v2288_v48 = vld [vmem:[#allocation12 + $0x50] sm:$0xff] }
 0x41a   : > { %v2287_v53 = vld [vmem:[#allocation12 + $0x48] sm:$0xff]  ;;  %v2286_v55 = vld [vmem:[#allocation12 + $0x40] sm:$0xff]  ;;  %v2285_v10 = vld [vmem:[#allocation12 + $0x38] sm:$0xff] }
 0x41b   : > { %2299 = vmatpush.msra.mxu0 %v2292_v8  ;;  %v2284_v27 = vld [vmem:[#allocation12 + $0x30] sm:$0xff]  ;;  %v2283_v39 = vld [vmem:[#allocation12 + $0x28] sm:$0xff]  ;;  %v2282_v22 = vld [vmem:[#allocation12 + $0x20] sm:$0xff] }
 0x41c   : > { %v2281_v5 = vld [vmem:[#allocation12 + $0x18] sm:$0xff]  ;;  %v2280_v9 = vld [vmem:[#allocation12 + $0x10] sm:$0xff]  ;;  %v2279_v11 = vld [vmem:[#allocation12 + $0x8] sm:$0xff] }
 0x41d   : > { %2300 = vmatpush.msra.mxu0 %v2291_v41  ;;  %v2278_v63 = vld [vmem:[#allocation12] sm:$0xff]  ;;  %v2903_v29 = vld [vmem:[%s4975_s7] ss:$0 sm:$0xff] }
 0x41f   : > { %2301 = vmatpush.msra.mxu0 %v2290_v44 }
 0x421   : > { %2302 = vmatpush.msra.mxu0 %v2289_v17 }
 0x423   : > { %2303 = vmatpush.msra.mxu0 %v2288_v48 }
 0x425   : > { %2304 = vmatpush.msra.mxu0 %v2287_v53 }
 0x427   : > { %2305 = vmatpush.msra.mxu0 %v2286_v55 }
 0x429   : > { %2306 = vmatpush.msra.mxu0 %v2285_v10 }
 0x42b   : > { %2307 = vmatpush.msra.mxu0 %v2284_v27 }
 0x42d   : > { %2308 = vmatpush.msra.mxu0 %v2283_v39 }
 0x42f   : > { %2309 = vmatpush.msra.mxu0 %v2282_v22 }
 0x431   : > { %2310 = vmatpush.msra.mxu0 %v2281_v5 }
 0x433   : > { %2311 = vmatpush.msra.mxu0 %v2280_v9 }
 0x435   : > { %2312 = vmatpush.msra.mxu0 %v2279_v11 }
 0x437   : > { %2313 = vmatpush.msra.mxu0 %v2278_v63 }
 0x438   : > { %2314 = vmatmul.f32.vlgmr.msra.gmra.mxu0 %v2269_v40 }
 0x4b5   : > { %v2315_v3 = vpop.f32.mrf.mxu0 }
 0x4b6   : > { %v2316_v54 = vadd.f32 %v2903_v29, %v2315_v3 }
 0x4b8   : > { %2318 = vst [vmem:[#allocation13] sm:$0xff] %v2316_v54 }
 0x4b9 PF: > { %p2514_p10 = scmp.eq.s32.totalorder %s2420_s30, 1  ;;  %s2329_s11 = sshll.u32 %s4976_s8, 4  ;;  %s2330_s11 = int_to_ptr.hbm [resolvable:$true] %s2329_s11 }
 0x4ba   : > { %s3066_s14 = smov [#allocation13]  }
 0x4bb   : > { %s2327_s12 = sshll.u32 %s3066_s14, 4  ;;  %s2328_s12 = int_to_ptr.vmem [resolvable:$true] %s2327_s12 }
 0x4bc   : > { %2495 = dma.vmem_to_hbm [thread:$0]  (%p2514_p10), %s2328_s12, 128, %s2330_s11, [#allocation9]  }
 0x4bd   : > { %3043 = dma.done.wait (%p2514_p10), [#allocation9], 128  }
 0x4be   : > { %3045 = vsyncadd (%p2514_p10), [#allocation9], 4294967168 }
 0x4bf PF: > { %s21_s29 = sadd.s32 1, %s3056_s29   ;;  %s5676_s27 = smov %s3052_s28 }
 0x4c0   : > { %p18_p11 = scmp.ge.s32.totalorder %s21_s29, 4   ;;  %s5677_s28 = smov %s5679_s17 }
 0x4c2   :  { %20 = sbr.rel (!%p18_p11) target bundleno = 4 (0x4), region = 106 }
 0x4c7   :  { %2343 = vsyncpa [#allocation8], 1 }
 0x4c8   :  { %2345 = vsyncpa [#allocation8 + $0x1], 1 }
 0x4c9   :  { %2346 = vsyncpa [#allocation11], 1 }
 0x4ca   :  { %2347 = vsyncpa [#allocation9], 1 }
 0x4cb   :  { %2349 = vsyncpa [#allocation9 + $0x1], 1 }

</bundles_post_ra>
